<compile_context>
chip_gen: v7x
topology: tpu7x:2x2x1
jax: 0.10.0
libtpu: 0.0.40
codegen_flags: <defaults>
</compile_context>

<pallas_src>
import functools

import jax
import jax.numpy as jnp
from jax.experimental import pallas as pl
from jax.experimental.pallas import tpu as pltpu


_MAX_UNROLL_ITERS = 6   # unroll the in-kernel iteration loop up to this count


def _round_up(x, m):
    return ((x + m - 1) // m) * m


def _pad_lanes(a, p, value=0.0):
    """Constant-pad the last (lane) axis of `a` out to width p."""
    pad = p - a.shape[-1]
    if pad == 0:
        return a
    cfg = [(0, 0)] * (a.ndim - 1) + [(0, pad)]
    return jnp.pad(a, cfg, constant_values=value)


def _row_tile(h, row_bytes, budget=8 << 20):
    """Largest multiple-of-8 row tile that divides H and keeps the per-tile
    VMEM working set (inputs double-buffered + output + scratch + temps)
    under `budget`."""
    cands = [t for t in (256, 128, 64, 32, 16, 8) if t < h and h % t == 0]
    if not cands:
        return h
    for t in cands:
        if row_bytes * t <= budget:
            return t
    return cands[-1]


# ----------------------------------------------------------------------------
# Fused whole-solve kernel.  For one row-block (TH rows), runs iter_num GAP
# iterations with the shifted-domain state v (and y0 when accelerated) held in
# VMEM scratch.  Per iteration:
#   x1  = v + At(Phi, y0 - A(Phi, v)) * inv_phi2          (data fidelity)
#   y1  = y0 + (y - A(Phi, v))                            (only if accel)
#   x   = denoiser(shift_back(x1))                        (residual 1x1 MLP)
#   v   = shift(x)                                        (skipped on last)
# Only the final x (C, TH, W) is stored to HBM.
# ----------------------------------------------------------------------------
def _gap_solve_kernel(C, step, W, iter_num, accel, *refs):
    (v0_ref, phi_ref, ipp_ref, y_ref,
     w1_ref, b1_ref, w2_ref, b2_ref, x_ref, v_sc) = refs[:10]
    y0_sc = refs[10] if accel else None
    hid = w1_ref.shape[0]

    # Seed the per-tile iteration state in VMEM scratch.
    v_sc[...] = v0_ref[...]
    if accel:
        y0_sc[...] = y_ref[...]

    def gap_step(write_x, zero_v):
        y0 = y0_sc[...] if accel else y_ref[...]          # (TH, P)

        # A(Phi, v): channel reduction, pure VPU MACs (no MXU needed).
        av = phi_ref[0, :, :] * v_sc[0, :, :]
        for c in range(1, C):
            av = av + phi_ref[c, :, :] * v_sc[c, :, :]

        # (y0 - A(Phi,v)) / PhiPhi_T with the reciprocal hoisted out of the
        # kernel entirely (precomputed in JAX).
        resid = (y0 - av) * ipp_ref[...]

        if accel and not write_x:
            # accelerated measurement update; the last iteration's y1 is
            # never consumed, so it is skipped when write_x=True.
            y0_sc[...] = y0 + (y_ref[...] - av)

        # shift_back(x1): per channel take the W lanes starting at lane
        # c*step.  x1 is never materialized as a full (C, TH, P) tensor.
        xub = []
        for c in range(C):
            lo = c * step
            xub.append(v_sc[c, :, lo:lo + W]
                       + phi_ref[c, :, lo:lo + W] * resid[:, lo:lo + W])

        # Denoiser: residual per-pixel MLP over the channel axis, as unrolled
        # VPU broadcast-MACs with scalar weights read from SMEM.
        hs = []
        for k in range(hid):
            h = b1_ref[k] + w1_ref[k, 0] * xub[0]
            for c in range(1, C):
                h = h + w1_ref[k, c] * xub[c]
            hs.append(jnp.maximum(h, 0.0))

        if zero_v:
            # Out-of-band lanes of the shifted state must be zero from here
            # on; band writes below never touch them again, so this store
            # happens exactly once across all iterations.
            v_sc[...] = jnp.zeros(v_sc.shape, v_sc.dtype)

        for c in range(C):
            o = xub[c] + b2_ref[c]
            for k in range(hid):
                o = o + w2_ref[c, k] * hs[k]
            o = o.astype(v_sc.dtype)
            if write_x:
                x_ref[c, :, :] = o                        # lane-dense store
            else:
                # shift(): place channel c at lane offset c*step.
                v_sc[c, :, c * step:c * step + W] = o

    n_mid = iter_num - 1
    if n_mid > 0:
        # First middle iteration peeled so the out-of-band zeroing runs once.
        gap_step(write_x=False, zero_v=True)
        rest = n_mid - 1
        if 0 < rest <= _MAX_UNROLL_ITERS:
            for _ in range(rest):
                gap_step(write_x=False, zero_v=False)
        elif rest > _MAX_UNROLL_ITERS:
            @pl.loop(0, rest)
            def _(_it):
                gap_step(write_x=False, zero_v=False)
    # Final iteration: emit x only (v1 / y1 are dead).
    gap_step(write_x=True, zero_v=False)


def _build_gap_solver(C, H, W, P, step, dtype, th, iter_num, accel):
    kern = functools.partial(_gap_solve_kernel, C, step, W, iter_num, accel)
    cube_spec = pl.BlockSpec((C, th, P), lambda i: (0, i, 0))
    row_spec = pl.BlockSpec((th, P), lambda i: (i, 0))
    smem_spec = pl.BlockSpec(memory_space=pltpu.MemorySpace.SMEM)

    in_specs = [cube_spec, cube_spec, row_spec, row_spec] + [smem_spec] * 4

    scratch = [pltpu.VMEM((C, th, P), dtype)]             # v state
    if accel:
        scratch.append(pltpu.VMEM((th, P), dtype))        # y0 state

    return pl.pallas_call(
        kern,
        grid=(H // th,),
        in_specs=in_specs,
        out_specs=pl.BlockSpec((C, th, W), lambda i: (0, i, 0)),
        out_shape=jax.ShapeDtypeStruct((C, H, W), dtype),
        scratch_shapes=scratch,
        compiler_params=pltpu.CompilerParams(
            # rows are independent -> shard across both TensorCores on v7x.
            dimension_semantics=("parallel",)),
    )


# ----------------------------------------------------------------------------
# GAP solver (forward == solve), mirroring the PyTorch module.
# ----------------------------------------------------------------------------
class GAPPallas:
    def __init__(self, step, iter_num, accelerate, denoiser_params):
        self.step = step
        self.iter_num = iter_num
        self.accelerate = accelerate
        # Synthetic denoiser: residual 2-layer 1x1-conv MLP over channels.
        # TODO(synk): the original module takes an arbitrary external denoiser
        # (e.g. a CNN with spatial extent); such a denoiser would be its own
        # kernel and would also break the per-row-tile iteration fusion used
        # here (valid because this denoiser is per-pixel).
        self.denoiser_params = denoiser_params

    def solve(self, x0, y, Phi):
        assert self.iter_num >= 1
        C, H, Ws = Phi.shape
        step = self.step
        W = Ws - (C - 1) * step
        dtype = Phi.dtype
        w1, b1, w2, b2 = self.denoiser_params
        hid = w1.shape[0]

        # ---- one-time precomputes, constant across iterations (JAX glue) ----
        phi2 = jnp.sum(Phi * Phi, axis=0)
        inv_phi2 = 1.0 / jnp.where(phi2 == 0, jnp.ones_like(phi2), phi2)
        v = x0 if x0 is not None else Phi * y[None, :, :]      # At(Phi, y)

        # Pad the shifted-domain lane axis to a multiple of 128 so every
        # HBM-facing block is lane-dense; the pad lanes carry exact zeros
        # through all iterations and never feed an in-band output.
        P = _round_up(Ws, 128)
        phi_p = _pad_lanes(Phi, P)
        ipp_p = _pad_lanes(inv_phi2, P, value=1.0)
        y_p = _pad_lanes(y, P)
        v_p = _pad_lanes(v, P)

        itemsize = jnp.dtype(dtype).itemsize
        row_bytes = itemsize * (
            2 * (2 * C * P + 2 * P)        # double-buffered cube + row inputs
            + 2 * C * W                    # double-buffered x output block
            + C * P + P                    # v / y0 VMEM scratch state
            + C * W + hid * W + 4 * P)     # live per-iteration temporaries
        th = _row_tile(H, row_bytes)

        fn = _build_gap_solver(C, H, W, P, step, dtype, th,
                               self.iter_num, self.accelerate)
        # TODO(synk): tqdm progress bar and per-iteration print(psnr(x, gt))
        # are host-side logging with no kernel equivalent; omitted.
        return fn(v_p, phi_p, ipp_p, y_p, w1, b1, w2, b2)

    def forward(self, x0, y, Phi):
        return self.solve(x0, y, Phi)

    __call__ = forward


# ----------------------------------------------------------------------------
# Pure-JAX mirror of the PyTorch module (validation only).
# ----------------------------------------------------------------------------
def _reference_solve(x0, y, Phi, step, iter_num, accelerate, w1, b1, w2, b2):
    def A(Phi, x):
        return jnp.sum(Phi * x, axis=0)

    def At(Phi, z):
        return Phi * z[None, :, :]

    def shift_back(x):
        C = x.shape[0]
        W = x.shape[2] - (C - 1) * step
        return jnp.stack([x[c, :, c * step:c * step + W] for c in range(C)], 0)

    def shift(x):
        C, H, W = x.shape
        out = jnp.zeros((C, H, W + (C - 1) * step), x.dtype)
        for c in range(C):
            out = out.at[c, :, c * step:c * step + W].set(x[c])
        return out

    def denoiser(x):
        C, H, W = x.shape
        xf = x.reshape(C, -1)
        h = jnp.maximum(w1 @ xf + b1[:, None], 0.0)
        return (xf + w2 @ h + b2[:, None]).reshape(C, H, W)

    phi2 = jnp.sum(Phi ** 2, axis=0)
    phi2 = jnp.where(phi2 == 0, jnp.ones_like(phi2), phi2)
    x = x0 if x0 is not None else At(Phi, y)
    v = x
    y0 = y
    for _ in range(iter_num):
        av = A(Phi, v)
        x1 = v + At(Phi, y0 - av) / phi2
        if accelerate:
            y0 = y0 + (y - av)
        x = denoiser(shift_back(x1))
        v = shift(x)
    return x


if __name__ == "__main__":
    key = jax.random.PRNGKey(0)
    C, H, W, step = 4, 16, 16, 2          # small spectral cube: 4 bands, 16x16
    Ws = W + (C - 1) * step               # shifted width = 22
    hid = 8
    k1, k2, k3, k4, k5, k6 = jax.random.split(key, 6)

    # deterministic sensing mask and measurement
    Phi = (jax.random.uniform(k1, (C, H, Ws)) > 0.5).astype(jnp.float32)
    gt_cube = jax.random.uniform(k2, (C, H, Ws), dtype=jnp.float32)
    y = jnp.sum(Phi * gt_cube, axis=0)    # (H, Ws) snapshot measurement

    # deterministic synthetic denoiser parameters (two 1x1 convs)
    w1 = 0.1 * jax.random.normal(k3, (hid, C), dtype=jnp.float32)
    b1 = 0.05 * jax.random.normal(k4, (hid,), dtype=jnp.float32)
    w2 = 0.1 * jax.random.normal(k5, (C, hid), dtype=jnp.float32)
    b2 = 0.05 * jax.random.normal(k6, (C,), dtype=jnp.float32)
    params = (w1, b1, w2, b2)

    # accelerated GAP (short iteration count -> unrolled in-kernel loop)
    solver = GAPPallas(step=step, iter_num=3, accelerate=True,
                       denoiser_params=params)
    x_rec = solver(None, y, Phi)
    jax.block_until_ready(x_rec)
    assert x_rec.shape == (C, H, W) and x_rec.dtype == jnp.float32
    x_ref = _reference_solve(None, y, Phi, step, 3, True, *params)
    err = float(jnp.max(jnp.abs(x_rec - x_ref)))
    assert jnp.allclose(x_rec, x_ref, rtol=2e-3, atol=2e-4), err

    # plain (non-accelerated) GAP
    solver2 = GAPPallas(step=step, iter_num=2, accelerate=False,
                        denoiser_params=params)
    x_rec2 = solver2(None, y, Phi)
    jax.block_until_ready(x_rec2)
    x_ref2 = _reference_solve(None, y, Phi, step, 2, False, *params)
    err2 = float(jnp.max(jnp.abs(x_rec2 - x_ref2)))
    assert jnp.allclose(x_rec2, x_ref2, rtol=2e-3, atol=2e-4), err2

    # long iteration count -> exercises the in-kernel pl.loop path
    solver3 = GAPPallas(step=step, iter_num=12, accelerate=True,
                        denoiser_params=params)
    x_rec3 = solver3(None, y, Phi)
    jax.block_until_ready(x_rec3)
    x_ref3 = _reference_solve(None, y, Phi, step, 12, True, *params)
    err3 = float(jnp.max(jnp.abs(x_rec3 - x_ref3)))
    assert jnp.allclose(x_rec3, x_ref3, rtol=2e-3, atol=5e-4), err3

    print("KERNEL_OK")
</pallas_src>

<mosaic_0001>
module attributes {stable_mosaic.version = 11 : i64} {
  func.func @_gap_solve_kernel(%arg0: i32, %arg1: memref<4x8x128xf32, #tpu.memory_space<vmem>>, %arg2: memref<4x8x128xf32, #tpu.memory_space<vmem>>, %arg3: memref<8x128xf32, #tpu.memory_space<vmem>>, %arg4: memref<8x128xf32, #tpu.memory_space<vmem>>, %arg5: memref<8x4xf32, #tpu.memory_space<smem>>, %arg6: memref<8xf32, #tpu.memory_space<smem>>, %arg7: memref<4x8xf32, #tpu.memory_space<smem>>, %arg8: memref<4xf32, #tpu.memory_space<smem>>, %arg9: memref<4x8x16xf32, #tpu.memory_space<vmem>>, %arg10: memref<4x8x128xf32, #tpu.memory_space<vmem>>, %arg11: memref<8x128xf32, #tpu.memory_space<vmem>>) attributes {dimension_semantics = [#tpu.dimension_semantics<parallel>], iteration_bounds = array<i64: 2>, scalar_prefetch = 0 : i64, scratch_operands = 2 : i64, tpu.core_type = #tpu.core_type<tc>, window_params = [{transform_indices = @transform_0, window_bounds = array<i64: 4, 8, 128>}, {transform_indices = @transform_1, window_bounds = array<i64: 4, 8, 128>}, {transform_indices = @transform_2, window_bounds = array<i64: 8, 128>}, {transform_indices = @transform_3, window_bounds = array<i64: 8, 128>}, {transform_indices = @transform_4, window_bounds = array<i64: 8, 4>}, {transform_indices = @transform_5, window_bounds = array<i64: 8>}, {transform_indices = @transform_6, window_bounds = array<i64: 4, 8>}, {transform_indices = @transform_7, window_bounds = array<i64: 4>}, {transform_indices = @transform_8, window_bounds = array<i64: 4, 8, 16>}]} {
    %c0 = arith.constant 0 : index
    %c0_0 = arith.constant 0 : index
    %c0_1 = arith.constant 0 : index
    %0 = vector.load %arg1[%c0, %c0_0, %c0_1] : memref<4x8x128xf32, #tpu.memory_space<vmem>>, vector<4x8x128xf32>
    %c0_2 = arith.constant 0 : index
    %c0_3 = arith.constant 0 : index
    %c0_4 = arith.constant 0 : index
    %1 = vector.load %arg10[%c0_2, %c0_3, %c0_4] : memref<4x8x128xf32, #tpu.memory_space<vmem>>, vector<4x8x128xf32>
    tpu.vector_store %arg10[%c0_2, %c0_3, %c0_4], %0 {strides = array<i32>} : memref<4x8x128xf32, #tpu.memory_space<vmem>>, vector<4x8x128xf32>,
    %c0_5 = arith.constant 0 : index
    %c0_6 = arith.constant 0 : index
    %2 = vector.load %arg4[%c0_5, %c0_6] : memref<8x128xf32, #tpu.memory_space<vmem>>, vector<8x128xf32>
    %c0_7 = arith.constant 0 : index
    %c0_8 = arith.constant 0 : index
    %3 = vector.load %arg11[%c0_7, %c0_8] : memref<8x128xf32, #tpu.memory_space<vmem>>, vector<8x128xf32>
    tpu.vector_store %arg11[%c0_7, %c0_8], %2 {strides = array<i32>} : memref<8x128xf32, #tpu.memory_space<vmem>>, vector<8x128xf32>,
    %c0_9 = arith.constant 0 : index
    %c0_10 = arith.constant 0 : index
    %4 = vector.load %arg11[%c0_9, %c0_10] : memref<8x128xf32, #tpu.memory_space<vmem>>, vector<8x128xf32>
    %c0_11 = arith.constant 0 : index
    %c0_12 = arith.constant 0 : index
    %c0_13 = arith.constant 0 : index
    %5 = vector.load %arg2[%c0_11, %c0_12, %c0_13] : memref<4x8x128xf32, #tpu.memory_space<vmem>>, vector<1x8x128xf32>
    %6 = vector.shape_cast %5 : vector<1x8x128xf32> to vector<8x128xf32>
    %c0_14 = arith.constant 0 : index
    %c0_15 = arith.constant 0 : index
    %c0_16 = arith.constant 0 : index
    %7 = vector.load %arg10[%c0_14, %c0_15, %c0_16] : memref<4x8x128xf32, #tpu.memory_space<vmem>>, vector<1x8x128xf32>
    %8 = vector.shape_cast %7 : vector<1x8x128xf32> to vector<8x128xf32>
    %9 = arith.mulf %6, %8 : vector<8x128xf32>
    %c1 = arith.constant 1 : index
    %c0_17 = arith.constant 0 : index
    %c0_18 = arith.constant 0 : index
    %10 = vector.load %arg2[%c1, %c0_17, %c0_18] : memref<4x8x128xf32, #tpu.memory_space<vmem>>, vector<1x8x128xf32>
    %11 = vector.shape_cast %10 : vector<1x8x128xf32> to vector<8x128xf32>
    %c1_19 = arith.constant 1 : index
    %c0_20 = arith.constant 0 : index
    %c0_21 = arith.constant 0 : index
    %12 = vector.load %arg10[%c1_19, %c0_20, %c0_21] : memref<4x8x128xf32, #tpu.memory_space<vmem>>, vector<1x8x128xf32>
    %13 = vector.shape_cast %12 : vector<1x8x128xf32> to vector<8x128xf32>
    %14 = arith.mulf %11, %13 : vector<8x128xf32>
    %15 = arith.addf %9, %14 : vector<8x128xf32>
    %c2 = arith.constant 2 : index
    %c0_22 = arith.constant 0 : index
    %c0_23 = arith.constant 0 : index
    %16 = vector.load %arg2[%c2, %c0_22, %c0_23] : memref<4x8x128xf32, #tpu.memory_space<vmem>>, vector<1x8x128xf32>
    %17 = vector.shape_cast %16 : vector<1x8x128xf32> to vector<8x128xf32>
    %c2_24 = arith.constant 2 : index
    %c0_25 = arith.constant 0 : index
    %c0_26 = arith.constant 0 : index
    %18 = vector.load %arg10[%c2_24, %c0_25, %c0_26] : memref<4x8x128xf32, #tpu.memory_space<vmem>>, vector<1x8x128xf32>
    %19 = vector.shape_cast %18 : vector<1x8x128xf32> to vector<8x128xf32>
    %20 = arith.mulf %17, %19 : vector<8x128xf32>
    %21 = arith.addf %15, %20 : vector<8x128xf32>
    %c3 = arith.constant 3 : index
    %c0_27 = arith.constant 0 : index
    %c0_28 = arith.constant 0 : index
    %22 = vector.load %arg2[%c3, %c0_27, %c0_28] : memref<4x8x128xf32, #tpu.memory_space<vmem>>, vector<1x8x128xf32>
    %23 = vector.shape_cast %22 : vector<1x8x128xf32> to vector<8x128xf32>
    %c3_29 = arith.constant 3 : index
    %c0_30 = arith.constant 0 : index
    %c0_31 = arith.constant 0 : index
    %24 = vector.load %arg10[%c3_29, %c0_30, %c0_31] : memref<4x8x128xf32, #tpu.memory_space<vmem>>, vector<1x8x128xf32>
    %25 = vector.shape_cast %24 : vector<1x8x128xf32> to vector<8x128xf32>
    %26 = arith.mulf %23, %25 : vector<8x128xf32>
    %27 = arith.addf %21, %26 : vector<8x128xf32>
    %28 = arith.subf %4, %27 : vector<8x128xf32>
    %c0_32 = arith.constant 0 : index
    %c0_33 = arith.constant 0 : index
    %29 = vector.load %arg3[%c0_32, %c0_33] : memref<8x128xf32, #tpu.memory_space<vmem>>, vector<8x128xf32>
    %30 = arith.mulf %28, %29 : vector<8x128xf32>
    %c0_34 = arith.constant 0 : index
    %c0_35 = arith.constant 0 : index
    %31 = vector.load %arg4[%c0_34, %c0_35] : memref<8x128xf32, #tpu.memory_space<vmem>>, vector<8x128xf32>
    %32 = arith.subf %31, %27 : vector<8x128xf32>
    %33 = arith.addf %4, %32 : vector<8x128xf32>
    %c0_36 = arith.constant 0 : index
    %c0_37 = arith.constant 0 : index
    %34 = vector.load %arg11[%c0_36, %c0_37] : memref<8x128xf32, #tpu.memory_space<vmem>>, vector<8x128xf32>
    tpu.vector_store %arg11[%c0_36, %c0_37], %33 {strides = array<i32>} : memref<8x128xf32, #tpu.memory_space<vmem>>, vector<8x128xf32>,
    %c0_38 = arith.constant 0 : index
    %c0_39 = arith.constant 0 : index
    %c0_40 = arith.constant 0 : index
    %35 = vector.load %arg10[%c0_38, %c0_39, %c0_40] : memref<4x8x128xf32, #tpu.memory_space<vmem>>, vector<1x8x16xf32>
    %36 = vector.shape_cast %35 : vector<1x8x16xf32> to vector<8x16xf32>
    %c0_41 = arith.constant 0 : index
    %c0_42 = arith.constant 0 : index
    %c0_43 = arith.constant 0 : index
    %37 = vector.load %arg2[%c0_41, %c0_42, %c0_43] : memref<4x8x128xf32, #tpu.memory_space<vmem>>, vector<1x8x16xf32>
    %38 = vector.shape_cast %37 : vector<1x8x16xf32> to vector<8x16xf32>
    %39 = vector.extract_strided_slice %30 {offsets = [0, 0], sizes = [8, 16], strides = [1, 1]} : vector<8x128xf32> to vector<8x16xf32>
    %40 = arith.mulf %38, %39 : vector<8x16xf32>
    %41 = arith.addf %36, %40 : vector<8x16xf32>
    %c1_44 = arith.constant 1 : index
    %c0_45 = arith.constant 0 : index
    %c2_46 = arith.constant 2 : index
    %42 = vector.load %arg10[%c1_44, %c0_45, %c2_46] : memref<4x8x128xf32, #tpu.memory_space<vmem>>, vector<1x8x16xf32>
    %43 = vector.shape_cast %42 : vector<1x8x16xf32> to vector<8x16xf32>
    %c1_47 = arith.constant 1 : index
    %c0_48 = arith.constant 0 : index
    %c2_49 = arith.constant 2 : index
    %44 = vector.load %arg2[%c1_47, %c0_48, %c2_49] : memref<4x8x128xf32, #tpu.memory_space<vmem>>, vector<1x8x16xf32>
    %45 = vector.shape_cast %44 : vector<1x8x16xf32> to vector<8x16xf32>
    %46 = vector.extract_strided_slice %30 {offsets = [0, 2], sizes = [8, 16], strides = [1, 1]} : vector<8x128xf32> to vector<8x16xf32>
    %47 = arith.mulf %45, %46 : vector<8x16xf32>
    %48 = arith.addf %43, %47 : vector<8x16xf32>
    %c2_50 = arith.constant 2 : index
    %c0_51 = arith.constant 0 : index
    %c4 = arith.constant 4 : index
    %49 = vector.load %arg10[%c2_50, %c0_51, %c4] : memref<4x8x128xf32, #tpu.memory_space<vmem>>, vector<1x8x16xf32>
    %50 = vector.shape_cast %49 : vector<1x8x16xf32> to vector<8x16xf32>
    %c2_52 = arith.constant 2 : index
    %c0_53 = arith.constant 0 : index
    %c4_54 = arith.constant 4 : index
    %51 = vector.load %arg2[%c2_52, %c0_53, %c4_54] : memref<4x8x128xf32, #tpu.memory_space<vmem>>, vector<1x8x16xf32>
    %52 = vector.shape_cast %51 : vector<1x8x16xf32> to vector<8x16xf32>
    %53 = vector.extract_strided_slice %30 {offsets = [0, 4], sizes = [8, 16], strides = [1, 1]} : vector<8x128xf32> to vector<8x16xf32>
    %54 = arith.mulf %52, %53 : vector<8x16xf32>
    %55 = arith.addf %50, %54 : vector<8x16xf32>
    %c3_55 = arith.constant 3 : index
    %c0_56 = arith.constant 0 : index
    %c6 = arith.constant 6 : index
    %56 = vector.load %arg10[%c3_55, %c0_56, %c6] : memref<4x8x128xf32, #tpu.memory_space<vmem>>, vector<1x8x16xf32>
    %57 = vector.shape_cast %56 : vector<1x8x16xf32> to vector<8x16xf32>
    %c3_57 = arith.constant 3 : index
    %c0_58 = arith.constant 0 : index
    %c6_59 = arith.constant 6 : index
    %58 = vector.load %arg2[%c3_57, %c0_58, %c6_59] : memref<4x8x128xf32, #tpu.memory_space<vmem>>, vector<1x8x16xf32>
    %59 = vector.shape_cast %58 : vector<1x8x16xf32> to vector<8x16xf32>
    %60 = vector.extract_strided_slice %30 {offsets = [0, 6], sizes = [8, 16], strides = [1, 1]} : vector<8x128xf32> to vector<8x16xf32>
    %61 = arith.mulf %59, %60 : vector<8x16xf32>
    %62 = arith.addf %57, %61 : vector<8x16xf32>
    %c0_60 = arith.constant 0 : index
    %63 = memref.load %arg6[%c0_60] : memref<8xf32, #tpu.memory_space<smem>>
    %c0_61 = arith.constant 0 : index
    %c0_62 = arith.constant 0 : index
    %64 = memref.load %arg5[%c0_61, %c0_62] : memref<8x4xf32, #tpu.memory_space<smem>>
    %65 = vector.broadcast %64 : f32 to vector<8x16xf32>
    %66 = arith.mulf %65, %41 : vector<8x16xf32>
    %67 = vector.broadcast %63 : f32 to vector<8x16xf32>
    %68 = arith.addf %67, %66 : vector<8x16xf32>
    %c0_63 = arith.constant 0 : index
    %c1_64 = arith.constant 1 : index
    %69 = memref.load %arg5[%c0_63, %c1_64] : memref<8x4xf32, #tpu.memory_space<smem>>
    %70 = vector.broadcast %69 : f32 to vector<8x16xf32>
    %71 = arith.mulf %70, %48 : vector<8x16xf32>
    %72 = arith.addf %68, %71 : vector<8x16xf32>
    %c0_65 = arith.constant 0 : index
    %c2_66 = arith.constant 2 : index
    %73 = memref.load %arg5[%c0_65, %c2_66] : memref<8x4xf32, #tpu.memory_space<smem>>
    %74 = vector.broadcast %73 : f32 to vector<8x16xf32>
    %75 = arith.mulf %74, %55 : vector<8x16xf32>
    %76 = arith.addf %72, %75 : vector<8x16xf32>
    %c0_67 = arith.constant 0 : index
    %c3_68 = arith.constant 3 : index
    %77 = memref.load %arg5[%c0_67, %c3_68] : memref<8x4xf32, #tpu.memory_space<smem>>
    %78 = vector.broadcast %77 : f32 to vector<8x16xf32>
    %79 = arith.mulf %78, %62 : vector<8x16xf32>
    %80 = arith.addf %76, %79 : vector<8x16xf32>
    %cst = arith.constant 0.000000e+00 : f32
    %81 = vector.broadcast %cst : f32 to vector<8x16xf32>
    %82 = arith.maximumf %80, %81 : vector<8x16xf32>
    %c1_69 = arith.constant 1 : index
    %83 = memref.load %arg6[%c1_69] : memref<8xf32, #tpu.memory_space<smem>>
    %c1_70 = arith.constant 1 : index
    %c0_71 = arith.constant 0 : index
    %84 = memref.load %arg5[%c1_70, %c0_71] : memref<8x4xf32, #tpu.memory_space<smem>>
    %85 = vector.broadcast %84 : f32 to vector<8x16xf32>
    %86 = arith.mulf %85, %41 : vector<8x16xf32>
    %87 = vector.broadcast %83 : f32 to vector<8x16xf32>
    %88 = arith.addf %87, %86 : vector<8x16xf32>
    %c1_72 = arith.constant 1 : index
    %c1_73 = arith.constant 1 : index
    %89 = memref.load %arg5[%c1_72, %c1_73] : memref<8x4xf32, #tpu.memory_space<smem>>
    %90 = vector.broadcast %89 : f32 to vector<8x16xf32>
    %91 = arith.mulf %90, %48 : vector<8x16xf32>
    %92 = arith.addf %88, %91 : vector<8x16xf32>
    %c1_74 = arith.constant 1 : index
    %c2_75 = arith.constant 2 : index
    %93 = memref.load %arg5[%c1_74, %c2_75] : memref<8x4xf32, #tpu.memory_space<smem>>
    %94 = vector.broadcast %93 : f32 to vector<8x16xf32>
    %95 = arith.mulf %94, %55 : vector<8x16xf32>
    %96 = arith.addf %92, %95 : vector<8x16xf32>
    %c1_76 = arith.constant 1 : index
    %c3_77 = arith.constant 3 : index
    %97 = memref.load %arg5[%c1_76, %c3_77] : memref<8x4xf32, #tpu.memory_space<smem>>
    %98 = vector.broadcast %97 : f32 to vector<8x16xf32>
    %99 = arith.mulf %98, %62 : vector<8x16xf32>
    %100 = arith.addf %96, %99 : vector<8x16xf32>
    %cst_78 = arith.constant 0.000000e+00 : f32
    %101 = vector.broadcast %cst_78 : f32 to vector<8x16xf32>
    %102 = arith.maximumf %100, %101 : vector<8x16xf32>
    %c2_79 = arith.constant 2 : index
    %103 = memref.load %arg6[%c2_79] : memref<8xf32, #tpu.memory_space<smem>>
    %c2_80 = arith.constant 2 : index
    %c0_81 = arith.constant 0 : index
    %104 = memref.load %arg5[%c2_80, %c0_81] : memref<8x4xf32, #tpu.memory_space<smem>>
    %105 = vector.broadcast %104 : f32 to vector<8x16xf32>
    %106 = arith.mulf %105, %41 : vector<8x16xf32>
    %107 = vector.broadcast %103 : f32 to vector<8x16xf32>
    %108 = arith.addf %107, %106 : vector<8x16xf32>
    %c2_82 = arith.constant 2 : index
    %c1_83 = arith.constant 1 : index
    %109 = memref.load %arg5[%c2_82, %c1_83] : memref<8x4xf32, #tpu.memory_space<smem>>
    %110 = vector.broadcast %109 : f32 to vector<8x16xf32>
    %111 = arith.mulf %110, %48 : vector<8x16xf32>
    %112 = arith.addf %108, %111 : vector<8x16xf32>
    %c2_84 = arith.constant 2 : index
    %c2_85 = arith.constant 2 : index
    %113 = memref.load %arg5[%c2_84, %c2_85] : memref<8x4xf32, #tpu.memory_space<smem>>
    %114 = vector.broadcast %113 : f32 to vector<8x16xf32>
    %115 = arith.mulf %114, %55 : vector<8x16xf32>
    %116 = arith.addf %112, %115 : vector<8x16xf32>
    %c2_86 = arith.constant 2 : index
    %c3_87 = arith.constant 3 : index
    %117 = memref.load %arg5[%c2_86, %c3_87] : memref<8x4xf32, #tpu.memory_space<smem>>
    %118 = vector.broadcast %117 : f32 to vector<8x16xf32>
    %119 = arith.mulf %118, %62 : vector<8x16xf32>
    %120 = arith.addf %116, %119 : vector<8x16xf32>
    %cst_88 = arith.constant 0.000000e+00 : f32
    %121 = vector.broadcast %cst_88 : f32 to vector<8x16xf32>
    %122 = arith.maximumf %120, %121 : vector<8x16xf32>
    %c3_89 = arith.constant 3 : index
    %123 = memref.load %arg6[%c3_89] : memref<8xf32, #tpu.memory_space<smem>>
    %c3_90 = arith.constant 3 : index
    %c0_91 = arith.constant 0 : index
    %124 = memref.load %arg5[%c3_90, %c0_91] : memref<8x4xf32, #tpu.memory_space<smem>>
    %125 = vector.broadcast %124 : f32 to vector<8x16xf32>
    %126 = arith.mulf %125, %41 : vector<8x16xf32>
    %127 = vector.broadcast %123 : f32 to vector<8x16xf32>
    %128 = arith.addf %127, %126 : vector<8x16xf32>
    %c3_92 = arith.constant 3 : index
    %c1_93 = arith.constant 1 : index
    %129 = memref.load %arg5[%c3_92, %c1_93] : memref<8x4xf32, #tpu.memory_space<smem>>
    %130 = vector.broadcast %129 : f32 to vector<8x16xf32>
    %131 = arith.mulf %130, %48 : vector<8x16xf32>
    %132 = arith.addf %128, %131 : vector<8x16xf32>
    %c3_94 = arith.constant 3 : index
    %c2_95 = arith.constant 2 : index
    %133 = memref.load %arg5[%c3_94, %c2_95] : memref<8x4xf32, #tpu.memory_space<smem>>
    %134 = vector.broadcast %133 : f32 to vector<8x16xf32>
    %135 = arith.mulf %134, %55 : vector<8x16xf32>
    %136 = arith.addf %132, %135 : vector<8x16xf32>
    %c3_96 = arith.constant 3 : index
    %c3_97 = arith.constant 3 : index
    %137 = memref.load %arg5[%c3_96, %c3_97] : memref<8x4xf32, #tpu.memory_space<smem>>
    %138 = vector.broadcast %137 : f32 to vector<8x16xf32>
    %139 = arith.mulf %138, %62 : vector<8x16xf32>
    %140 = arith.addf %136, %139 : vector<8x16xf32>
    %cst_98 = arith.constant 0.000000e+00 : f32
    %141 = vector.broadcast %cst_98 : f32 to vector<8x16xf32>
    %142 = arith.maximumf %140, %141 : vector<8x16xf32>
    %c4_99 = arith.constant 4 : index
    %143 = memref.load %arg6[%c4_99] : memref<8xf32, #tpu.memory_space<smem>>
    %c4_100 = arith.constant 4 : index
    %c0_101 = arith.constant 0 : index
    %144 = memref.load %arg5[%c4_100, %c0_101] : memref<8x4xf32, #tpu.memory_space<smem>>
    %145 = vector.broadcast %144 : f32 to vector<8x16xf32>
    %146 = arith.mulf %145, %41 : vector<8x16xf32>
    %147 = vector.broadcast %143 : f32 to vector<8x16xf32>
    %148 = arith.addf %147, %146 : vector<8x16xf32>
    %c4_102 = arith.constant 4 : index
    %c1_103 = arith.constant 1 : index
    %149 = memref.load %arg5[%c4_102, %c1_103] : memref<8x4xf32, #tpu.memory_space<smem>>
    %150 = vector.broadcast %149 : f32 to vector<8x16xf32>
    %151 = arith.mulf %150, %48 : vector<8x16xf32>
    %152 = arith.addf %148, %151 : vector<8x16xf32>
    %c4_104 = arith.constant 4 : index
    %c2_105 = arith.constant 2 : index
    %153 = memref.load %arg5[%c4_104, %c2_105] : memref<8x4xf32, #tpu.memory_space<smem>>
    %154 = vector.broadcast %153 : f32 to vector<8x16xf32>
    %155 = arith.mulf %154, %55 : vector<8x16xf32>
    %156 = arith.addf %152, %155 : vector<8x16xf32>
    %c4_106 = arith.constant 4 : index
    %c3_107 = arith.constant 3 : index
    %157 = memref.load %arg5[%c4_106, %c3_107] : memref<8x4xf32, #tpu.memory_space<smem>>
    %158 = vector.broadcast %157 : f32 to vector<8x16xf32>
    %159 = arith.mulf %158, %62 : vector<8x16xf32>
    %160 = arith.addf %156, %159 : vector<8x16xf32>
    %cst_108 = arith.constant 0.000000e+00 : f32
    %161 = vector.broadcast %cst_108 : f32 to vector<8x16xf32>
    %162 = arith.maximumf %160, %161 : vector<8x16xf32>
    %c5 = arith.constant 5 : index
    %163 = memref.load %arg6[%c5] : memref<8xf32, #tpu.memory_space<smem>>
    %c5_109 = arith.constant 5 : index
    %c0_110 = arith.constant 0 : index
    %164 = memref.load %arg5[%c5_109, %c0_110] : memref<8x4xf32, #tpu.memory_space<smem>>
    %165 = vector.broadcast %164 : f32 to vector<8x16xf32>
    %166 = arith.mulf %165, %41 : vector<8x16xf32>
    %167 = vector.broadcast %163 : f32 to vector<8x16xf32>
    %168 = arith.addf %167, %166 : vector<8x16xf32>
    %c5_111 = arith.constant 5 : index
    %c1_112 = arith.constant 1 : index
    %169 = memref.load %arg5[%c5_111, %c1_112] : memref<8x4xf32, #tpu.memory_space<smem>>
    %170 = vector.broadcast %169 : f32 to vector<8x16xf32>
    %171 = arith.mulf %170, %48 : vector<8x16xf32>
    %172 = arith.addf %168, %171 : vector<8x16xf32>
    %c5_113 = arith.constant 5 : index
    %c2_114 = arith.constant 2 : index
    %173 = memref.load %arg5[%c5_113, %c2_114] : memref<8x4xf32, #tpu.memory_space<smem>>
    %174 = vector.broadcast %173 : f32 to vector<8x16xf32>
    %175 = arith.mulf %174, %55 : vector<8x16xf32>
    %176 = arith.addf %172, %175 : vector<8x16xf32>
    %c5_115 = arith.constant 5 : index
    %c3_116 = arith.constant 3 : index
    %177 = memref.load %arg5[%c5_115, %c3_116] : memref<8x4xf32, #tpu.memory_space<smem>>
    %178 = vector.broadcast %177 : f32 to vector<8x16xf32>
    %179 = arith.mulf %178, %62 : vector<8x16xf32>
    %180 = arith.addf %176, %179 : vector<8x16xf32>
    %cst_117 = arith.constant 0.000000e+00 : f32
    %181 = vector.broadcast %cst_117 : f32 to vector<8x16xf32>
    %182 = arith.maximumf %180, %181 : vector<8x16xf32>
    %c6_118 = arith.constant 6 : index
    %183 = memref.load %arg6[%c6_118] : memref<8xf32, #tpu.memory_space<smem>>
    %c6_119 = arith.constant 6 : index
    %c0_120 = arith.constant 0 : index
    %184 = memref.load %arg5[%c6_119, %c0_120] : memref<8x4xf32, #tpu.memory_space<smem>>
    %185 = vector.broadcast %184 : f32 to vector<8x16xf32>
    %186 = arith.mulf %185, %41 : vector<8x16xf32>
    %187 = vector.broadcast %183 : f32 to vector<8x16xf32>
    %188 = arith.addf %187, %186 : vector<8x16xf32>
    %c6_121 = arith.constant 6 : index
    %c1_122 = arith.constant 1 : index
    %189 = memref.load %arg5[%c6_121, %c1_122] : memref<8x4xf32, #tpu.memory_space<smem>>
    %190 = vector.broadcast %189 : f32 to vector<8x16xf32>
    %191 = arith.mulf %190, %48 : vector<8x16xf32>
    %192 = arith.addf %188, %191 : vector<8x16xf32>
    %c6_123 = arith.constant 6 : index
    %c2_124 = arith.constant 2 : index
    %193 = memref.load %arg5[%c6_123, %c2_124] : memref<8x4xf32, #tpu.memory_space<smem>>
    %194 = vector.broadcast %193 : f32 to vector<8x16xf32>
    %195 = arith.mulf %194, %55 : vector<8x16xf32>
    %196 = arith.addf %192, %195 : vector<8x16xf32>
    %c6_125 = arith.constant 6 : index
    %c3_126 = arith.constant 3 : index
    %197 = memref.load %arg5[%c6_125, %c3_126] : memref<8x4xf32, #tpu.memory_space<smem>>
    %198 = vector.broadcast %197 : f32 to vector<8x16xf32>
    %199 = arith.mulf %198, %62 : vector<8x16xf32>
    %200 = arith.addf %196, %199 : vector<8x16xf32>
    %cst_127 = arith.constant 0.000000e+00 : f32
    %201 = vector.broadcast %cst_127 : f32 to vector<8x16xf32>
    %202 = arith.maximumf %200, %201 : vector<8x16xf32>
    %c7 = arith.constant 7 : index
    %203 = memref.load %arg6[%c7] : memref<8xf32, #tpu.memory_space<smem>>
    %c7_128 = arith.constant 7 : index
    %c0_129 = arith.constant 0 : index
    %204 = memref.load %arg5[%c7_128, %c0_129] : memref<8x4xf32, #tpu.memory_space<smem>>
    %205 = vector.broadcast %204 : f32 to vector<8x16xf32>
    %206 = arith.mulf %205, %41 : vector<8x16xf32>
    %207 = vector.broadcast %203 : f32 to vector<8x16xf32>
    %208 = arith.addf %207, %206 : vector<8x16xf32>
    %c7_130 = arith.constant 7 : index
    %c1_131 = arith.constant 1 : index
    %209 = memref.load %arg5[%c7_130, %c1_131] : memref<8x4xf32, #tpu.memory_space<smem>>
    %210 = vector.broadcast %209 : f32 to vector<8x16xf32>
    %211 = arith.mulf %210, %48 : vector<8x16xf32>
    %212 = arith.addf %208, %211 : vector<8x16xf32>
    %c7_132 = arith.constant 7 : index
    %c2_133 = arith.constant 2 : index
    %213 = memref.load %arg5[%c7_132, %c2_133] : memref<8x4xf32, #tpu.memory_space<smem>>
    %214 = vector.broadcast %213 : f32 to vector<8x16xf32>
    %215 = arith.mulf %214, %55 : vector<8x16xf32>
    %216 = arith.addf %212, %215 : vector<8x16xf32>
    %c7_134 = arith.constant 7 : index
    %c3_135 = arith.constant 3 : index
    %217 = memref.load %arg5[%c7_134, %c3_135] : memref<8x4xf32, #tpu.memory_space<smem>>
    %218 = vector.broadcast %217 : f32 to vector<8x16xf32>
    %219 = arith.mulf %218, %62 : vector<8x16xf32>
    %220 = arith.addf %216, %219 : vector<8x16xf32>
    %cst_136 = arith.constant 0.000000e+00 : f32
    %221 = vector.broadcast %cst_136 : f32 to vector<8x16xf32>
    %222 = arith.maximumf %220, %221 : vector<8x16xf32>
    %cst_137 = arith.constant 0.000000e+00 : f32
    %223 = vector.broadcast %cst_137 : f32 to vector<4x8x128xf32>
    %c0_138 = arith.constant 0 : index
    %c0_139 = arith.constant 0 : index
    %c0_140 = arith.constant 0 : index
    %224 = vector.load %arg10[%c0_138, %c0_139, %c0_140] : memref<4x8x128xf32, #tpu.memory_space<vmem>>, vector<4x8x128xf32>
    tpu.vector_store %arg10[%c0_138, %c0_139, %c0_140], %223 {strides = array<i32>} : memref<4x8x128xf32, #tpu.memory_space<vmem>>, vector<4x8x128xf32>,
    %c0_141 = arith.constant 0 : index
    %225 = memref.load %arg8[%c0_141] : memref<4xf32, #tpu.memory_space<smem>>
    %226 = vector.broadcast %225 : f32 to vector<8x16xf32>
    %227 = arith.addf %41, %226 : vector<8x16xf32>
    %c0_142 = arith.constant 0 : index
    %c0_143 = arith.constant 0 : index
    %228 = memref.load %arg7[%c0_142, %c0_143] : memref<4x8xf32, #tpu.memory_space<smem>>
    %229 = vector.broadcast %228 : f32 to vector<8x16xf32>
    %230 = arith.mulf %229, %82 : vector<8x16xf32>
    %231 = arith.addf %227, %230 : vector<8x16xf32>
    %c0_144 = arith.constant 0 : index
    %c1_145 = arith.constant 1 : index
    %232 = memref.load %arg7[%c0_144, %c1_145] : memref<4x8xf32, #tpu.memory_space<smem>>
    %233 = vector.broadcast %232 : f32 to vector<8x16xf32>
    %234 = arith.mulf %233, %102 : vector<8x16xf32>
    %235 = arith.addf %231, %234 : vector<8x16xf32>
    %c0_146 = arith.constant 0 : index
    %c2_147 = arith.constant 2 : index
    %236 = memref.load %arg7[%c0_146, %c2_147] : memref<4x8xf32, #tpu.memory_space<smem>>
    %237 = vector.broadcast %236 : f32 to vector<8x16xf32>
    %238 = arith.mulf %237, %122 : vector<8x16xf32>
    %239 = arith.addf %235, %238 : vector<8x16xf32>
    %c0_148 = arith.constant 0 : index
    %c3_149 = arith.constant 3 : index
    %240 = memref.load %arg7[%c0_148, %c3_149] : memref<4x8xf32, #tpu.memory_space<smem>>
    %241 = vector.broadcast %240 : f32 to vector<8x16xf32>
    %242 = arith.mulf %241, %142 : vector<8x16xf32>
    %243 = arith.addf %239, %242 : vector<8x16xf32>
    %c0_150 = arith.constant 0 : index
    %c4_151 = arith.constant 4 : index
    %244 = memref.load %arg7[%c0_150, %c4_151] : memref<4x8xf32, #tpu.memory_space<smem>>
    %245 = vector.broadcast %244 : f32 to vector<8x16xf32>
    %246 = arith.mulf %245, %162 : vector<8x16xf32>
    %247 = arith.addf %243, %246 : vector<8x16xf32>
    %c0_152 = arith.constant 0 : index
    %c5_153 = arith.constant 5 : index
    %248 = memref.load %arg7[%c0_152, %c5_153] : memref<4x8xf32, #tpu.memory_space<smem>>
    %249 = vector.broadcast %248 : f32 to vector<8x16xf32>
    %250 = arith.mulf %249, %182 : vector<8x16xf32>
    %251 = arith.addf %247, %250 : vector<8x16xf32>
    %c0_154 = arith.constant 0 : index
    %c6_155 = arith.constant 6 : index
    %252 = memref.load %arg7[%c0_154, %c6_155] : memref<4x8xf32, #tpu.memory_space<smem>>
    %253 = vector.broadcast %252 : f32 to vector<8x16xf32>
    %254 = arith.mulf %253, %202 : vector<8x16xf32>
    %255 = arith.addf %251, %254 : vector<8x16xf32>
    %c0_156 = arith.constant 0 : index
    %c7_157 = arith.constant 7 : index
    %256 = memref.load %arg7[%c0_156, %c7_157] : memref<4x8xf32, #tpu.memory_space<smem>>
    %257 = vector.broadcast %256 : f32 to vector<8x16xf32>
    %258 = arith.mulf %257, %222 : vector<8x16xf32>
    %259 = arith.addf %255, %258 : vector<8x16xf32>
    %c0_158 = arith.constant 0 : index
    %c0_159 = arith.constant 0 : index
    %c0_160 = arith.constant 0 : index
    %260 = vector.load %arg10[%c0_158, %c0_159, %c0_160] : memref<4x8x128xf32, #tpu.memory_space<vmem>>, vector<1x8x16xf32>
    %261 = vector.shape_cast %260 : vector<1x8x16xf32> to vector<8x16xf32>
    %262 = vector.shape_cast %259 : vector<8x16xf32> to vector<1x8x16xf32>
    tpu.vector_store %arg10[%c0_158, %c0_159, %c0_160], %262 {strides = array<i32>} : memref<4x8x128xf32, #tpu.memory_space<vmem>>, vector<1x8x16xf32>,
    %c1_161 = arith.constant 1 : index
    %263 = memref.load %arg8[%c1_161] : memref<4xf32, #tpu.memory_space<smem>>
    %264 = vector.broadcast %263 : f32 to vector<8x16xf32>
    %265 = arith.addf %48, %264 : vector<8x16xf32>
    %c1_162 = arith.constant 1 : index
    %c0_163 = arith.constant 0 : index
    %266 = memref.load %arg7[%c1_162, %c0_163] : memref<4x8xf32, #tpu.memory_space<smem>>
    %267 = vector.broadcast %266 : f32 to vector<8x16xf32>
    %268 = arith.mulf %267, %82 : vector<8x16xf32>
    %269 = arith.addf %265, %268 : vector<8x16xf32>
    %c1_164 = arith.constant 1 : index
    %c1_165 = arith.constant 1 : index
    %270 = memref.load %arg7[%c1_164, %c1_165] : memref<4x8xf32, #tpu.memory_space<smem>>
    %271 = vector.broadcast %270 : f32 to vector<8x16xf32>
    %272 = arith.mulf %271, %102 : vector<8x16xf32>
    %273 = arith.addf %269, %272 : vector<8x16xf32>
    %c1_166 = arith.constant 1 : index
    %c2_167 = arith.constant 2 : index
    %274 = memref.load %arg7[%c1_166, %c2_167] : memref<4x8xf32, #tpu.memory_space<smem>>
    %275 = vector.broadcast %274 : f32 to vector<8x16xf32>
    %276 = arith.mulf %275, %122 : vector<8x16xf32>
    %277 = arith.addf %273, %276 : vector<8x16xf32>
    %c1_168 = arith.constant 1 : index
    %c3_169 = arith.constant 3 : index
    %278 = memref.load %arg7[%c1_168, %c3_169] : memref<4x8xf32, #tpu.memory_space<smem>>
    %279 = vector.broadcast %278 : f32 to vector<8x16xf32>
    %280 = arith.mulf %279, %142 : vector<8x16xf32>
    %281 = arith.addf %277, %280 : vector<8x16xf32>
    %c1_170 = arith.constant 1 : index
    %c4_171 = arith.constant 4 : index
    %282 = memref.load %arg7[%c1_170, %c4_171] : memref<4x8xf32, #tpu.memory_space<smem>>
    %283 = vector.broadcast %282 : f32 to vector<8x16xf32>
    %284 = arith.mulf %283, %162 : vector<8x16xf32>
    %285 = arith.addf %281, %284 : vector<8x16xf32>
    %c1_172 = arith.constant 1 : index
    %c5_173 = arith.constant 5 : index
    %286 = memref.load %arg7[%c1_172, %c5_173] : memref<4x8xf32, #tpu.memory_space<smem>>
    %287 = vector.broadcast %286 : f32 to vector<8x16xf32>
    %288 = arith.mulf %287, %182 : vector<8x16xf32>
    %289 = arith.addf %285, %288 : vector<8x16xf32>
    %c1_174 = arith.constant 1 : index
    %c6_175 = arith.constant 6 : index
    %290 = memref.load %arg7[%c1_174, %c6_175] : memref<4x8xf32, #tpu.memory_space<smem>>
    %291 = vector.broadcast %290 : f32 to vector<8x16xf32>
    %292 = arith.mulf %291, %202 : vector<8x16xf32>
    %293 = arith.addf %289, %292 : vector<8x16xf32>
    %c1_176 = arith.constant 1 : index
    %c7_177 = arith.constant 7 : index
    %294 = memref.load %arg7[%c1_176, %c7_177] : memref<4x8xf32, #tpu.memory_space<smem>>
    %295 = vector.broadcast %294 : f32 to vector<8x16xf32>
    %296 = arith.mulf %295, %222 : vector<8x16xf32>
    %297 = arith.addf %293, %296 : vector<8x16xf32>
    %c1_178 = arith.constant 1 : index
    %c0_179 = arith.constant 0 : index
    %c2_180 = arith.constant 2 : index
    %298 = vector.load %arg10[%c1_178, %c0_179, %c2_180] : memref<4x8x128xf32, #tpu.memory_space<vmem>>, vector<1x8x16xf32>
    %299 = vector.shape_cast %298 : vector<1x8x16xf32> to vector<8x16xf32>
    %300 = vector.shape_cast %297 : vector<8x16xf32> to vector<1x8x16xf32>
    tpu.vector_store %arg10[%c1_178, %c0_179, %c2_180], %300 {strides = array<i32>} : memref<4x8x128xf32, #tpu.memory_space<vmem>>, vector<1x8x16xf32>,
    %c2_181 = arith.constant 2 : index
    %301 = memref.load %arg8[%c2_181] : memref<4xf32, #tpu.memory_space<smem>>
    %302 = vector.broadcast %301 : f32 to vector<8x16xf32>
    %303 = arith.addf %55, %302 : vector<8x16xf32>
    %c2_182 = arith.constant 2 : index
    %c0_183 = arith.constant 0 : index
    %304 = memref.load %arg7[%c2_182, %c0_183] : memref<4x8xf32, #tpu.memory_space<smem>>
    %305 = vector.broadcast %304 : f32 to vector<8x16xf32>
    %306 = arith.mulf %305, %82 : vector<8x16xf32>
    %307 = arith.addf %303, %306 : vector<8x16xf32>
    %c2_184 = arith.constant 2 : index
    %c1_185 = arith.constant 1 : index
    %308 = memref.load %arg7[%c2_184, %c1_185] : memref<4x8xf32, #tpu.memory_space<smem>>
    %309 = vector.broadcast %308 : f32 to vector<8x16xf32>
    %310 = arith.mulf %309, %102 : vector<8x16xf32>
    %311 = arith.addf %307, %310 : vector<8x16xf32>
    %c2_186 = arith.constant 2 : index
    %c2_187 = arith.constant 2 : index
    %312 = memref.load %arg7[%c2_186, %c2_187] : memref<4x8xf32, #tpu.memory_space<smem>>
    %313 = vector.broadcast %312 : f32 to vector<8x16xf32>
    %314 = arith.mulf %313, %122 : vector<8x16xf32>
    %315 = arith.addf %311, %314 : vector<8x16xf32>
    %c2_188 = arith.constant 2 : index
    %c3_189 = arith.constant 3 : index
    %316 = memref.load %arg7[%c2_188, %c3_189] : memref<4x8xf32, #tpu.memory_space<smem>>
    %317 = vector.broadcast %316 : f32 to vector<8x16xf32>
    %318 = arith.mulf %317, %142 : vector<8x16xf32>
    %319 = arith.addf %315, %318 : vector<8x16xf32>
    %c2_190 = arith.constant 2 : index
    %c4_191 = arith.constant 4 : index
    %320 = memref.load %arg7[%c2_190, %c4_191] : memref<4x8xf32, #tpu.memory_space<smem>>
    %321 = vector.broadcast %320 : f32 to vector<8x16xf32>
    %322 = arith.mulf %321, %162 : vector<8x16xf32>
    %323 = arith.addf %319, %322 : vector<8x16xf32>
    %c2_192 = arith.constant 2 : index
    %c5_193 = arith.constant 5 : index
    %324 = memref.load %arg7[%c2_192, %c5_193] : memref<4x8xf32, #tpu.memory_space<smem>>
    %325 = vector.broadcast %324 : f32 to vector<8x16xf32>
    %326 = arith.mulf %325, %182 : vector<8x16xf32>
    %327 = arith.addf %323, %326 : vector<8x16xf32>
    %c2_194 = arith.constant 2 : index
    %c6_195 = arith.constant 6 : index
    %328 = memref.load %arg7[%c2_194, %c6_195] : memref<4x8xf32, #tpu.memory_space<smem>>
    %329 = vector.broadcast %328 : f32 to vector<8x16xf32>
    %330 = arith.mulf %329, %202 : vector<8x16xf32>
    %331 = arith.addf %327, %330 : vector<8x16xf32>
    %c2_196 = arith.constant 2 : index
    %c7_197 = arith.constant 7 : index
    %332 = memref.load %arg7[%c2_196, %c7_197] : memref<4x8xf32, #tpu.memory_space<smem>>
    %333 = vector.broadcast %332 : f32 to vector<8x16xf32>
    %334 = arith.mulf %333, %222 : vector<8x16xf32>
    %335 = arith.addf %331, %334 : vector<8x16xf32>
    %c2_198 = arith.constant 2 : index
    %c0_199 = arith.constant 0 : index
    %c4_200 = arith.constant 4 : index
    %336 = vector.load %arg10[%c2_198, %c0_199, %c4_200] : memref<4x8x128xf32, #tpu.memory_space<vmem>>, vector<1x8x16xf32>
    %337 = vector.shape_cast %336 : vector<1x8x16xf32> to vector<8x16xf32>
    %338 = vector.shape_cast %335 : vector<8x16xf32> to vector<1x8x16xf32>
    tpu.vector_store %arg10[%c2_198, %c0_199, %c4_200], %338 {strides = array<i32>} : memref<4x8x128xf32, #tpu.memory_space<vmem>>, vector<1x8x16xf32>,
    %c3_201 = arith.constant 3 : index
    %339 = memref.load %arg8[%c3_201] : memref<4xf32, #tpu.memory_space<smem>>
    %340 = vector.broadcast %339 : f32 to vector<8x16xf32>
    %341 = arith.addf %62, %340 : vector<8x16xf32>
    %c3_202 = arith.constant 3 : index
    %c0_203 = arith.constant 0 : index
    %342 = memref.load %arg7[%c3_202, %c0_203] : memref<4x8xf32, #tpu.memory_space<smem>>
    %343 = vector.broadcast %342 : f32 to vector<8x16xf32>
    %344 = arith.mulf %343, %82 : vector<8x16xf32>
    %345 = arith.addf %341, %344 : vector<8x16xf32>
    %c3_204 = arith.constant 3 : index
    %c1_205 = arith.constant 1 : index
    %346 = memref.load %arg7[%c3_204, %c1_205] : memref<4x8xf32, #tpu.memory_space<smem>>
    %347 = vector.broadcast %346 : f32 to vector<8x16xf32>
    %348 = arith.mulf %347, %102 : vector<8x16xf32>
    %349 = arith.addf %345, %348 : vector<8x16xf32>
    %c3_206 = arith.constant 3 : index
    %c2_207 = arith.constant 2 : index
    %350 = memref.load %arg7[%c3_206, %c2_207] : memref<4x8xf32, #tpu.memory_space<smem>>
    %351 = vector.broadcast %350 : f32 to vector<8x16xf32>
    %352 = arith.mulf %351, %122 : vector<8x16xf32>
    %353 = arith.addf %349, %352 : vector<8x16xf32>
    %c3_208 = arith.constant 3 : index
    %c3_209 = arith.constant 3 : index
    %354 = memref.load %arg7[%c3_208, %c3_209] : memref<4x8xf32, #tpu.memory_space<smem>>
    %355 = vector.broadcast %354 : f32 to vector<8x16xf32>
    %356 = arith.mulf %355, %142 : vector<8x16xf32>
    %357 = arith.addf %353, %356 : vector<8x16xf32>
    %c3_210 = arith.constant 3 : index
    %c4_211 = arith.constant 4 : index
    %358 = memref.load %arg7[%c3_210, %c4_211] : memref<4x8xf32, #tpu.memory_space<smem>>
    %359 = vector.broadcast %358 : f32 to vector<8x16xf32>
    %360 = arith.mulf %359, %162 : vector<8x16xf32>
    %361 = arith.addf %357, %360 : vector<8x16xf32>
    %c3_212 = arith.constant 3 : index
    %c5_213 = arith.constant 5 : index
    %362 = memref.load %arg7[%c3_212, %c5_213] : memref<4x8xf32, #tpu.memory_space<smem>>
    %363 = vector.broadcast %362 : f32 to vector<8x16xf32>
    %364 = arith.mulf %363, %182 : vector<8x16xf32>
    %365 = arith.addf %361, %364 : vector<8x16xf32>
    %c3_214 = arith.constant 3 : index
    %c6_215 = arith.constant 6 : index
    %366 = memref.load %arg7[%c3_214, %c6_215] : memref<4x8xf32, #tpu.memory_space<smem>>
    %367 = vector.broadcast %366 : f32 to vector<8x16xf32>
    %368 = arith.mulf %367, %202 : vector<8x16xf32>
    %369 = arith.addf %365, %368 : vector<8x16xf32>
    %c3_216 = arith.constant 3 : index
    %c7_217 = arith.constant 7 : index
    %370 = memref.load %arg7[%c3_216, %c7_217] : memref<4x8xf32, #tpu.memory_space<smem>>
    %371 = vector.broadcast %370 : f32 to vector<8x16xf32>
    %372 = arith.mulf %371, %222 : vector<8x16xf32>
    %373 = arith.addf %369, %372 : vector<8x16xf32>
    %c3_218 = arith.constant 3 : index
    %c0_219 = arith.constant 0 : index
    %c6_220 = arith.constant 6 : index
    %374 = vector.load %arg10[%c3_218, %c0_219, %c6_220] : memref<4x8x128xf32, #tpu.memory_space<vmem>>, vector<1x8x16xf32>
    %375 = vector.shape_cast %374 : vector<1x8x16xf32> to vector<8x16xf32>
    %376 = vector.shape_cast %373 : vector<8x16xf32> to vector<1x8x16xf32>
    tpu.vector_store %arg10[%c3_218, %c0_219, %c6_220], %376 {strides = array<i32>} : memref<4x8x128xf32, #tpu.memory_space<vmem>>, vector<1x8x16xf32>,
    %c0_221 = arith.constant 0 : index
    %c0_222 = arith.constant 0 : index
    %377 = vector.load %arg11[%c0_221, %c0_222] : memref<8x128xf32, #tpu.memory_space<vmem>>, vector<8x128xf32>
    %c0_223 = arith.constant 0 : index
    %c0_224 = arith.constant 0 : index
    %c0_225 = arith.constant 0 : index
    %378 = vector.load %arg2[%c0_223, %c0_224, %c0_225] : memref<4x8x128xf32, #tpu.memory_space<vmem>>, vector<1x8x128xf32>
    %379 = vector.shape_cast %378 : vector<1x8x128xf32> to vector<8x128xf32>
    %c0_226 = arith.constant 0 : index
    %c0_227 = arith.constant 0 : index
    %c0_228 = arith.constant 0 : index
    %380 = vector.load %arg10[%c0_226, %c0_227, %c0_228] : memref<4x8x128xf32, #tpu.memory_space<vmem>>, vector<1x8x128xf32>
    %381 = vector.shape_cast %380 : vector<1x8x128xf32> to vector<8x128xf32>
    %382 = arith.mulf %379, %381 : vector<8x128xf32>
    %c1_229 = arith.constant 1 : index
    %c0_230 = arith.constant 0 : index
    %c0_231 = arith.constant 0 : index
    %383 = vector.load %arg2[%c1_229, %c0_230, %c0_231] : memref<4x8x128xf32, #tpu.memory_space<vmem>>, vector<1x8x128xf32>
    %384 = vector.shape_cast %383 : vector<1x8x128xf32> to vector<8x128xf32>
    %c1_232 = arith.constant 1 : index
    %c0_233 = arith.constant 0 : index
    %c0_234 = arith.constant 0 : index
    %385 = vector.load %arg10[%c1_232, %c0_233, %c0_234] : memref<4x8x128xf32, #tpu.memory_space<vmem>>, vector<1x8x128xf32>
    %386 = vector.shape_cast %385 : vector<1x8x128xf32> to vector<8x128xf32>
    %387 = arith.mulf %384, %386 : vector<8x128xf32>
    %388 = arith.addf %382, %387 : vector<8x128xf32>
    %c2_235 = arith.constant 2 : index
    %c0_236 = arith.constant 0 : index
    %c0_237 = arith.constant 0 : index
    %389 = vector.load %arg2[%c2_235, %c0_236, %c0_237] : memref<4x8x128xf32, #tpu.memory_space<vmem>>, vector<1x8x128xf32>
    %390 = vector.shape_cast %389 : vector<1x8x128xf32> to vector<8x128xf32>
    %c2_238 = arith.constant 2 : index
    %c0_239 = arith.constant 0 : index
    %c0_240 = arith.constant 0 : index
    %391 = vector.load %arg10[%c2_238, %c0_239, %c0_240] : memref<4x8x128xf32, #tpu.memory_space<vmem>>, vector<1x8x128xf32>
    %392 = vector.shape_cast %391 : vector<1x8x128xf32> to vector<8x128xf32>
    %393 = arith.mulf %390, %392 : vector<8x128xf32>
    %394 = arith.addf %388, %393 : vector<8x128xf32>
    %c3_241 = arith.constant 3 : index
    %c0_242 = arith.constant 0 : index
    %c0_243 = arith.constant 0 : index
    %395 = vector.load %arg2[%c3_241, %c0_242, %c0_243] : memref<4x8x128xf32, #tpu.memory_space<vmem>>, vector<1x8x128xf32>
    %396 = vector.shape_cast %395 : vector<1x8x128xf32> to vector<8x128xf32>
    %c3_244 = arith.constant 3 : index
    %c0_245 = arith.constant 0 : index
    %c0_246 = arith.constant 0 : index
    %397 = vector.load %arg10[%c3_244, %c0_245, %c0_246] : memref<4x8x128xf32, #tpu.memory_space<vmem>>, vector<1x8x128xf32>
    %398 = vector.shape_cast %397 : vector<1x8x128xf32> to vector<8x128xf32>
    %399 = arith.mulf %396, %398 : vector<8x128xf32>
    %400 = arith.addf %394, %399 : vector<8x128xf32>
    %401 = arith.subf %377, %400 : vector<8x128xf32>
    %c0_247 = arith.constant 0 : index
    %c0_248 = arith.constant 0 : index
    %402 = vector.load %arg3[%c0_247, %c0_248] : memref<8x128xf32, #tpu.memory_space<vmem>>, vector<8x128xf32>
    %403 = arith.mulf %401, %402 : vector<8x128xf32>
    %c0_249 = arith.constant 0 : index
    %c0_250 = arith.constant 0 : index
    %404 = vector.load %arg4[%c0_249, %c0_250] : memref<8x128xf32, #tpu.memory_space<vmem>>, vector<8x128xf32>
    %405 = arith.subf %404, %400 : vector<8x128xf32>
    %406 = arith.addf %377, %405 : vector<8x128xf32>
    %c0_251 = arith.constant 0 : index
    %c0_252 = arith.constant 0 : index
    %407 = vector.load %arg11[%c0_251, %c0_252] : memref<8x128xf32, #tpu.memory_space<vmem>>, vector<8x128xf32>
    tpu.vector_store %arg11[%c0_251, %c0_252], %406 {strides = array<i32>} : memref<8x128xf32, #tpu.memory_space<vmem>>, vector<8x128xf32>,
    %c0_253 = arith.constant 0 : index
    %c0_254 = arith.constant 0 : index
    %c0_255 = arith.constant 0 : index
    %408 = vector.load %arg10[%c0_253, %c0_254, %c0_255] : memref<4x8x128xf32, #tpu.memory_space<vmem>>, vector<1x8x16xf32>
    %409 = vector.shape_cast %408 : vector<1x8x16xf32> to vector<8x16xf32>
    %c0_256 = arith.constant 0 : index
    %c0_257 = arith.constant 0 : index
    %c0_258 = arith.constant 0 : index
    %410 = vector.load %arg2[%c0_256, %c0_257, %c0_258] : memref<4x8x128xf32, #tpu.memory_space<vmem>>, vector<1x8x16xf32>
    %411 = vector.shape_cast %410 : vector<1x8x16xf32> to vector<8x16xf32>
    %412 = vector.extract_strided_slice %403 {offsets = [0, 0], sizes = [8, 16], strides = [1, 1]} : vector<8x128xf32> to vector<8x16xf32>
    %413 = arith.mulf %411, %412 : vector<8x16xf32>
    %414 = arith.addf %409, %413 : vector<8x16xf32>
    %c1_259 = arith.constant 1 : index
    %c0_260 = arith.constant 0 : index
    %c2_261 = arith.constant 2 : index
    %415 = vector.load %arg10[%c1_259, %c0_260, %c2_261] : memref<4x8x128xf32, #tpu.memory_space<vmem>>, vector<1x8x16xf32>
    %416 = vector.shape_cast %415 : vector<1x8x16xf32> to vector<8x16xf32>
    %c1_262 = arith.constant 1 : index
    %c0_263 = arith.constant 0 : index
    %c2_264 = arith.constant 2 : index
    %417 = vector.load %arg2[%c1_262, %c0_263, %c2_264] : memref<4x8x128xf32, #tpu.memory_space<vmem>>, vector<1x8x16xf32>
    %418 = vector.shape_cast %417 : vector<1x8x16xf32> to vector<8x16xf32>
    %419 = vector.extract_strided_slice %403 {offsets = [0, 2], sizes = [8, 16], strides = [1, 1]} : vector<8x128xf32> to vector<8x16xf32>
    %420 = arith.mulf %418, %419 : vector<8x16xf32>
    %421 = arith.addf %416, %420 : vector<8x16xf32>
    %c2_265 = arith.constant 2 : index
    %c0_266 = arith.constant 0 : index
    %c4_267 = arith.constant 4 : index
    %422 = vector.load %arg10[%c2_265, %c0_266, %c4_267] : memref<4x8x128xf32, #tpu.memory_space<vmem>>, vector<1x8x16xf32>
    %423 = vector.shape_cast %422 : vector<1x8x16xf32> to vector<8x16xf32>
    %c2_268 = arith.constant 2 : index
    %c0_269 = arith.constant 0 : index
    %c4_270 = arith.constant 4 : index
    %424 = vector.load %arg2[%c2_268, %c0_269, %c4_270] : memref<4x8x128xf32, #tpu.memory_space<vmem>>, vector<1x8x16xf32>
    %425 = vector.shape_cast %424 : vector<1x8x16xf32> to vector<8x16xf32>
    %426 = vector.extract_strided_slice %403 {offsets = [0, 4], sizes = [8, 16], strides = [1, 1]} : vector<8x128xf32> to vector<8x16xf32>
    %427 = arith.mulf %425, %426 : vector<8x16xf32>
    %428 = arith.addf %423, %427 : vector<8x16xf32>
    %c3_271 = arith.constant 3 : index
    %c0_272 = arith.constant 0 : index
    %c6_273 = arith.constant 6 : index
    %429 = vector.load %arg10[%c3_271, %c0_272, %c6_273] : memref<4x8x128xf32, #tpu.memory_space<vmem>>, vector<1x8x16xf32>
    %430 = vector.shape_cast %429 : vector<1x8x16xf32> to vector<8x16xf32>
    %c3_274 = arith.constant 3 : index
    %c0_275 = arith.constant 0 : index
    %c6_276 = arith.constant 6 : index
    %431 = vector.load %arg2[%c3_274, %c0_275, %c6_276] : memref<4x8x128xf32, #tpu.memory_space<vmem>>, vector<1x8x16xf32>
    %432 = vector.shape_cast %431 : vector<1x8x16xf32> to vector<8x16xf32>
    %433 = vector.extract_strided_slice %403 {offsets = [0, 6], sizes = [8, 16], strides = [1, 1]} : vector<8x128xf32> to vector<8x16xf32>
    %434 = arith.mulf %432, %433 : vector<8x16xf32>
    %435 = arith.addf %430, %434 : vector<8x16xf32>
    %c0_277 = arith.constant 0 : index
    %436 = memref.load %arg6[%c0_277] : memref<8xf32, #tpu.memory_space<smem>>
    %c0_278 = arith.constant 0 : index
    %c0_279 = arith.constant 0 : index
    %437 = memref.load %arg5[%c0_278, %c0_279] : memref<8x4xf32, #tpu.memory_space<smem>>
    %438 = vector.broadcast %437 : f32 to vector<8x16xf32>
    %439 = arith.mulf %438, %414 : vector<8x16xf32>
    %440 = vector.broadcast %436 : f32 to vector<8x16xf32>
    %441 = arith.addf %440, %439 : vector<8x16xf32>
    %c0_280 = arith.constant 0 : index
    %c1_281 = arith.constant 1 : index
    %442 = memref.load %arg5[%c0_280, %c1_281] : memref<8x4xf32, #tpu.memory_space<smem>>
    %443 = vector.broadcast %442 : f32 to vector<8x16xf32>
    %444 = arith.mulf %443, %421 : vector<8x16xf32>
    %445 = arith.addf %441, %444 : vector<8x16xf32>
    %c0_282 = arith.constant 0 : index
    %c2_283 = arith.constant 2 : index
    %446 = memref.load %arg5[%c0_282, %c2_283] : memref<8x4xf32, #tpu.memory_space<smem>>
    %447 = vector.broadcast %446 : f32 to vector<8x16xf32>
    %448 = arith.mulf %447, %428 : vector<8x16xf32>
    %449 = arith.addf %445, %448 : vector<8x16xf32>
    %c0_284 = arith.constant 0 : index
    %c3_285 = arith.constant 3 : index
    %450 = memref.load %arg5[%c0_284, %c3_285] : memref<8x4xf32, #tpu.memory_space<smem>>
    %451 = vector.broadcast %450 : f32 to vector<8x16xf32>
    %452 = arith.mulf %451, %435 : vector<8x16xf32>
    %453 = arith.addf %449, %452 : vector<8x16xf32>
    %cst_286 = arith.constant 0.000000e+00 : f32
    %454 = vector.broadcast %cst_286 : f32 to vector<8x16xf32>
    %455 = arith.maximumf %453, %454 : vector<8x16xf32>
    %c1_287 = arith.constant 1 : index
    %456 = memref.load %arg6[%c1_287] : memref<8xf32, #tpu.memory_space<smem>>
    %c1_288 = arith.constant 1 : index
    %c0_289 = arith.constant 0 : index
    %457 = memref.load %arg5[%c1_288, %c0_289] : memref<8x4xf32, #tpu.memory_space<smem>>
    %458 = vector.broadcast %457 : f32 to vector<8x16xf32>
    %459 = arith.mulf %458, %414 : vector<8x16xf32>
    %460 = vector.broadcast %456 : f32 to vector<8x16xf32>
    %461 = arith.addf %460, %459 : vector<8x16xf32>
    %c1_290 = arith.constant 1 : index
    %c1_291 = arith.constant 1 : index
    %462 = memref.load %arg5[%c1_290, %c1_291] : memref<8x4xf32, #tpu.memory_space<smem>>
    %463 = vector.broadcast %462 : f32 to vector<8x16xf32>
    %464 = arith.mulf %463, %421 : vector<8x16xf32>
    %465 = arith.addf %461, %464 : vector<8x16xf32>
    %c1_292 = arith.constant 1 : index
    %c2_293 = arith.constant 2 : index
    %466 = memref.load %arg5[%c1_292, %c2_293] : memref<8x4xf32, #tpu.memory_space<smem>>
    %467 = vector.broadcast %466 : f32 to vector<8x16xf32>
    %468 = arith.mulf %467, %428 : vector<8x16xf32>
    %469 = arith.addf %465, %468 : vector<8x16xf32>
    %c1_294 = arith.constant 1 : index
    %c3_295 = arith.constant 3 : index
    %470 = memref.load %arg5[%c1_294, %c3_295] : memref<8x4xf32, #tpu.memory_space<smem>>
    %471 = vector.broadcast %470 : f32 to vector<8x16xf32>
    %472 = arith.mulf %471, %435 : vector<8x16xf32>
    %473 = arith.addf %469, %472 : vector<8x16xf32>
    %cst_296 = arith.constant 0.000000e+00 : f32
    %474 = vector.broadcast %cst_296 : f32 to vector<8x16xf32>
    %475 = arith.maximumf %473, %474 : vector<8x16xf32>
    %c2_297 = arith.constant 2 : index
    %476 = memref.load %arg6[%c2_297] : memref<8xf32, #tpu.memory_space<smem>>
    %c2_298 = arith.constant 2 : index
    %c0_299 = arith.constant 0 : index
    %477 = memref.load %arg5[%c2_298, %c0_299] : memref<8x4xf32, #tpu.memory_space<smem>>
    %478 = vector.broadcast %477 : f32 to vector<8x16xf32>
    %479 = arith.mulf %478, %414 : vector<8x16xf32>
    %480 = vector.broadcast %476 : f32 to vector<8x16xf32>
    %481 = arith.addf %480, %479 : vector<8x16xf32>
    %c2_300 = arith.constant 2 : index
    %c1_301 = arith.constant 1 : index
    %482 = memref.load %arg5[%c2_300, %c1_301] : memref<8x4xf32, #tpu.memory_space<smem>>
    %483 = vector.broadcast %482 : f32 to vector<8x16xf32>
    %484 = arith.mulf %483, %421 : vector<8x16xf32>
    %485 = arith.addf %481, %484 : vector<8x16xf32>
    %c2_302 = arith.constant 2 : index
    %c2_303 = arith.constant 2 : index
    %486 = memref.load %arg5[%c2_302, %c2_303] : memref<8x4xf32, #tpu.memory_space<smem>>
    %487 = vector.broadcast %486 : f32 to vector<8x16xf32>
    %488 = arith.mulf %487, %428 : vector<8x16xf32>
    %489 = arith.addf %485, %488 : vector<8x16xf32>
    %c2_304 = arith.constant 2 : index
    %c3_305 = arith.constant 3 : index
    %490 = memref.load %arg5[%c2_304, %c3_305] : memref<8x4xf32, #tpu.memory_space<smem>>
    %491 = vector.broadcast %490 : f32 to vector<8x16xf32>
    %492 = arith.mulf %491, %435 : vector<8x16xf32>
    %493 = arith.addf %489, %492 : vector<8x16xf32>
    %cst_306 = arith.constant 0.000000e+00 : f32
    %494 = vector.broadcast %cst_306 : f32 to vector<8x16xf32>
    %495 = arith.maximumf %493, %494 : vector<8x16xf32>
    %c3_307 = arith.constant 3 : index
    %496 = memref.load %arg6[%c3_307] : memref<8xf32, #tpu.memory_space<smem>>
    %c3_308 = arith.constant 3 : index
    %c0_309 = arith.constant 0 : index
    %497 = memref.load %arg5[%c3_308, %c0_309] : memref<8x4xf32, #tpu.memory_space<smem>>
    %498 = vector.broadcast %497 : f32 to vector<8x16xf32>
    %499 = arith.mulf %498, %414 : vector<8x16xf32>
    %500 = vector.broadcast %496 : f32 to vector<8x16xf32>
    %501 = arith.addf %500, %499 : vector<8x16xf32>
    %c3_310 = arith.constant 3 : index
    %c1_311 = arith.constant 1 : index
    %502 = memref.load %arg5[%c3_310, %c1_311] : memref<8x4xf32, #tpu.memory_space<smem>>
    %503 = vector.broadcast %502 : f32 to vector<8x16xf32>
    %504 = arith.mulf %503, %421 : vector<8x16xf32>
    %505 = arith.addf %501, %504 : vector<8x16xf32>
    %c3_312 = arith.constant 3 : index
    %c2_313 = arith.constant 2 : index
    %506 = memref.load %arg5[%c3_312, %c2_313] : memref<8x4xf32, #tpu.memory_space<smem>>
    %507 = vector.broadcast %506 : f32 to vector<8x16xf32>
    %508 = arith.mulf %507, %428 : vector<8x16xf32>
    %509 = arith.addf %505, %508 : vector<8x16xf32>
    %c3_314 = arith.constant 3 : index
    %c3_315 = arith.constant 3 : index
    %510 = memref.load %arg5[%c3_314, %c3_315] : memref<8x4xf32, #tpu.memory_space<smem>>
    %511 = vector.broadcast %510 : f32 to vector<8x16xf32>
    %512 = arith.mulf %511, %435 : vector<8x16xf32>
    %513 = arith.addf %509, %512 : vector<8x16xf32>
    %cst_316 = arith.constant 0.000000e+00 : f32
    %514 = vector.broadcast %cst_316 : f32 to vector<8x16xf32>
    %515 = arith.maximumf %513, %514 : vector<8x16xf32>
    %c4_317 = arith.constant 4 : index
    %516 = memref.load %arg6[%c4_317] : memref<8xf32, #tpu.memory_space<smem>>
    %c4_318 = arith.constant 4 : index
    %c0_319 = arith.constant 0 : index
    %517 = memref.load %arg5[%c4_318, %c0_319] : memref<8x4xf32, #tpu.memory_space<smem>>
    %518 = vector.broadcast %517 : f32 to vector<8x16xf32>
    %519 = arith.mulf %518, %414 : vector<8x16xf32>
    %520 = vector.broadcast %516 : f32 to vector<8x16xf32>
    %521 = arith.addf %520, %519 : vector<8x16xf32>
    %c4_320 = arith.constant 4 : index
    %c1_321 = arith.constant 1 : index
    %522 = memref.load %arg5[%c4_320, %c1_321] : memref<8x4xf32, #tpu.memory_space<smem>>
    %523 = vector.broadcast %522 : f32 to vector<8x16xf32>
    %524 = arith.mulf %523, %421 : vector<8x16xf32>
    %525 = arith.addf %521, %524 : vector<8x16xf32>
    %c4_322 = arith.constant 4 : index
    %c2_323 = arith.constant 2 : index
    %526 = memref.load %arg5[%c4_322, %c2_323] : memref<8x4xf32, #tpu.memory_space<smem>>
    %527 = vector.broadcast %526 : f32 to vector<8x16xf32>
    %528 = arith.mulf %527, %428 : vector<8x16xf32>
    %529 = arith.addf %525, %528 : vector<8x16xf32>
    %c4_324 = arith.constant 4 : index
    %c3_325 = arith.constant 3 : index
    %530 = memref.load %arg5[%c4_324, %c3_325] : memref<8x4xf32, #tpu.memory_space<smem>>
    %531 = vector.broadcast %530 : f32 to vector<8x16xf32>
    %532 = arith.mulf %531, %435 : vector<8x16xf32>
    %533 = arith.addf %529, %532 : vector<8x16xf32>
    %cst_326 = arith.constant 0.000000e+00 : f32
    %534 = vector.broadcast %cst_326 : f32 to vector<8x16xf32>
    %535 = arith.maximumf %533, %534 : vector<8x16xf32>
    %c5_327 = arith.constant 5 : index
    %536 = memref.load %arg6[%c5_327] : memref<8xf32, #tpu.memory_space<smem>>
    %c5_328 = arith.constant 5 : index
    %c0_329 = arith.constant 0 : index
    %537 = memref.load %arg5[%c5_328, %c0_329] : memref<8x4xf32, #tpu.memory_space<smem>>
    %538 = vector.broadcast %537 : f32 to vector<8x16xf32>
    %539 = arith.mulf %538, %414 : vector<8x16xf32>
    %540 = vector.broadcast %536 : f32 to vector<8x16xf32>
    %541 = arith.addf %540, %539 : vector<8x16xf32>
    %c5_330 = arith.constant 5 : index
    %c1_331 = arith.constant 1 : index
    %542 = memref.load %arg5[%c5_330, %c1_331] : memref<8x4xf32, #tpu.memory_space<smem>>
    %543 = vector.broadcast %542 : f32 to vector<8x16xf32>
    %544 = arith.mulf %543, %421 : vector<8x16xf32>
    %545 = arith.addf %541, %544 : vector<8x16xf32>
    %c5_332 = arith.constant 5 : index
    %c2_333 = arith.constant 2 : index
    %546 = memref.load %arg5[%c5_332, %c2_333] : memref<8x4xf32, #tpu.memory_space<smem>>
    %547 = vector.broadcast %546 : f32 to vector<8x16xf32>
    %548 = arith.mulf %547, %428 : vector<8x16xf32>
    %549 = arith.addf %545, %548 : vector<8x16xf32>
    %c5_334 = arith.constant 5 : index
    %c3_335 = arith.constant 3 : index
    %550 = memref.load %arg5[%c5_334, %c3_335] : memref<8x4xf32, #tpu.memory_space<smem>>
    %551 = vector.broadcast %550 : f32 to vector<8x16xf32>
    %552 = arith.mulf %551, %435 : vector<8x16xf32>
    %553 = arith.addf %549, %552 : vector<8x16xf32>
    %cst_336 = arith.constant 0.000000e+00 : f32
    %554 = vector.broadcast %cst_336 : f32 to vector<8x16xf32>
    %555 = arith.maximumf %553, %554 : vector<8x16xf32>
    %c6_337 = arith.constant 6 : index
    %556 = memref.load %arg6[%c6_337] : memref<8xf32, #tpu.memory_space<smem>>
    %c6_338 = arith.constant 6 : index
    %c0_339 = arith.constant 0 : index
    %557 = memref.load %arg5[%c6_338, %c0_339] : memref<8x4xf32, #tpu.memory_space<smem>>
    %558 = vector.broadcast %557 : f32 to vector<8x16xf32>
    %559 = arith.mulf %558, %414 : vector<8x16xf32>
    %560 = vector.broadcast %556 : f32 to vector<8x16xf32>
    %561 = arith.addf %560, %559 : vector<8x16xf32>
    %c6_340 = arith.constant 6 : index
    %c1_341 = arith.constant 1 : index
    %562 = memref.load %arg5[%c6_340, %c1_341] : memref<8x4xf32, #tpu.memory_space<smem>>
    %563 = vector.broadcast %562 : f32 to vector<8x16xf32>
    %564 = arith.mulf %563, %421 : vector<8x16xf32>
    %565 = arith.addf %561, %564 : vector<8x16xf32>
    %c6_342 = arith.constant 6 : index
    %c2_343 = arith.constant 2 : index
    %566 = memref.load %arg5[%c6_342, %c2_343] : memref<8x4xf32, #tpu.memory_space<smem>>
    %567 = vector.broadcast %566 : f32 to vector<8x16xf32>
    %568 = arith.mulf %567, %428 : vector<8x16xf32>
    %569 = arith.addf %565, %568 : vector<8x16xf32>
    %c6_344 = arith.constant 6 : index
    %c3_345 = arith.constant 3 : index
    %570 = memref.load %arg5[%c6_344, %c3_345] : memref<8x4xf32, #tpu.memory_space<smem>>
    %571 = vector.broadcast %570 : f32 to vector<8x16xf32>
    %572 = arith.mulf %571, %435 : vector<8x16xf32>
    %573 = arith.addf %569, %572 : vector<8x16xf32>
    %cst_346 = arith.constant 0.000000e+00 : f32
    %574 = vector.broadcast %cst_346 : f32 to vector<8x16xf32>
    %575 = arith.maximumf %573, %574 : vector<8x16xf32>
    %c7_347 = arith.constant 7 : index
    %576 = memref.load %arg6[%c7_347] : memref<8xf32, #tpu.memory_space<smem>>
    %c7_348 = arith.constant 7 : index
    %c0_349 = arith.constant 0 : index
    %577 = memref.load %arg5[%c7_348, %c0_349] : memref<8x4xf32, #tpu.memory_space<smem>>
    %578 = vector.broadcast %577 : f32 to vector<8x16xf32>
    %579 = arith.mulf %578, %414 : vector<8x16xf32>
    %580 = vector.broadcast %576 : f32 to vector<8x16xf32>
    %581 = arith.addf %580, %579 : vector<8x16xf32>
    %c7_350 = arith.constant 7 : index
    %c1_351 = arith.constant 1 : index
    %582 = memref.load %arg5[%c7_350, %c1_351] : memref<8x4xf32, #tpu.memory_space<smem>>
    %583 = vector.broadcast %582 : f32 to vector<8x16xf32>
    %584 = arith.mulf %583, %421 : vector<8x16xf32>
    %585 = arith.addf %581, %584 : vector<8x16xf32>
    %c7_352 = arith.constant 7 : index
    %c2_353 = arith.constant 2 : index
    %586 = memref.load %arg5[%c7_352, %c2_353] : memref<8x4xf32, #tpu.memory_space<smem>>
    %587 = vector.broadcast %586 : f32 to vector<8x16xf32>
    %588 = arith.mulf %587, %428 : vector<8x16xf32>
    %589 = arith.addf %585, %588 : vector<8x16xf32>
    %c7_354 = arith.constant 7 : index
    %c3_355 = arith.constant 3 : index
    %590 = memref.load %arg5[%c7_354, %c3_355] : memref<8x4xf32, #tpu.memory_space<smem>>
    %591 = vector.broadcast %590 : f32 to vector<8x16xf32>
    %592 = arith.mulf %591, %435 : vector<8x16xf32>
    %593 = arith.addf %589, %592 : vector<8x16xf32>
    %cst_356 = arith.constant 0.000000e+00 : f32
    %594 = vector.broadcast %cst_356 : f32 to vector<8x16xf32>
    %595 = arith.maximumf %593, %594 : vector<8x16xf32>
    %c0_357 = arith.constant 0 : index
    %596 = memref.load %arg8[%c0_357] : memref<4xf32, #tpu.memory_space<smem>>
    %597 = vector.broadcast %596 : f32 to vector<8x16xf32>
    %598 = arith.addf %414, %597 : vector<8x16xf32>
    %c0_358 = arith.constant 0 : index
    %c0_359 = arith.constant 0 : index
    %599 = memref.load %arg7[%c0_358, %c0_359] : memref<4x8xf32, #tpu.memory_space<smem>>
    %600 = vector.broadcast %599 : f32 to vector<8x16xf32>
    %601 = arith.mulf %600, %455 : vector<8x16xf32>
    %602 = arith.addf %598, %601 : vector<8x16xf32>
    %c0_360 = arith.constant 0 : index
    %c1_361 = arith.constant 1 : index
    %603 = memref.load %arg7[%c0_360, %c1_361] : memref<4x8xf32, #tpu.memory_space<smem>>
    %604 = vector.broadcast %603 : f32 to vector<8x16xf32>
    %605 = arith.mulf %604, %475 : vector<8x16xf32>
    %606 = arith.addf %602, %605 : vector<8x16xf32>
    %c0_362 = arith.constant 0 : index
    %c2_363 = arith.constant 2 : index
    %607 = memref.load %arg7[%c0_362, %c2_363] : memref<4x8xf32, #tpu.memory_space<smem>>
    %608 = vector.broadcast %607 : f32 to vector<8x16xf32>
    %609 = arith.mulf %608, %495 : vector<8x16xf32>
    %610 = arith.addf %606, %609 : vector<8x16xf32>
    %c0_364 = arith.constant 0 : index
    %c3_365 = arith.constant 3 : index
    %611 = memref.load %arg7[%c0_364, %c3_365] : memref<4x8xf32, #tpu.memory_space<smem>>
    %612 = vector.broadcast %611 : f32 to vector<8x16xf32>
    %613 = arith.mulf %612, %515 : vector<8x16xf32>
    %614 = arith.addf %610, %613 : vector<8x16xf32>
    %c0_366 = arith.constant 0 : index
    %c4_367 = arith.constant 4 : index
    %615 = memref.load %arg7[%c0_366, %c4_367] : memref<4x8xf32, #tpu.memory_space<smem>>
    %616 = vector.broadcast %615 : f32 to vector<8x16xf32>
    %617 = arith.mulf %616, %535 : vector<8x16xf32>
    %618 = arith.addf %614, %617 : vector<8x16xf32>
    %c0_368 = arith.constant 0 : index
    %c5_369 = arith.constant 5 : index
    %619 = memref.load %arg7[%c0_368, %c5_369] : memref<4x8xf32, #tpu.memory_space<smem>>
    %620 = vector.broadcast %619 : f32 to vector<8x16xf32>
    %621 = arith.mulf %620, %555 : vector<8x16xf32>
    %622 = arith.addf %618, %621 : vector<8x16xf32>
    %c0_370 = arith.constant 0 : index
    %c6_371 = arith.constant 6 : index
    %623 = memref.load %arg7[%c0_370, %c6_371] : memref<4x8xf32, #tpu.memory_space<smem>>
    %624 = vector.broadcast %623 : f32 to vector<8x16xf32>
    %625 = arith.mulf %624, %575 : vector<8x16xf32>
    %626 = arith.addf %622, %625 : vector<8x16xf32>
    %c0_372 = arith.constant 0 : index
    %c7_373 = arith.constant 7 : index
    %627 = memref.load %arg7[%c0_372, %c7_373] : memref<4x8xf32, #tpu.memory_space<smem>>
    %628 = vector.broadcast %627 : f32 to vector<8x16xf32>
    %629 = arith.mulf %628, %595 : vector<8x16xf32>
    %630 = arith.addf %626, %629 : vector<8x16xf32>
    %c0_374 = arith.constant 0 : index
    %c0_375 = arith.constant 0 : index
    %c0_376 = arith.constant 0 : index
    %631 = vector.load %arg10[%c0_374, %c0_375, %c0_376] : memref<4x8x128xf32, #tpu.memory_space<vmem>>, vector<1x8x16xf32>
    %632 = vector.shape_cast %631 : vector<1x8x16xf32> to vector<8x16xf32>
    %633 = vector.shape_cast %630 : vector<8x16xf32> to vector<1x8x16xf32>
    tpu.vector_store %arg10[%c0_374, %c0_375, %c0_376], %633 {strides = array<i32>} : memref<4x8x128xf32, #tpu.memory_space<vmem>>, vector<1x8x16xf32>,
    %c1_377 = arith.constant 1 : index
    %634 = memref.load %arg8[%c1_377] : memref<4xf32, #tpu.memory_space<smem>>
    %635 = vector.broadcast %634 : f32 to vector<8x16xf32>
    %636 = arith.addf %421, %635 : vector<8x16xf32>
    %c1_378 = arith.constant 1 : index
    %c0_379 = arith.constant 0 : index
    %637 = memref.load %arg7[%c1_378, %c0_379] : memref<4x8xf32, #tpu.memory_space<smem>>
    %638 = vector.broadcast %637 : f32 to vector<8x16xf32>
    %639 = arith.mulf %638, %455 : vector<8x16xf32>
    %640 = arith.addf %636, %639 : vector<8x16xf32>
    %c1_380 = arith.constant 1 : index
    %c1_381 = arith.constant 1 : index
    %641 = memref.load %arg7[%c1_380, %c1_381] : memref<4x8xf32, #tpu.memory_space<smem>>
    %642 = vector.broadcast %641 : f32 to vector<8x16xf32>
    %643 = arith.mulf %642, %475 : vector<8x16xf32>
    %644 = arith.addf %640, %643 : vector<8x16xf32>
    %c1_382 = arith.constant 1 : index
    %c2_383 = arith.constant 2 : index
    %645 = memref.load %arg7[%c1_382, %c2_383] : memref<4x8xf32, #tpu.memory_space<smem>>
    %646 = vector.broadcast %645 : f32 to vector<8x16xf32>
    %647 = arith.mulf %646, %495 : vector<8x16xf32>
    %648 = arith.addf %644, %647 : vector<8x16xf32>
    %c1_384 = arith.constant 1 : index
    %c3_385 = arith.constant 3 : index
    %649 = memref.load %arg7[%c1_384, %c3_385] : memref<4x8xf32, #tpu.memory_space<smem>>
    %650 = vector.broadcast %649 : f32 to vector<8x16xf32>
    %651 = arith.mulf %650, %515 : vector<8x16xf32>
    %652 = arith.addf %648, %651 : vector<8x16xf32>
    %c1_386 = arith.constant 1 : index
    %c4_387 = arith.constant 4 : index
    %653 = memref.load %arg7[%c1_386, %c4_387] : memref<4x8xf32, #tpu.memory_space<smem>>
    %654 = vector.broadcast %653 : f32 to vector<8x16xf32>
    %655 = arith.mulf %654, %535 : vector<8x16xf32>
    %656 = arith.addf %652, %655 : vector<8x16xf32>
    %c1_388 = arith.constant 1 : index
    %c5_389 = arith.constant 5 : index
    %657 = memref.load %arg7[%c1_388, %c5_389] : memref<4x8xf32, #tpu.memory_space<smem>>
    %658 = vector.broadcast %657 : f32 to vector<8x16xf32>
    %659 = arith.mulf %658, %555 : vector<8x16xf32>
    %660 = arith.addf %656, %659 : vector<8x16xf32>
    %c1_390 = arith.constant 1 : index
    %c6_391 = arith.constant 6 : index
    %661 = memref.load %arg7[%c1_390, %c6_391] : memref<4x8xf32, #tpu.memory_space<smem>>
    %662 = vector.broadcast %661 : f32 to vector<8x16xf32>
    %663 = arith.mulf %662, %575 : vector<8x16xf32>
    %664 = arith.addf %660, %663 : vector<8x16xf32>
    %c1_392 = arith.constant 1 : index
    %c7_393 = arith.constant 7 : index
    %665 = memref.load %arg7[%c1_392, %c7_393] : memref<4x8xf32, #tpu.memory_space<smem>>
    %666 = vector.broadcast %665 : f32 to vector<8x16xf32>
    %667 = arith.mulf %666, %595 : vector<8x16xf32>
    %668 = arith.addf %664, %667 : vector<8x16xf32>
    %c1_394 = arith.constant 1 : index
    %c0_395 = arith.constant 0 : index
    %c2_396 = arith.constant 2 : index
    %669 = vector.load %arg10[%c1_394, %c0_395, %c2_396] : memref<4x8x128xf32, #tpu.memory_space<vmem>>, vector<1x8x16xf32>
    %670 = vector.shape_cast %669 : vector<1x8x16xf32> to vector<8x16xf32>
    %671 = vector.shape_cast %668 : vector<8x16xf32> to vector<1x8x16xf32>
    tpu.vector_store %arg10[%c1_394, %c0_395, %c2_396], %671 {strides = array<i32>} : memref<4x8x128xf32, #tpu.memory_space<vmem>>, vector<1x8x16xf32>,
    %c2_397 = arith.constant 2 : index
    %672 = memref.load %arg8[%c2_397] : memref<4xf32, #tpu.memory_space<smem>>
    %673 = vector.broadcast %672 : f32 to vector<8x16xf32>
    %674 = arith.addf %428, %673 : vector<8x16xf32>
    %c2_398 = arith.constant 2 : index
    %c0_399 = arith.constant 0 : index
    %675 = memref.load %arg7[%c2_398, %c0_399] : memref<4x8xf32, #tpu.memory_space<smem>>
    %676 = vector.broadcast %675 : f32 to vector<8x16xf32>
    %677 = arith.mulf %676, %455 : vector<8x16xf32>
    %678 = arith.addf %674, %677 : vector<8x16xf32>
    %c2_400 = arith.constant 2 : index
    %c1_401 = arith.constant 1 : index
    %679 = memref.load %arg7[%c2_400, %c1_401] : memref<4x8xf32, #tpu.memory_space<smem>>
    %680 = vector.broadcast %679 : f32 to vector<8x16xf32>
    %681 = arith.mulf %680, %475 : vector<8x16xf32>
    %682 = arith.addf %678, %681 : vector<8x16xf32>
    %c2_402 = arith.constant 2 : index
    %c2_403 = arith.constant 2 : index
    %683 = memref.load %arg7[%c2_402, %c2_403] : memref<4x8xf32, #tpu.memory_space<smem>>
    %684 = vector.broadcast %683 : f32 to vector<8x16xf32>
    %685 = arith.mulf %684, %495 : vector<8x16xf32>
    %686 = arith.addf %682, %685 : vector<8x16xf32>
    %c2_404 = arith.constant 2 : index
    %c3_405 = arith.constant 3 : index
    %687 = memref.load %arg7[%c2_404, %c3_405] : memref<4x8xf32, #tpu.memory_space<smem>>
    %688 = vector.broadcast %687 : f32 to vector<8x16xf32>
    %689 = arith.mulf %688, %515 : vector<8x16xf32>
    %690 = arith.addf %686, %689 : vector<8x16xf32>
    %c2_406 = arith.constant 2 : index
    %c4_407 = arith.constant 4 : index
    %691 = memref.load %arg7[%c2_406, %c4_407] : memref<4x8xf32, #tpu.memory_space<smem>>
    %692 = vector.broadcast %691 : f32 to vector<8x16xf32>
    %693 = arith.mulf %692, %535 : vector<8x16xf32>
    %694 = arith.addf %690, %693 : vector<8x16xf32>
    %c2_408 = arith.constant 2 : index
    %c5_409 = arith.constant 5 : index
    %695 = memref.load %arg7[%c2_408, %c5_409] : memref<4x8xf32, #tpu.memory_space<smem>>
    %696 = vector.broadcast %695 : f32 to vector<8x16xf32>
    %697 = arith.mulf %696, %555 : vector<8x16xf32>
    %698 = arith.addf %694, %697 : vector<8x16xf32>
    %c2_410 = arith.constant 2 : index
    %c6_411 = arith.constant 6 : index
    %699 = memref.load %arg7[%c2_410, %c6_411] : memref<4x8xf32, #tpu.memory_space<smem>>
    %700 = vector.broadcast %699 : f32 to vector<8x16xf32>
    %701 = arith.mulf %700, %575 : vector<8x16xf32>
    %702 = arith.addf %698, %701 : vector<8x16xf32>
    %c2_412 = arith.constant 2 : index
    %c7_413 = arith.constant 7 : index
    %703 = memref.load %arg7[%c2_412, %c7_413] : memref<4x8xf32, #tpu.memory_space<smem>>
    %704 = vector.broadcast %703 : f32 to vector<8x16xf32>
    %705 = arith.mulf %704, %595 : vector<8x16xf32>
    %706 = arith.addf %702, %705 : vector<8x16xf32>
    %c2_414 = arith.constant 2 : index
    %c0_415 = arith.constant 0 : index
    %c4_416 = arith.constant 4 : index
    %707 = vector.load %arg10[%c2_414, %c0_415, %c4_416] : memref<4x8x128xf32, #tpu.memory_space<vmem>>, vector<1x8x16xf32>
    %708 = vector.shape_cast %707 : vector<1x8x16xf32> to vector<8x16xf32>
    %709 = vector.shape_cast %706 : vector<8x16xf32> to vector<1x8x16xf32>
    tpu.vector_store %arg10[%c2_414, %c0_415, %c4_416], %709 {strides = array<i32>} : memref<4x8x128xf32, #tpu.memory_space<vmem>>, vector<1x8x16xf32>,
    %c3_417 = arith.constant 3 : index
    %710 = memref.load %arg8[%c3_417] : memref<4xf32, #tpu.memory_space<smem>>
    %711 = vector.broadcast %710 : f32 to vector<8x16xf32>
    %712 = arith.addf %435, %711 : vector<8x16xf32>
    %c3_418 = arith.constant 3 : index
    %c0_419 = arith.constant 0 : index
    %713 = memref.load %arg7[%c3_418, %c0_419] : memref<4x8xf32, #tpu.memory_space<smem>>
    %714 = vector.broadcast %713 : f32 to vector<8x16xf32>
    %715 = arith.mulf %714, %455 : vector<8x16xf32>
    %716 = arith.addf %712, %715 : vector<8x16xf32>
    %c3_420 = arith.constant 3 : index
    %c1_421 = arith.constant 1 : index
    %717 = memref.load %arg7[%c3_420, %c1_421] : memref<4x8xf32, #tpu.memory_space<smem>>
    %718 = vector.broadcast %717 : f32 to vector<8x16xf32>
    %719 = arith.mulf %718, %475 : vector<8x16xf32>
    %720 = arith.addf %716, %719 : vector<8x16xf32>
    %c3_422 = arith.constant 3 : index
    %c2_423 = arith.constant 2 : index
    %721 = memref.load %arg7[%c3_422, %c2_423] : memref<4x8xf32, #tpu.memory_space<smem>>
    %722 = vector.broadcast %721 : f32 to vector<8x16xf32>
    %723 = arith.mulf %722, %495 : vector<8x16xf32>
    %724 = arith.addf %720, %723 : vector<8x16xf32>
    %c3_424 = arith.constant 3 : index
    %c3_425 = arith.constant 3 : index
    %725 = memref.load %arg7[%c3_424, %c3_425] : memref<4x8xf32, #tpu.memory_space<smem>>
    %726 = vector.broadcast %725 : f32 to vector<8x16xf32>
    %727 = arith.mulf %726, %515 : vector<8x16xf32>
    %728 = arith.addf %724, %727 : vector<8x16xf32>
    %c3_426 = arith.constant 3 : index
    %c4_427 = arith.constant 4 : index
    %729 = memref.load %arg7[%c3_426, %c4_427] : memref<4x8xf32, #tpu.memory_space<smem>>
    %730 = vector.broadcast %729 : f32 to vector<8x16xf32>
    %731 = arith.mulf %730, %535 : vector<8x16xf32>
    %732 = arith.addf %728, %731 : vector<8x16xf32>
    %c3_428 = arith.constant 3 : index
    %c5_429 = arith.constant 5 : index
    %733 = memref.load %arg7[%c3_428, %c5_429] : memref<4x8xf32, #tpu.memory_space<smem>>
    %734 = vector.broadcast %733 : f32 to vector<8x16xf32>
    %735 = arith.mulf %734, %555 : vector<8x16xf32>
    %736 = arith.addf %732, %735 : vector<8x16xf32>
    %c3_430 = arith.constant 3 : index
    %c6_431 = arith.constant 6 : index
    %737 = memref.load %arg7[%c3_430, %c6_431] : memref<4x8xf32, #tpu.memory_space<smem>>
    %738 = vector.broadcast %737 : f32 to vector<8x16xf32>
    %739 = arith.mulf %738, %575 : vector<8x16xf32>
    %740 = arith.addf %736, %739 : vector<8x16xf32>
    %c3_432 = arith.constant 3 : index
    %c7_433 = arith.constant 7 : index
    %741 = memref.load %arg7[%c3_432, %c7_433] : memref<4x8xf32, #tpu.memory_space<smem>>
    %742 = vector.broadcast %741 : f32 to vector<8x16xf32>
    %743 = arith.mulf %742, %595 : vector<8x16xf32>
    %744 = arith.addf %740, %743 : vector<8x16xf32>
    %c3_434 = arith.constant 3 : index
    %c0_435 = arith.constant 0 : index
    %c6_436 = arith.constant 6 : index
    %745 = vector.load %arg10[%c3_434, %c0_435, %c6_436] : memref<4x8x128xf32, #tpu.memory_space<vmem>>, vector<1x8x16xf32>
    %746 = vector.shape_cast %745 : vector<1x8x16xf32> to vector<8x16xf32>
    %747 = vector.shape_cast %744 : vector<8x16xf32> to vector<1x8x16xf32>
    tpu.vector_store %arg10[%c3_434, %c0_435, %c6_436], %747 {strides = array<i32>} : memref<4x8x128xf32, #tpu.memory_space<vmem>>, vector<1x8x16xf32>,
    %c0_437 = arith.constant 0 : index
    %c0_438 = arith.constant 0 : index
    %748 = vector.load %arg11[%c0_437, %c0_438] : memref<8x128xf32, #tpu.memory_space<vmem>>, vector<8x128xf32>
    %c0_439 = arith.constant 0 : index
    %c0_440 = arith.constant 0 : index
    %c0_441 = arith.constant 0 : index
    %749 = vector.load %arg2[%c0_439, %c0_440, %c0_441] : memref<4x8x128xf32, #tpu.memory_space<vmem>>, vector<1x8x128xf32>
    %750 = vector.shape_cast %749 : vector<1x8x128xf32> to vector<8x128xf32>
    %c0_442 = arith.constant 0 : index
    %c0_443 = arith.constant 0 : index
    %c0_444 = arith.constant 0 : index
    %751 = vector.load %arg10[%c0_442, %c0_443, %c0_444] : memref<4x8x128xf32, #tpu.memory_space<vmem>>, vector<1x8x128xf32>
    %752 = vector.shape_cast %751 : vector<1x8x128xf32> to vector<8x128xf32>
    %753 = arith.mulf %750, %752 : vector<8x128xf32>
    %c1_445 = arith.constant 1 : index
    %c0_446 = arith.constant 0 : index
    %c0_447 = arith.constant 0 : index
    %754 = vector.load %arg2[%c1_445, %c0_446, %c0_447] : memref<4x8x128xf32, #tpu.memory_space<vmem>>, vector<1x8x128xf32>
    %755 = vector.shape_cast %754 : vector<1x8x128xf32> to vector<8x128xf32>
    %c1_448 = arith.constant 1 : index
    %c0_449 = arith.constant 0 : index
    %c0_450 = arith.constant 0 : index
    %756 = vector.load %arg10[%c1_448, %c0_449, %c0_450] : memref<4x8x128xf32, #tpu.memory_space<vmem>>, vector<1x8x128xf32>
    %757 = vector.shape_cast %756 : vector<1x8x128xf32> to vector<8x128xf32>
    %758 = arith.mulf %755, %757 : vector<8x128xf32>
    %759 = arith.addf %753, %758 : vector<8x128xf32>
    %c2_451 = arith.constant 2 : index
    %c0_452 = arith.constant 0 : index
    %c0_453 = arith.constant 0 : index
    %760 = vector.load %arg2[%c2_451, %c0_452, %c0_453] : memref<4x8x128xf32, #tpu.memory_space<vmem>>, vector<1x8x128xf32>
    %761 = vector.shape_cast %760 : vector<1x8x128xf32> to vector<8x128xf32>
    %c2_454 = arith.constant 2 : index
    %c0_455 = arith.constant 0 : index
    %c0_456 = arith.constant 0 : index
    %762 = vector.load %arg10[%c2_454, %c0_455, %c0_456] : memref<4x8x128xf32, #tpu.memory_space<vmem>>, vector<1x8x128xf32>
    %763 = vector.shape_cast %762 : vector<1x8x128xf32> to vector<8x128xf32>
    %764 = arith.mulf %761, %763 : vector<8x128xf32>
    %765 = arith.addf %759, %764 : vector<8x128xf32>
    %c3_457 = arith.constant 3 : index
    %c0_458 = arith.constant 0 : index
    %c0_459 = arith.constant 0 : index
    %766 = vector.load %arg2[%c3_457, %c0_458, %c0_459] : memref<4x8x128xf32, #tpu.memory_space<vmem>>, vector<1x8x128xf32>
    %767 = vector.shape_cast %766 : vector<1x8x128xf32> to vector<8x128xf32>
    %c3_460 = arith.constant 3 : index
    %c0_461 = arith.constant 0 : index
    %c0_462 = arith.constant 0 : index
    %768 = vector.load %arg10[%c3_460, %c0_461, %c0_462] : memref<4x8x128xf32, #tpu.memory_space<vmem>>, vector<1x8x128xf32>
    %769 = vector.shape_cast %768 : vector<1x8x128xf32> to vector<8x128xf32>
    %770 = arith.mulf %767, %769 : vector<8x128xf32>
    %771 = arith.addf %765, %770 : vector<8x128xf32>
    %772 = arith.subf %748, %771 : vector<8x128xf32>
    %c0_463 = arith.constant 0 : index
    %c0_464 = arith.constant 0 : index
    %773 = vector.load %arg3[%c0_463, %c0_464] : memref<8x128xf32, #tpu.memory_space<vmem>>, vector<8x128xf32>
    %774 = arith.mulf %772, %773 : vector<8x128xf32>
    %c0_465 = arith.constant 0 : index
    %c0_466 = arith.constant 0 : index
    %c0_467 = arith.constant 0 : index
    %775 = vector.load %arg10[%c0_465, %c0_466, %c0_467] : memref<4x8x128xf32, #tpu.memory_space<vmem>>, vector<1x8x16xf32>
    %776 = vector.shape_cast %775 : vector<1x8x16xf32> to vector<8x16xf32>
    %c0_468 = arith.constant 0 : index
    %c0_469 = arith.constant 0 : index
    %c0_470 = arith.constant 0 : index
    %777 = vector.load %arg2[%c0_468, %c0_469, %c0_470] : memref<4x8x128xf32, #tpu.memory_space<vmem>>, vector<1x8x16xf32>
    %778 = vector.shape_cast %777 : vector<1x8x16xf32> to vector<8x16xf32>
    %779 = vector.extract_strided_slice %774 {offsets = [0, 0], sizes = [8, 16], strides = [1, 1]} : vector<8x128xf32> to vector<8x16xf32>
    %780 = arith.mulf %778, %779 : vector<8x16xf32>
    %781 = arith.addf %776, %780 : vector<8x16xf32>
    %c1_471 = arith.constant 1 : index
    %c0_472 = arith.constant 0 : index
    %c2_473 = arith.constant 2 : index
    %782 = vector.load %arg10[%c1_471, %c0_472, %c2_473] : memref<4x8x128xf32, #tpu.memory_space<vmem>>, vector<1x8x16xf32>
    %783 = vector.shape_cast %782 : vector<1x8x16xf32> to vector<8x16xf32>
    %c1_474 = arith.constant 1 : index
    %c0_475 = arith.constant 0 : index
    %c2_476 = arith.constant 2 : index
    %784 = vector.load %arg2[%c1_474, %c0_475, %c2_476] : memref<4x8x128xf32, #tpu.memory_space<vmem>>, vector<1x8x16xf32>
    %785 = vector.shape_cast %784 : vector<1x8x16xf32> to vector<8x16xf32>
    %786 = vector.extract_strided_slice %774 {offsets = [0, 2], sizes = [8, 16], strides = [1, 1]} : vector<8x128xf32> to vector<8x16xf32>
    %787 = arith.mulf %785, %786 : vector<8x16xf32>
    %788 = arith.addf %783, %787 : vector<8x16xf32>
    %c2_477 = arith.constant 2 : index
    %c0_478 = arith.constant 0 : index
    %c4_479 = arith.constant 4 : index
    %789 = vector.load %arg10[%c2_477, %c0_478, %c4_479] : memref<4x8x128xf32, #tpu.memory_space<vmem>>, vector<1x8x16xf32>
    %790 = vector.shape_cast %789 : vector<1x8x16xf32> to vector<8x16xf32>
    %c2_480 = arith.constant 2 : index
    %c0_481 = arith.constant 0 : index
    %c4_482 = arith.constant 4 : index
    %791 = vector.load %arg2[%c2_480, %c0_481, %c4_482] : memref<4x8x128xf32, #tpu.memory_space<vmem>>, vector<1x8x16xf32>
    %792 = vector.shape_cast %791 : vector<1x8x16xf32> to vector<8x16xf32>
    %793 = vector.extract_strided_slice %774 {offsets = [0, 4], sizes = [8, 16], strides = [1, 1]} : vector<8x128xf32> to vector<8x16xf32>
    %794 = arith.mulf %792, %793 : vector<8x16xf32>
    %795 = arith.addf %790, %794 : vector<8x16xf32>
    %c3_483 = arith.constant 3 : index
    %c0_484 = arith.constant 0 : index
    %c6_485 = arith.constant 6 : index
    %796 = vector.load %arg10[%c3_483, %c0_484, %c6_485] : memref<4x8x128xf32, #tpu.memory_space<vmem>>, vector<1x8x16xf32>
    %797 = vector.shape_cast %796 : vector<1x8x16xf32> to vector<8x16xf32>
    %c3_486 = arith.constant 3 : index
    %c0_487 = arith.constant 0 : index
    %c6_488 = arith.constant 6 : index
    %798 = vector.load %arg2[%c3_486, %c0_487, %c6_488] : memref<4x8x128xf32, #tpu.memory_space<vmem>>, vector<1x8x16xf32>
    %799 = vector.shape_cast %798 : vector<1x8x16xf32> to vector<8x16xf32>
    %800 = vector.extract_strided_slice %774 {offsets = [0, 6], sizes = [8, 16], strides = [1, 1]} : vector<8x128xf32> to vector<8x16xf32>
    %801 = arith.mulf %799, %800 : vector<8x16xf32>
    %802 = arith.addf %797, %801 : vector<8x16xf32>
    %c0_489 = arith.constant 0 : index
    %803 = memref.load %arg6[%c0_489] : memref<8xf32, #tpu.memory_space<smem>>
    %c0_490 = arith.constant 0 : index
    %c0_491 = arith.constant 0 : index
    %804 = memref.load %arg5[%c0_490, %c0_491] : memref<8x4xf32, #tpu.memory_space<smem>>
    %805 = vector.broadcast %804 : f32 to vector<8x16xf32>
    %806 = arith.mulf %805, %781 : vector<8x16xf32>
    %807 = vector.broadcast %803 : f32 to vector<8x16xf32>
    %808 = arith.addf %807, %806 : vector<8x16xf32>
    %c0_492 = arith.constant 0 : index
    %c1_493 = arith.constant 1 : index
    %809 = memref.load %arg5[%c0_492, %c1_493] : memref<8x4xf32, #tpu.memory_space<smem>>
    %810 = vector.broadcast %809 : f32 to vector<8x16xf32>
    %811 = arith.mulf %810, %788 : vector<8x16xf32>
    %812 = arith.addf %808, %811 : vector<8x16xf32>
    %c0_494 = arith.constant 0 : index
    %c2_495 = arith.constant 2 : index
    %813 = memref.load %arg5[%c0_494, %c2_495] : memref<8x4xf32, #tpu.memory_space<smem>>
    %814 = vector.broadcast %813 : f32 to vector<8x16xf32>
    %815 = arith.mulf %814, %795 : vector<8x16xf32>
    %816 = arith.addf %812, %815 : vector<8x16xf32>
    %c0_496 = arith.constant 0 : index
    %c3_497 = arith.constant 3 : index
    %817 = memref.load %arg5[%c0_496, %c3_497] : memref<8x4xf32, #tpu.memory_space<smem>>
    %818 = vector.broadcast %817 : f32 to vector<8x16xf32>
    %819 = arith.mulf %818, %802 : vector<8x16xf32>
    %820 = arith.addf %816, %819 : vector<8x16xf32>
    %cst_498 = arith.constant 0.000000e+00 : f32
    %821 = vector.broadcast %cst_498 : f32 to vector<8x16xf32>
    %822 = arith.maximumf %820, %821 : vector<8x16xf32>
    %c1_499 = arith.constant 1 : index
    %823 = memref.load %arg6[%c1_499] : memref<8xf32, #tpu.memory_space<smem>>
    %c1_500 = arith.constant 1 : index
    %c0_501 = arith.constant 0 : index
    %824 = memref.load %arg5[%c1_500, %c0_501] : memref<8x4xf32, #tpu.memory_space<smem>>
    %825 = vector.broadcast %824 : f32 to vector<8x16xf32>
    %826 = arith.mulf %825, %781 : vector<8x16xf32>
    %827 = vector.broadcast %823 : f32 to vector<8x16xf32>
    %828 = arith.addf %827, %826 : vector<8x16xf32>
    %c1_502 = arith.constant 1 : index
    %c1_503 = arith.constant 1 : index
    %829 = memref.load %arg5[%c1_502, %c1_503] : memref<8x4xf32, #tpu.memory_space<smem>>
    %830 = vector.broadcast %829 : f32 to vector<8x16xf32>
    %831 = arith.mulf %830, %788 : vector<8x16xf32>
    %832 = arith.addf %828, %831 : vector<8x16xf32>
    %c1_504 = arith.constant 1 : index
    %c2_505 = arith.constant 2 : index
    %833 = memref.load %arg5[%c1_504, %c2_505] : memref<8x4xf32, #tpu.memory_space<smem>>
    %834 = vector.broadcast %833 : f32 to vector<8x16xf32>
    %835 = arith.mulf %834, %795 : vector<8x16xf32>
    %836 = arith.addf %832, %835 : vector<8x16xf32>
    %c1_506 = arith.constant 1 : index
    %c3_507 = arith.constant 3 : index
    %837 = memref.load %arg5[%c1_506, %c3_507] : memref<8x4xf32, #tpu.memory_space<smem>>
    %838 = vector.broadcast %837 : f32 to vector<8x16xf32>
    %839 = arith.mulf %838, %802 : vector<8x16xf32>
    %840 = arith.addf %836, %839 : vector<8x16xf32>
    %cst_508 = arith.constant 0.000000e+00 : f32
    %841 = vector.broadcast %cst_508 : f32 to vector<8x16xf32>
    %842 = arith.maximumf %840, %841 : vector<8x16xf32>
    %c2_509 = arith.constant 2 : index
    %843 = memref.load %arg6[%c2_509] : memref<8xf32, #tpu.memory_space<smem>>
    %c2_510 = arith.constant 2 : index
    %c0_511 = arith.constant 0 : index
    %844 = memref.load %arg5[%c2_510, %c0_511] : memref<8x4xf32, #tpu.memory_space<smem>>
    %845 = vector.broadcast %844 : f32 to vector<8x16xf32>
    %846 = arith.mulf %845, %781 : vector<8x16xf32>
    %847 = vector.broadcast %843 : f32 to vector<8x16xf32>
    %848 = arith.addf %847, %846 : vector<8x16xf32>
    %c2_512 = arith.constant 2 : index
    %c1_513 = arith.constant 1 : index
    %849 = memref.load %arg5[%c2_512, %c1_513] : memref<8x4xf32, #tpu.memory_space<smem>>
    %850 = vector.broadcast %849 : f32 to vector<8x16xf32>
    %851 = arith.mulf %850, %788 : vector<8x16xf32>
    %852 = arith.addf %848, %851 : vector<8x16xf32>
    %c2_514 = arith.constant 2 : index
    %c2_515 = arith.constant 2 : index
    %853 = memref.load %arg5[%c2_514, %c2_515] : memref<8x4xf32, #tpu.memory_space<smem>>
    %854 = vector.broadcast %853 : f32 to vector<8x16xf32>
    %855 = arith.mulf %854, %795 : vector<8x16xf32>
    %856 = arith.addf %852, %855 : vector<8x16xf32>
    %c2_516 = arith.constant 2 : index
    %c3_517 = arith.constant 3 : index
    %857 = memref.load %arg5[%c2_516, %c3_517] : memref<8x4xf32, #tpu.memory_space<smem>>
    %858 = vector.broadcast %857 : f32 to vector<8x16xf32>
    %859 = arith.mulf %858, %802 : vector<8x16xf32>
    %860 = arith.addf %856, %859 : vector<8x16xf32>
    %cst_518 = arith.constant 0.000000e+00 : f32
    %861 = vector.broadcast %cst_518 : f32 to vector<8x16xf32>
    %862 = arith.maximumf %860, %861 : vector<8x16xf32>
    %c3_519 = arith.constant 3 : index
    %863 = memref.load %arg6[%c3_519] : memref<8xf32, #tpu.memory_space<smem>>
    %c3_520 = arith.constant 3 : index
    %c0_521 = arith.constant 0 : index
    %864 = memref.load %arg5[%c3_520, %c0_521] : memref<8x4xf32, #tpu.memory_space<smem>>
    %865 = vector.broadcast %864 : f32 to vector<8x16xf32>
    %866 = arith.mulf %865, %781 : vector<8x16xf32>
    %867 = vector.broadcast %863 : f32 to vector<8x16xf32>
    %868 = arith.addf %867, %866 : vector<8x16xf32>
    %c3_522 = arith.constant 3 : index
    %c1_523 = arith.constant 1 : index
    %869 = memref.load %arg5[%c3_522, %c1_523] : memref<8x4xf32, #tpu.memory_space<smem>>
    %870 = vector.broadcast %869 : f32 to vector<8x16xf32>
    %871 = arith.mulf %870, %788 : vector<8x16xf32>
    %872 = arith.addf %868, %871 : vector<8x16xf32>
    %c3_524 = arith.constant 3 : index
    %c2_525 = arith.constant 2 : index
    %873 = memref.load %arg5[%c3_524, %c2_525] : memref<8x4xf32, #tpu.memory_space<smem>>
    %874 = vector.broadcast %873 : f32 to vector<8x16xf32>
    %875 = arith.mulf %874, %795 : vector<8x16xf32>
    %876 = arith.addf %872, %875 : vector<8x16xf32>
    %c3_526 = arith.constant 3 : index
    %c3_527 = arith.constant 3 : index
    %877 = memref.load %arg5[%c3_526, %c3_527] : memref<8x4xf32, #tpu.memory_space<smem>>
    %878 = vector.broadcast %877 : f32 to vector<8x16xf32>
    %879 = arith.mulf %878, %802 : vector<8x16xf32>
    %880 = arith.addf %876, %879 : vector<8x16xf32>
    %cst_528 = arith.constant 0.000000e+00 : f32
    %881 = vector.broadcast %cst_528 : f32 to vector<8x16xf32>
    %882 = arith.maximumf %880, %881 : vector<8x16xf32>
    %c4_529 = arith.constant 4 : index
    %883 = memref.load %arg6[%c4_529] : memref<8xf32, #tpu.memory_space<smem>>
    %c4_530 = arith.constant 4 : index
    %c0_531 = arith.constant 0 : index
    %884 = memref.load %arg5[%c4_530, %c0_531] : memref<8x4xf32, #tpu.memory_space<smem>>
    %885 = vector.broadcast %884 : f32 to vector<8x16xf32>
    %886 = arith.mulf %885, %781 : vector<8x16xf32>
    %887 = vector.broadcast %883 : f32 to vector<8x16xf32>
    %888 = arith.addf %887, %886 : vector<8x16xf32>
    %c4_532 = arith.constant 4 : index
    %c1_533 = arith.constant 1 : index
    %889 = memref.load %arg5[%c4_532, %c1_533] : memref<8x4xf32, #tpu.memory_space<smem>>
    %890 = vector.broadcast %889 : f32 to vector<8x16xf32>
    %891 = arith.mulf %890, %788 : vector<8x16xf32>
    %892 = arith.addf %888, %891 : vector<8x16xf32>
    %c4_534 = arith.constant 4 : index
    %c2_535 = arith.constant 2 : index
    %893 = memref.load %arg5[%c4_534, %c2_535] : memref<8x4xf32, #tpu.memory_space<smem>>
    %894 = vector.broadcast %893 : f32 to vector<8x16xf32>
    %895 = arith.mulf %894, %795 : vector<8x16xf32>
    %896 = arith.addf %892, %895 : vector<8x16xf32>
    %c4_536 = arith.constant 4 : index
    %c3_537 = arith.constant 3 : index
    %897 = memref.load %arg5[%c4_536, %c3_537] : memref<8x4xf32, #tpu.memory_space<smem>>
    %898 = vector.broadcast %897 : f32 to vector<8x16xf32>
    %899 = arith.mulf %898, %802 : vector<8x16xf32>
    %900 = arith.addf %896, %899 : vector<8x16xf32>
    %cst_538 = arith.constant 0.000000e+00 : f32
    %901 = vector.broadcast %cst_538 : f32 to vector<8x16xf32>
    %902 = arith.maximumf %900, %901 : vector<8x16xf32>
    %c5_539 = arith.constant 5 : index
    %903 = memref.load %arg6[%c5_539] : memref<8xf32, #tpu.memory_space<smem>>
    %c5_540 = arith.constant 5 : index
    %c0_541 = arith.constant 0 : index
    %904 = memref.load %arg5[%c5_540, %c0_541] : memref<8x4xf32, #tpu.memory_space<smem>>
    %905 = vector.broadcast %904 : f32 to vector<8x16xf32>
    %906 = arith.mulf %905, %781 : vector<8x16xf32>
    %907 = vector.broadcast %903 : f32 to vector<8x16xf32>
    %908 = arith.addf %907, %906 : vector<8x16xf32>
    %c5_542 = arith.constant 5 : index
    %c1_543 = arith.constant 1 : index
    %909 = memref.load %arg5[%c5_542, %c1_543] : memref<8x4xf32, #tpu.memory_space<smem>>
    %910 = vector.broadcast %909 : f32 to vector<8x16xf32>
    %911 = arith.mulf %910, %788 : vector<8x16xf32>
    %912 = arith.addf %908, %911 : vector<8x16xf32>
    %c5_544 = arith.constant 5 : index
    %c2_545 = arith.constant 2 : index
    %913 = memref.load %arg5[%c5_544, %c2_545] : memref<8x4xf32, #tpu.memory_space<smem>>
    %914 = vector.broadcast %913 : f32 to vector<8x16xf32>
    %915 = arith.mulf %914, %795 : vector<8x16xf32>
    %916 = arith.addf %912, %915 : vector<8x16xf32>
    %c5_546 = arith.constant 5 : index
    %c3_547 = arith.constant 3 : index
    %917 = memref.load %arg5[%c5_546, %c3_547] : memref<8x4xf32, #tpu.memory_space<smem>>
    %918 = vector.broadcast %917 : f32 to vector<8x16xf32>
    %919 = arith.mulf %918, %802 : vector<8x16xf32>
    %920 = arith.addf %916, %919 : vector<8x16xf32>
    %cst_548 = arith.constant 0.000000e+00 : f32
    %921 = vector.broadcast %cst_548 : f32 to vector<8x16xf32>
    %922 = arith.maximumf %920, %921 : vector<8x16xf32>
    %c6_549 = arith.constant 6 : index
    %923 = memref.load %arg6[%c6_549] : memref<8xf32, #tpu.memory_space<smem>>
    %c6_550 = arith.constant 6 : index
    %c0_551 = arith.constant 0 : index
    %924 = memref.load %arg5[%c6_550, %c0_551] : memref<8x4xf32, #tpu.memory_space<smem>>
    %925 = vector.broadcast %924 : f32 to vector<8x16xf32>
    %926 = arith.mulf %925, %781 : vector<8x16xf32>
    %927 = vector.broadcast %923 : f32 to vector<8x16xf32>
    %928 = arith.addf %927, %926 : vector<8x16xf32>
    %c6_552 = arith.constant 6 : index
    %c1_553 = arith.constant 1 : index
    %929 = memref.load %arg5[%c6_552, %c1_553] : memref<8x4xf32, #tpu.memory_space<smem>>
    %930 = vector.broadcast %929 : f32 to vector<8x16xf32>
    %931 = arith.mulf %930, %788 : vector<8x16xf32>
    %932 = arith.addf %928, %931 : vector<8x16xf32>
    %c6_554 = arith.constant 6 : index
    %c2_555 = arith.constant 2 : index
    %933 = memref.load %arg5[%c6_554, %c2_555] : memref<8x4xf32, #tpu.memory_space<smem>>
    %934 = vector.broadcast %933 : f32 to vector<8x16xf32>
    %935 = arith.mulf %934, %795 : vector<8x16xf32>
    %936 = arith.addf %932, %935 : vector<8x16xf32>
    %c6_556 = arith.constant 6 : index
    %c3_557 = arith.constant 3 : index
    %937 = memref.load %arg5[%c6_556, %c3_557] : memref<8x4xf32, #tpu.memory_space<smem>>
    %938 = vector.broadcast %937 : f32 to vector<8x16xf32>
    %939 = arith.mulf %938, %802 : vector<8x16xf32>
    %940 = arith.addf %936, %939 : vector<8x16xf32>
    %cst_558 = arith.constant 0.000000e+00 : f32
    %941 = vector.broadcast %cst_558 : f32 to vector<8x16xf32>
    %942 = arith.maximumf %940, %941 : vector<8x16xf32>
    %c7_559 = arith.constant 7 : index
    %943 = memref.load %arg6[%c7_559] : memref<8xf32, #tpu.memory_space<smem>>
    %c7_560 = arith.constant 7 : index
    %c0_561 = arith.constant 0 : index
    %944 = memref.load %arg5[%c7_560, %c0_561] : memref<8x4xf32, #tpu.memory_space<smem>>
    %945 = vector.broadcast %944 : f32 to vector<8x16xf32>
    %946 = arith.mulf %945, %781 : vector<8x16xf32>
    %947 = vector.broadcast %943 : f32 to vector<8x16xf32>
    %948 = arith.addf %947, %946 : vector<8x16xf32>
    %c7_562 = arith.constant 7 : index
    %c1_563 = arith.constant 1 : index
    %949 = memref.load %arg5[%c7_562, %c1_563] : memref<8x4xf32, #tpu.memory_space<smem>>
    %950 = vector.broadcast %949 : f32 to vector<8x16xf32>
    %951 = arith.mulf %950, %788 : vector<8x16xf32>
    %952 = arith.addf %948, %951 : vector<8x16xf32>
    %c7_564 = arith.constant 7 : index
    %c2_565 = arith.constant 2 : index
    %953 = memref.load %arg5[%c7_564, %c2_565] : memref<8x4xf32, #tpu.memory_space<smem>>
    %954 = vector.broadcast %953 : f32 to vector<8x16xf32>
    %955 = arith.mulf %954, %795 : vector<8x16xf32>
    %956 = arith.addf %952, %955 : vector<8x16xf32>
    %c7_566 = arith.constant 7 : index
    %c3_567 = arith.constant 3 : index
    %957 = memref.load %arg5[%c7_566, %c3_567] : memref<8x4xf32, #tpu.memory_space<smem>>
    %958 = vector.broadcast %957 : f32 to vector<8x16xf32>
    %959 = arith.mulf %958, %802 : vector<8x16xf32>
    %960 = arith.addf %956, %959 : vector<8x16xf32>
    %cst_568 = arith.constant 0.000000e+00 : f32
    %961 = vector.broadcast %cst_568 : f32 to vector<8x16xf32>
    %962 = arith.maximumf %960, %961 : vector<8x16xf32>
    %c0_569 = arith.constant 0 : index
    %963 = memref.load %arg8[%c0_569] : memref<4xf32, #tpu.memory_space<smem>>
    %964 = vector.broadcast %963 : f32 to vector<8x16xf32>
    %965 = arith.addf %781, %964 : vector<8x16xf32>
    %c0_570 = arith.constant 0 : index
    %c0_571 = arith.constant 0 : index
    %966 = memref.load %arg7[%c0_570, %c0_571] : memref<4x8xf32, #tpu.memory_space<smem>>
    %967 = vector.broadcast %966 : f32 to vector<8x16xf32>
    %968 = arith.mulf %967, %822 : vector<8x16xf32>
    %969 = arith.addf %965, %968 : vector<8x16xf32>
    %c0_572 = arith.constant 0 : index
    %c1_573 = arith.constant 1 : index
    %970 = memref.load %arg7[%c0_572, %c1_573] : memref<4x8xf32, #tpu.memory_space<smem>>
    %971 = vector.broadcast %970 : f32 to vector<8x16xf32>
    %972 = arith.mulf %971, %842 : vector<8x16xf32>
    %973 = arith.addf %969, %972 : vector<8x16xf32>
    %c0_574 = arith.constant 0 : index
    %c2_575 = arith.constant 2 : index
    %974 = memref.load %arg7[%c0_574, %c2_575] : memref<4x8xf32, #tpu.memory_space<smem>>
    %975 = vector.broadcast %974 : f32 to vector<8x16xf32>
    %976 = arith.mulf %975, %862 : vector<8x16xf32>
    %977 = arith.addf %973, %976 : vector<8x16xf32>
    %c0_576 = arith.constant 0 : index
    %c3_577 = arith.constant 3 : index
    %978 = memref.load %arg7[%c0_576, %c3_577] : memref<4x8xf32, #tpu.memory_space<smem>>
    %979 = vector.broadcast %978 : f32 to vector<8x16xf32>
    %980 = arith.mulf %979, %882 : vector<8x16xf32>
    %981 = arith.addf %977, %980 : vector<8x16xf32>
    %c0_578 = arith.constant 0 : index
    %c4_579 = arith.constant 4 : index
    %982 = memref.load %arg7[%c0_578, %c4_579] : memref<4x8xf32, #tpu.memory_space<smem>>
    %983 = vector.broadcast %982 : f32 to vector<8x16xf32>
    %984 = arith.mulf %983, %902 : vector<8x16xf32>
    %985 = arith.addf %981, %984 : vector<8x16xf32>
    %c0_580 = arith.constant 0 : index
    %c5_581 = arith.constant 5 : index
    %986 = memref.load %arg7[%c0_580, %c5_581] : memref<4x8xf32, #tpu.memory_space<smem>>
    %987 = vector.broadcast %986 : f32 to vector<8x16xf32>
    %988 = arith.mulf %987, %922 : vector<8x16xf32>
    %989 = arith.addf %985, %988 : vector<8x16xf32>
    %c0_582 = arith.constant 0 : index
    %c6_583 = arith.constant 6 : index
    %990 = memref.load %arg7[%c0_582, %c6_583] : memref<4x8xf32, #tpu.memory_space<smem>>
    %991 = vector.broadcast %990 : f32 to vector<8x16xf32>
    %992 = arith.mulf %991, %942 : vector<8x16xf32>
    %993 = arith.addf %989, %992 : vector<8x16xf32>
    %c0_584 = arith.constant 0 : index
    %c7_585 = arith.constant 7 : index
    %994 = memref.load %arg7[%c0_584, %c7_585] : memref<4x8xf32, #tpu.memory_space<smem>>
    %995 = vector.broadcast %994 : f32 to vector<8x16xf32>
    %996 = arith.mulf %995, %962 : vector<8x16xf32>
    %997 = arith.addf %993, %996 : vector<8x16xf32>
    %c0_586 = arith.constant 0 : index
    %c0_587 = arith.constant 0 : index
    %c0_588 = arith.constant 0 : index
    %998 = vector.load %arg9[%c0_586, %c0_587, %c0_588] : memref<4x8x16xf32, #tpu.memory_space<vmem>>, vector<1x8x16xf32>
    %999 = vector.shape_cast %998 : vector<1x8x16xf32> to vector<8x16xf32>
    %1000 = vector.shape_cast %997 : vector<8x16xf32> to vector<1x8x16xf32>
    tpu.vector_store %arg9[%c0_586, %c0_587, %c0_588], %1000 {strides = array<i32>} : memref<4x8x16xf32, #tpu.memory_space<vmem>>, vector<1x8x16xf32>,
    %c1_589 = arith.constant 1 : index
    %1001 = memref.load %arg8[%c1_589] : memref<4xf32, #tpu.memory_space<smem>>
    %1002 = vector.broadcast %1001 : f32 to vector<8x16xf32>
    %1003 = arith.addf %788, %1002 : vector<8x16xf32>
    %c1_590 = arith.constant 1 : index
    %c0_591 = arith.constant 0 : index
    %1004 = memref.load %arg7[%c1_590, %c0_591] : memref<4x8xf32, #tpu.memory_space<smem>>
    %1005 = vector.broadcast %1004 : f32 to vector<8x16xf32>
    %1006 = arith.mulf %1005, %822 : vector<8x16xf32>
    %1007 = arith.addf %1003, %1006 : vector<8x16xf32>
    %c1_592 = arith.constant 1 : index
    %c1_593 = arith.constant 1 : index
    %1008 = memref.load %arg7[%c1_592, %c1_593] : memref<4x8xf32, #tpu.memory_space<smem>>
    %1009 = vector.broadcast %1008 : f32 to vector<8x16xf32>
    %1010 = arith.mulf %1009, %842 : vector<8x16xf32>
    %1011 = arith.addf %1007, %1010 : vector<8x16xf32>
    %c1_594 = arith.constant 1 : index
    %c2_595 = arith.constant 2 : index
    %1012 = memref.load %arg7[%c1_594, %c2_595] : memref<4x8xf32, #tpu.memory_space<smem>>
    %1013 = vector.broadcast %1012 : f32 to vector<8x16xf32>
    %1014 = arith.mulf %1013, %862 : vector<8x16xf32>
    %1015 = arith.addf %1011, %1014 : vector<8x16xf32>
    %c1_596 = arith.constant 1 : index
    %c3_597 = arith.constant 3 : index
    %1016 = memref.load %arg7[%c1_596, %c3_597] : memref<4x8xf32, #tpu.memory_space<smem>>
    %1017 = vector.broadcast %1016 : f32 to vector<8x16xf32>
    %1018 = arith.mulf %1017, %882 : vector<8x16xf32>
    %1019 = arith.addf %1015, %1018 : vector<8x16xf32>
    %c1_598 = arith.constant 1 : index
    %c4_599 = arith.constant 4 : index
    %1020 = memref.load %arg7[%c1_598, %c4_599] : memref<4x8xf32, #tpu.memory_space<smem>>
    %1021 = vector.broadcast %1020 : f32 to vector<8x16xf32>
    %1022 = arith.mulf %1021, %902 : vector<8x16xf32>
    %1023 = arith.addf %1019, %1022 : vector<8x16xf32>
    %c1_600 = arith.constant 1 : index
    %c5_601 = arith.constant 5 : index
    %1024 = memref.load %arg7[%c1_600, %c5_601] : memref<4x8xf32, #tpu.memory_space<smem>>
    %1025 = vector.broadcast %1024 : f32 to vector<8x16xf32>
    %1026 = arith.mulf %1025, %922 : vector<8x16xf32>
    %1027 = arith.addf %1023, %1026 : vector<8x16xf32>
    %c1_602 = arith.constant 1 : index
    %c6_603 = arith.constant 6 : index
    %1028 = memref.load %arg7[%c1_602, %c6_603] : memref<4x8xf32, #tpu.memory_space<smem>>
    %1029 = vector.broadcast %1028 : f32 to vector<8x16xf32>
    %1030 = arith.mulf %1029, %942 : vector<8x16xf32>
    %1031 = arith.addf %1027, %1030 : vector<8x16xf32>
    %c1_604 = arith.constant 1 : index
    %c7_605 = arith.constant 7 : index
    %1032 = memref.load %arg7[%c1_604, %c7_605] : memref<4x8xf32, #tpu.memory_space<smem>>
    %1033 = vector.broadcast %1032 : f32 to vector<8x16xf32>
    %1034 = arith.mulf %1033, %962 : vector<8x16xf32>
    %1035 = arith.addf %1031, %1034 : vector<8x16xf32>
    %c1_606 = arith.constant 1 : index
    %c0_607 = arith.constant 0 : index
    %c0_608 = arith.constant 0 : index
    %1036 = vector.load %arg9[%c1_606, %c0_607, %c0_608] : memref<4x8x16xf32, #tpu.memory_space<vmem>>, vector<1x8x16xf32>
    %1037 = vector.shape_cast %1036 : vector<1x8x16xf32> to vector<8x16xf32>
    %1038 = vector.shape_cast %1035 : vector<8x16xf32> to vector<1x8x16xf32>
    tpu.vector_store %arg9[%c1_606, %c0_607, %c0_608], %1038 {strides = array<i32>} : memref<4x8x16xf32, #tpu.memory_space<vmem>>, vector<1x8x16xf32>,
    %c2_609 = arith.constant 2 : index
    %1039 = memref.load %arg8[%c2_609] : memref<4xf32, #tpu.memory_space<smem>>
    %1040 = vector.broadcast %1039 : f32 to vector<8x16xf32>
    %1041 = arith.addf %795, %1040 : vector<8x16xf32>
    %c2_610 = arith.constant 2 : index
    %c0_611 = arith.constant 0 : index
    %1042 = memref.load %arg7[%c2_610, %c0_611] : memref<4x8xf32, #tpu.memory_space<smem>>
    %1043 = vector.broadcast %1042 : f32 to vector<8x16xf32>
    %1044 = arith.mulf %1043, %822 : vector<8x16xf32>
    %1045 = arith.addf %1041, %1044 : vector<8x16xf32>
    %c2_612 = arith.constant 2 : index
    %c1_613 = arith.constant 1 : index
    %1046 = memref.load %arg7[%c2_612, %c1_613] : memref<4x8xf32, #tpu.memory_space<smem>>
    %1047 = vector.broadcast %1046 : f32 to vector<8x16xf32>
    %1048 = arith.mulf %1047, %842 : vector<8x16xf32>
    %1049 = arith.addf %1045, %1048 : vector<8x16xf32>
    %c2_614 = arith.constant 2 : index
    %c2_615 = arith.constant 2 : index
    %1050 = memref.load %arg7[%c2_614, %c2_615] : memref<4x8xf32, #tpu.memory_space<smem>>
    %1051 = vector.broadcast %1050 : f32 to vector<8x16xf32>
    %1052 = arith.mulf %1051, %862 : vector<8x16xf32>
    %1053 = arith.addf %1049, %1052 : vector<8x16xf32>
    %c2_616 = arith.constant 2 : index
    %c3_617 = arith.constant 3 : index
    %1054 = memref.load %arg7[%c2_616, %c3_617] : memref<4x8xf32, #tpu.memory_space<smem>>
    %1055 = vector.broadcast %1054 : f32 to vector<8x16xf32>
    %1056 = arith.mulf %1055, %882 : vector<8x16xf32>
    %1057 = arith.addf %1053, %1056 : vector<8x16xf32>
    %c2_618 = arith.constant 2 : index
    %c4_619 = arith.constant 4 : index
    %1058 = memref.load %arg7[%c2_618, %c4_619] : memref<4x8xf32, #tpu.memory_space<smem>>
    %1059 = vector.broadcast %1058 : f32 to vector<8x16xf32>
    %1060 = arith.mulf %1059, %902 : vector<8x16xf32>
    %1061 = arith.addf %1057, %1060 : vector<8x16xf32>
    %c2_620 = arith.constant 2 : index
    %c5_621 = arith.constant 5 : index
    %1062 = memref.load %arg7[%c2_620, %c5_621] : memref<4x8xf32, #tpu.memory_space<smem>>
    %1063 = vector.broadcast %1062 : f32 to vector<8x16xf32>
    %1064 = arith.mulf %1063, %922 : vector<8x16xf32>
    %1065 = arith.addf %1061, %1064 : vector<8x16xf32>
    %c2_622 = arith.constant 2 : index
    %c6_623 = arith.constant 6 : index
    %1066 = memref.load %arg7[%c2_622, %c6_623] : memref<4x8xf32, #tpu.memory_space<smem>>
    %1067 = vector.broadcast %1066 : f32 to vector<8x16xf32>
    %1068 = arith.mulf %1067, %942 : vector<8x16xf32>
    %1069 = arith.addf %1065, %1068 : vector<8x16xf32>
    %c2_624 = arith.constant 2 : index
    %c7_625 = arith.constant 7 : index
    %1070 = memref.load %arg7[%c2_624, %c7_625] : memref<4x8xf32, #tpu.memory_space<smem>>
    %1071 = vector.broadcast %1070 : f32 to vector<8x16xf32>
    %1072 = arith.mulf %1071, %962 : vector<8x16xf32>
    %1073 = arith.addf %1069, %1072 : vector<8x16xf32>
    %c2_626 = arith.constant 2 : index
    %c0_627 = arith.constant 0 : index
    %c0_628 = arith.constant 0 : index
    %1074 = vector.load %arg9[%c2_626, %c0_627, %c0_628] : memref<4x8x16xf32, #tpu.memory_space<vmem>>, vector<1x8x16xf32>
    %1075 = vector.shape_cast %1074 : vector<1x8x16xf32> to vector<8x16xf32>
    %1076 = vector.shape_cast %1073 : vector<8x16xf32> to vector<1x8x16xf32>
    tpu.vector_store %arg9[%c2_626, %c0_627, %c0_628], %1076 {strides = array<i32>} : memref<4x8x16xf32, #tpu.memory_space<vmem>>, vector<1x8x16xf32>,
    %c3_629 = arith.constant 3 : index
    %1077 = memref.load %arg8[%c3_629] : memref<4xf32, #tpu.memory_space<smem>>
    %1078 = vector.broadcast %1077 : f32 to vector<8x16xf32>
    %1079 = arith.addf %802, %1078 : vector<8x16xf32>
    %c3_630 = arith.constant 3 : index
    %c0_631 = arith.constant 0 : index
    %1080 = memref.load %arg7[%c3_630, %c0_631] : memref<4x8xf32, #tpu.memory_space<smem>>
    %1081 = vector.broadcast %1080 : f32 to vector<8x16xf32>
    %1082 = arith.mulf %1081, %822 : vector<8x16xf32>
    %1083 = arith.addf %1079, %1082 : vector<8x16xf32>
    %c3_632 = arith.constant 3 : index
    %c1_633 = arith.constant 1 : index
    %1084 = memref.load %arg7[%c3_632, %c1_633] : memref<4x8xf32, #tpu.memory_space<smem>>
    %1085 = vector.broadcast %1084 : f32 to vector<8x16xf32>
    %1086 = arith.mulf %1085, %842 : vector<8x16xf32>
    %1087 = arith.addf %1083, %1086 : vector<8x16xf32>
    %c3_634 = arith.constant 3 : index
    %c2_635 = arith.constant 2 : index
    %1088 = memref.load %arg7[%c3_634, %c2_635] : memref<4x8xf32, #tpu.memory_space<smem>>
    %1089 = vector.broadcast %1088 : f32 to vector<8x16xf32>
    %1090 = arith.mulf %1089, %862 : vector<8x16xf32>
    %1091 = arith.addf %1087, %1090 : vector<8x16xf32>
    %c3_636 = arith.constant 3 : index
    %c3_637 = arith.constant 3 : index
    %1092 = memref.load %arg7[%c3_636, %c3_637] : memref<4x8xf32, #tpu.memory_space<smem>>
    %1093 = vector.broadcast %1092 : f32 to vector<8x16xf32>
    %1094 = arith.mulf %1093, %882 : vector<8x16xf32>
    %1095 = arith.addf %1091, %1094 : vector<8x16xf32>
    %c3_638 = arith.constant 3 : index
    %c4_639 = arith.constant 4 : index
    %1096 = memref.load %arg7[%c3_638, %c4_639] : memref<4x8xf32, #tpu.memory_space<smem>>
    %1097 = vector.broadcast %1096 : f32 to vector<8x16xf32>
    %1098 = arith.mulf %1097, %902 : vector<8x16xf32>
    %1099 = arith.addf %1095, %1098 : vector<8x16xf32>
    %c3_640 = arith.constant 3 : index
    %c5_641 = arith.constant 5 : index
    %1100 = memref.load %arg7[%c3_640, %c5_641] : memref<4x8xf32, #tpu.memory_space<smem>>
    %1101 = vector.broadcast %1100 : f32 to vector<8x16xf32>
    %1102 = arith.mulf %1101, %922 : vector<8x16xf32>
    %1103 = arith.addf %1099, %1102 : vector<8x16xf32>
    %c3_642 = arith.constant 3 : index
    %c6_643 = arith.constant 6 : index
    %1104 = memref.load %arg7[%c3_642, %c6_643] : memref<4x8xf32, #tpu.memory_space<smem>>
    %1105 = vector.broadcast %1104 : f32 to vector<8x16xf32>
    %1106 = arith.mulf %1105, %942 : vector<8x16xf32>
    %1107 = arith.addf %1103, %1106 : vector<8x16xf32>
    %c3_644 = arith.constant 3 : index
    %c7_645 = arith.constant 7 : index
    %1108 = memref.load %arg7[%c3_644, %c7_645] : memref<4x8xf32, #tpu.memory_space<smem>>
    %1109 = vector.broadcast %1108 : f32 to vector<8x16xf32>
    %1110 = arith.mulf %1109, %962 : vector<8x16xf32>
    %1111 = arith.addf %1107, %1110 : vector<8x16xf32>
    %c3_646 = arith.constant 3 : index
    %c0_647 = arith.constant 0 : index
    %c0_648 = arith.constant 0 : index
    %1112 = vector.load %arg9[%c3_646, %c0_647, %c0_648] : memref<4x8x16xf32, #tpu.memory_space<vmem>>, vector<1x8x16xf32>
    %1113 = vector.shape_cast %1112 : vector<1x8x16xf32> to vector<8x16xf32>
    %1114 = vector.shape_cast %1111 : vector<8x16xf32> to vector<1x8x16xf32>
    tpu.vector_store %arg9[%c3_646, %c0_647, %c0_648], %1114 {strides = array<i32>} : memref<4x8x16xf32, #tpu.memory_space<vmem>>, vector<1x8x16xf32>,
    return
  }
  func.func @transform_0(%arg0: i32) -> (i32, i32, i32) {
    %c0_i32 = arith.constant 0 : i32
    %c0_i32_0 = arith.constant 0 : i32
    %c0_i32_1 = arith.constant 0 : i32
    return %c0_i32, %arg0, %c0_i32_0 : i32, i32, i32
  }
  func.func @transform_1(%arg0: i32) -> (i32, i32, i32) {
    %c0_i32 = arith.constant 0 : i32
    %c0_i32_0 = arith.constant 0 : i32
    %c0_i32_1 = arith.constant 0 : i32
    return %c0_i32, %arg0, %c0_i32_0 : i32, i32, i32
  }
  func.func @transform_2(%arg0: i32) -> (i32, i32) {
    %c0_i32 = arith.constant 0 : i32
    %c0_i32_0 = arith.constant 0 : i32
    return %arg0, %c0_i32 : i32, i32
  }
  func.func @transform_3(%arg0: i32) -> (i32, i32) {
    %c0_i32 = arith.constant 0 : i32
    %c0_i32_0 = arith.constant 0 : i32
    return %arg0, %c0_i32 : i32, i32
  }
  func.func @transform_4(%arg0: i32) -> (i32, i32) {
    %c0_i32 = arith.constant 0 : i32
    %c0_i32_0 = arith.constant 0 : i32
    %c0_i32_1 = arith.constant 0 : i32
    return %c0_i32, %c0_i32_0 : i32, i32
  }
  func.func @transform_5(%arg0: i32) -> i32 {
    %c0_i32 = arith.constant 0 : i32
    %c0_i32_0 = arith.constant 0 : i32
    return %c0_i32 : i32
  }
  func.func @transform_6(%arg0: i32) -> (i32, i32) {
    %c0_i32 = arith.constant 0 : i32
    %c0_i32_0 = arith.constant 0 : i32
    %c0_i32_1 = arith.constant 0 : i32
    return %c0_i32, %c0_i32_0 : i32, i32
  }
  func.func @transform_7(%arg0: i32) -> i32 {
    %c0_i32 = arith.constant 0 : i32
    %c0_i32_0 = arith.constant 0 : i32
    return %c0_i32 : i32
  }
  func.func @transform_8(%arg0: i32) -> (i32, i32, i32) {
    %c0_i32 = arith.constant 0 : i32
    %c0_i32_0 = arith.constant 0 : i32
    %c0_i32_1 = arith.constant 0 : i32
    return %c0_i32, %arg0, %c0_i32_0 : i32, i32, i32
  }
}

</mosaic_0001>

<bundles_post_ra>
// kernel: tpu_custom_call.1
= control target key start
LH: loop header
LB: loop body
LE: loop exit
PB: predicated region body
PF: predicated region fallthrough
CT: control target
= control target key end

     0   :  { %s4347_s0 = inlined_call_operand.hbm [shape: f32[4,16,128], index: 0, kind: input, shape index: {}]   ;;  %s4348_s1 = inlined_call_operand.hbm [shape: f32[4,16,128], index: 1, kind: input, shape index: {}]   ;;  %s4349_s2 = inlined_call_operand.vmem [shape: f32[16,128], index: 2, kind: input, shape index: {}]   ;;  %s4350_s3 = inlined_call_operand.hbm [shape: f32[16,128], index: 3, kind: input, shape index: {}]   ;;  %s4351_s4 = inlined_call_operand.vmem [shape: f32[8,4], index: 4, kind: input, shape index: {}]   ;;  %s4352_s5 = inlined_call_operand.vmem [shape: f32[8], index: 5, kind: input, shape index: {}]   ;;  %s4353_s6 = inlined_call_operand.vmem [shape: f32[4,8], index: 6, kind: input, shape index: {}]   ;;  %s4354_s7 = inlined_call_operand.vmem [shape: f32[4], index: 7, kind: input, shape index: {}]   ;;  %s4355_s8 = inlined_call_operand.hbm [shape: f32[4,16,16], index: 8, kind: output, shape index: {}]  }
   0x1   :  { %4505 = sst [smem:[#allocation89_spill]] %s4347_s0 }
   0x2   :  { %4506 = sst [smem:[#allocation90_spill]] %s4348_s1 }
   0x3   :  { %4507 = sst [smem:[#allocation91_spill]] %s4349_s2 }
   0x4   :  { %4508 = sst [smem:[#allocation92_spill]] %s4350_s3 }
   0x5   :  { %4509 = sst [smem:[#allocation93_spill]] %s4351_s4 }
   0x6   :  { %4510 = sst [smem:[#allocation94_spill]] %s4352_s5 }
   0x7   :  { %4511 = sst [smem:[#allocation95_spill]] %s4353_s6 }
   0x8   :  { %4512 = sst [smem:[#allocation96_spill]] %s4354_s7 }
   0x9   :  { %4513 = sst [smem:[#allocation97_spill]] %s4355_s8 }
   0xa   :  { %13 = vsyncpa [#allocation5], 0 }
   0xb   :  { %15 = vsyncpa [#allocation5 + $0x1], 0 }
   0xc   :  { %16 = vsyncpa [#allocation9], 0 }
   0xd   :  { %18 = vsyncpa [#allocation9 + $0x1], 0 }
   0xe   :  { %19 = vsyncpa [#allocation7], 0 }
   0xf   :  { %20 = vsyncpa [#allocation13], 0 }
  0x10   :  { %21 = vsyncpa [#allocation16], 0 }
  0x11   :  { %22 = vsyncpa [#allocation6], 0 }
  0x12   :  { %24 = vsyncpa [#allocation6 + $0x1], 0  ;;  %s2926_s27 = smov 0   ;;  %s2928_s28 = smov 0  }
  0x13   :  { %s2930_s29 = smov 0   ;;  %s2932_s30 = smov 0  }
  0x14 LB: > { %4514 = sst [smem:[#allocation24_spill]] %s2846_s27  ;;  %s2947_s9 = sadd.s32 4294967295, %s2858_s30   ;;  %s2858_s30 = sphi %s2932_s30, %s4739_s30   ;;  %s2854_s29 = sphi %s2930_s29, %s4742_s29   ;;  %s2850_s28 = sphi %s2928_s28, %s4741_s28   ;;  %s2846_s27 = sphi %s2926_s27, %s4740_s27  }
  0x15   : > { %4515 = sst [smem:[#allocation25_spill]] %s2850_s28  ;;  %s2255_s10 = sadd.s32 4294967294, %s2858_s30  }
  0x16   : > { %4516 = sst [smem:[#allocation26_spill]] %s2854_s29  ;;  %p50_p0 = scmp.ne.s32.totalorder %s2850_s28, %s2846_s27 }
  0x17   : > { %4517 = sst [smem:[#allocation27_spill]] %s2858_s30  ;;  %p4356_p1 = scmp.eq.s32.totalorder %s2947_s9, 0 }
  0x18   : > { %4518 = sst [smem:[#allocation28_spill]] %s2947_s9  ;;  %p242_p3 = scmp.eq.s32.totalorder %s2255_s10, 1 }
  0x19   : > { %p2956_p4 = por %p4356_p1, %p50_p0  ;;  %p2256_p5 = scmp.ge.s32.totalorder %s2858_s30, 1 }
  0x1a   : > { %p2961_p6 = por %p242_p3, %p50_p0  ;;  %p249_p7 = scmp.lt.s32.totalorder %s2858_s30, 3 }
  0x1b   : > { %s4519_s11 = scalar_select %p2956_p4, 1, 0 }
  0x1c   : > { %s4520_s12 = scalar_select %p2961_p6, 1, 0 }
  0x1d   : > { %s4522_s5 = sld [smem:[#allocation94_spill]]  ;;  %p2969_p8 = pnand %p2256_p5, %p249_p7 }
  0x1e   : > { %4521 = sst [smem:[#allocation29_spill]] %s4520_s12  ;;  %s2977_s17 = sadd.s32 1, %s2858_s30  }
  0x1f   : > { %s4523_s16 = scalar_select %p2969_p8, 1, 0 }
  0x20   : > { %p2540_p10 = pneg %p2969_p8  ;;  %4524 = sst [smem:[#allocation30_spill]] %s2977_s17 }
  0x21   : > { %s34_s19 = ssub.s32 %s2858_s30, %s2977_s17  ;;  %s37_s21 = sadd.s32 1, %s2854_s29 }
  0x22   : > { %p2981_p11 = pnand %p2540_p10, %p4356_p1  ;;  %p2987_p12 = scmp.eq.s32.totalorder %s34_s19, 0 }
  0x23   : > { %s273_s15 = sshll.u32 %s4522_s5, 4  ;;  %p44_p13 = scmp.ne.s32.totalorder %s2854_s29, %s2850_s28  ;;  %s274_s15 = int_to_ptr.vmem [resolvable:$true] %s273_s15 }
  0x24   : > { %s4525_s18 = scalar_select %p2981_p11, 1, 0 }
  0x25   : > { %s2626_s22 = scalar_lea.vmem %s274_s15, 16  ;;  %p4361_p3 = pneg %p2981_p11 }
  0x26   : > { %p2627_p0 = scmp.ne.s32.totalorder %s274_s15, %s2626_s22  ;;  %p2634_p10 = scmp.lt.s32.totalorder %s274_s15, %s274_s15 }
  0x27   : > { %p2635_p9 = scmp.lt.s32.totalorder %s2626_s22, %s2626_s22 }
  0x28   : > { %p2629_p5 = pnand %p4361_p3, %p2627_p0 }
  0x29   : > { %p2636_p1 = por %p2635_p9, %p2634_p10 }
  0x2a   : > { %p2630_p7 = pneg %p2629_p5 }
  0x2c   : > { %p2637_p2 = pnand %p2636_p1, %p2630_p7 }
  0x2e   : > { %2640 = shalt.err (!%p2637_p2)
}
  0x2f   : > { %s2860_s23 = smov [#allocation12]   ;;  %p45_p1 = scmp.eq.s32.totalorder %s2858_s30, 0 }
  0x30   : > { %2546 = dma.vmem_to_smem (!%p2981_p11), %s274_s15, 16, %s2860_s23, [#allocation13]  }
  0x31   : > { %s3004_s24 = scalar_select %p2987_p12, %s2854_s29, %s37_s21  }
  0x32   : > { %p4528_p2 = scmp.eq.s32.totalorder %s2947_s9, 1  ;;  %p2571_p0 = scmp.lt.s32.totalorder %s2858_s30, 2 }
  0x33   : > { %4527 = sst [smem:[#allocation31_spill]] %s3004_s24  ;;  %s3018_s26 = sand.u32 1, %s2854_s29  }
  0x34   : > { %p3012_p9 = por %p4528_p2, %p44_p13  ;;  %p46_p5 = por %p45_p1, %p44_p13 }
  0x35   : > { %s4360_s10 = sshll.u32 %s3018_s26, 5  ;;  %s3025_s13 = sshll.u32 %s2858_s30, 7 }
  0x36   : > { %s4529_s25 = scalar_select %p3012_p9, 1, 0 }
  0x37   : > { %p3027_p12 = pnand %p2571_p0, %p46_p5  ;;  %s326_s15 = sand.u32 1, %s2858_s30  }
  0x38   : > { %4530 = sst [smem:[#allocation32_spill]] %s4529_s25  ;;  %s330_s22 = scalar_lea.vmem [#allocation8], %s4360_s10 }
  0x39   : > { %s4531_s14 = scalar_select %p3027_p12, 1, 0 }
  0x3a   : > { %s4532_s1 = sld [smem:[#allocation90_spill]]  ;;  %s336_s23 = sshll.u32 %s330_s22, 4  ;;  %s3043_s23 = int_to_ptr.vmem [resolvable:$true] %s336_s23 }
  0x3b   : > { %s4533_s4 = sld [smem:[#allocation93_spill]]  ;;  %s3047_s17 = scalar_lea.sflag [#allocation9], %s326_s15 }
  0x3c   : > { %p3053_p7 = pneg %p3027_p12 }
  0x3e   : > { %s4534_s20 = scalar_select %p3053_p7, 1, 0 }
  0x40   : > { %s3036_s21 = scalar_lea.hbm %s4532_s1, %s3025_s13  ;;  %s2646_s24 = scalar_lea.hbm %s4532_s1, 1024 }
  0x41   : > { %s262_s29 = sshll.u32 %s4533_s4, 4  ;;  %s2641_s19 = scalar_lea.hbm %s3036_s21, 512  ;;  %s3045_s29 = int_to_ptr.vmem [resolvable:$true] %s262_s29 }
  0x42   : > { %p2642_p13 = scmp.ne.s32.totalorder %s3036_s21, %s2641_s19  ;;  %p2647_p2 = scmp.lt.u32.totalorder %s3036_s21, %s4532_s1 }
  0x43   : > { %p2648_p0 = scmp.lt.u32.totalorder %s2646_s24, %s2641_s19  ;;  %p2650_p3 = scmp.lt.u32.totalorder %s2641_s19, %s3036_s21 }
  0x44   : > { %p2644_p10 = pnand %p3053_p7, %p2642_p13 }
  0x45   : > { %p2649_p5 = por %p2648_p0, %p2647_p2 }
  0x46   : > { %p2645_p1 = pneg %p2644_p10 }
  0x47   : > { %p2651_p6 = por %p2650_p3, %p2649_p5 }
  0x49   : > { %p2652_p9 = pnand %p2651_p6, %p2645_p1 }
  0x4b   : > { %2655 = shalt.err (!%p2652_p9)
}
  0x4c   : > { %s2656_s15 = scalar_lea.vmem %s3043_s23, 512  ;;  %s2861_s22 = smov [#allocation8]  }
  0x4d   : > { %p2657_p13 = scmp.ne.s32.totalorder %s3043_s23, %s2656_s15  ;;  %s2661_s5 = sshll.u32 %s2861_s22, 4  ;;  %s2662_s5 = int_to_ptr.vmem [resolvable:$false] %s2661_s5 }
  0x4e   : > { %s2663_s4 = scalar_lea.vmem %s2662_s5, 1024  ;;  %p2664_p8 = scmp.lt.s32.totalorder %s3043_s23, %s2662_s5 }
  0x4f   : > { %p2659_p10 = pnand %p2657_p13, %p3053_p7  ;;  %p2665_p11 = scmp.lt.s32.totalorder %s2663_s4, %s2656_s15 }
  0x51   : > { %p2660_p4 = pneg %p2659_p10  ;;  %p2666_p2 = por %p2665_p11, %p2664_p8 }
  0x53   : > { %p2667_p0 = pnand %p2666_p2, %p2660_p4 }
  0x55   : > { %2670 = shalt.err (!%p2667_p0)
}
  0x56   : > { %s4371_s10 = smov 256   ;;  %s4372_s19 = smov 128  }
  0x57   : > { %s4373_s24 = smov 8   ;;  %s4535_s6 = sld [smem:[#allocation95_spill]] }
  0x58   : > { %2559 = dma.hbm_to_vmem [thread:$0]  (!%p3027_p12), %s3036_s21, 512, %s3043_s23, %s3047_s17, %s4371_s10, %s4372_s19, %s4373_s24  }
  0x59   : > { %s2671_s4 = scalar_lea.vmem %s3045_s29, 128  ;;  %p4536_p6 = scmp.ne.s32.totalorder %s4525_s18, 0 }
  0x5a   : > { %p2672_p4 = scmp.ne.s32.totalorder %s3045_s29, %s2671_s4  ;;  %p2679_p9 = scmp.lt.s32.totalorder %s3045_s29, %s3045_s29 }
  0x5b   : > { %p4537_p8 = pneg %p4536_p6  ;;  %p2680_p1 = scmp.lt.s32.totalorder %s2671_s4, %s2671_s4 }
  0x5d   : > { %s284_s5 = sshll.u32 %s4535_s6, 4  ;;  %p2674_p11 = pnand %p2672_p4, %p4537_p8  ;;  %s285_s5 = int_to_ptr.vmem [resolvable:$true] %s284_s5 }
  0x5e   : > { %p2681_p5 = por %p2680_p1, %p2679_p9 }
  0x5f   : > { %p2675_p3 = pneg %p2674_p11 }
  0x61   : > { %p2682_p13 = pnand %p2681_p5, %p2675_p3 }
  0x63   : > { %2685 = shalt.err (!%p2682_p13)
}
  0x64   : > { %s2865_s1 = smov [#allocation11]   ;;  %s2686_s21 = scalar_lea.vmem %s285_s5, 64 }
  0x65   : > { %2543 = dma.vmem_to_smem (!%p4536_p6), %s3045_s29, 128, %s2865_s1, [#allocation7]  }
  0x66   : > { %p2687_p10 = scmp.ne.s32.totalorder %s285_s5, %s2686_s21  ;;  %p4538_p2 = pmov %p4537_p8 }
  0x67   : > { %p2694_p8 = scmp.lt.s32.totalorder %s285_s5, %s285_s5  ;;  %p2695_p11 = scmp.lt.s32.totalorder %s2686_s21, %s2686_s21 }
  0x68   : > { %p2689_p0 = pnand %p2687_p10, %p4538_p2 }
  0x69   : > { %p2696_p12 = por %p2695_p11, %p2694_p8 }
  0x6a   : > { %p2690_p4 = pneg %p2689_p0 }
  0x6c   : > { %p2697_p7 = pnand %p2696_p12, %p2690_p4 }
  0x6e   : > { %2700 = shalt.err (!%p2697_p7)
}
  0x6f   : > { %s2866_s23 = smov [#allocation14]   ;;  %s4539_s7 = sld [smem:[#allocation96_spill]] }
  0x70   : > { %2549 = dma.vmem_to_smem (!%p4536_p6), %s285_s5, 64, %s2866_s23, [#allocation13]  }
  0x71   : > { %p4540_p9 = pmov %p4538_p2 }
  0x75   : > { %s295_s1 = sshll.u32 %s4539_s7, 4  ;;  %s296_s1 = int_to_ptr.vmem [resolvable:$true] %s295_s1 }
  0x76   : > { %s2701_s29 = scalar_lea.vmem %s296_s1, 16  ;;  %p2709_p13 = scmp.lt.s32.totalorder %s296_s1, %s296_s1 }
  0x77   : > { %p2702_p3 = scmp.ne.s32.totalorder %s296_s1, %s2701_s29  ;;  %p2710_p10 = scmp.lt.s32.totalorder %s2701_s29, %s2701_s29 }
  0x79   : > { %p2704_p1 = pnand %p2702_p3, %p4540_p9  ;;  %p2711_p12 = por %p2710_p10, %p2709_p13 }
  0x7b   : > { %p2705_p5 = pneg %p2704_p1 }
  0x7d   : > { %p2712_p7 = pnand %p2711_p12, %p2705_p5 }
  0x7f   : > { %2715 = shalt.err (!%p2712_p7)
}
  0x80   : > { %s2867_s4 = smov [#allocation15]   ;;  %s4541_s0 = sld [smem:[#allocation89_spill]] }
  0x81   : > { %2552 = dma.vmem_to_smem (!%p4536_p6), %s296_s1, 16, %s2867_s4, [#allocation16]  }
  0x82   : > { %s4542_s15 = sshll.u32 %s3018_s26, 5  ;;  %s2266_s10 = sshll.u32 %s3018_s26, 3 }
  0x83   : > { %s310_s22 = scalar_lea.vmem [#allocation4], %s4542_s15  ;;  %s307_s18 = scalar_lea.sflag [#allocation5], %s3018_s26 }
  0x84   : > { %s316_s29 = sshll.u32 %s310_s22, 4  ;;  %p4543_p0 = scmp.ne.s32.totalorder %s4534_s20, 0  ;;  %s3115_s29 = int_to_ptr.vmem [resolvable:$true] %s316_s29 }
  0x86   : > { %s3110_s23 = scalar_lea.hbm %s4541_s0, %s3025_s13  ;;  %s2721_s5 = scalar_lea.hbm %s4541_s0, 1024 }
  0x87   : > { %s2716_s19 = scalar_lea.hbm %s3110_s23, 512  ;;  %p2722_p8 = scmp.lt.u32.totalorder %s3110_s23, %s4541_s0 }
  0x88   : > { %p2717_p2 = scmp.ne.s32.totalorder %s3110_s23, %s2716_s19  ;;  %p2723_p11 = scmp.lt.u32.totalorder %s2721_s5, %s2716_s19 }
  0x89   : > { %p2725_p9 = scmp.lt.u32.totalorder %s2716_s19, %s3110_s23 }
  0x8a   : > { %p2719_p6 = pnand %p2717_p2, %p4543_p0  ;;  %p2724_p3 = por %p2723_p11, %p2722_p8 }
  0x8c   : > { %p2720_p4 = pneg %p2719_p6  ;;  %p2726_p1 = por %p2725_p9, %p2724_p3 }
  0x8e   : > { %p2727_p5 = pnand %p2726_p1, %p2720_p4 }
  0x90   : > { %2730 = shalt.err (!%p2727_p5)
}
  0x91   : > { %s2731_s15 = scalar_lea.vmem %s3115_s29, 512  ;;  %s2868_s22 = smov [#allocation4]  }
  0x92   : > { %p2732_p13 = scmp.ne.s32.totalorder %s3115_s29, %s2731_s15  ;;  %s2736_s1 = sshll.u32 %s2868_s22, 4  ;;  %s2737_s1 = int_to_ptr.vmem [resolvable:$false] %s2736_s1 }
  0x93   : > { %s2738_s24 = scalar_lea.vmem %s2737_s1, 1024  ;;  %p2739_p7 = scmp.lt.s32.totalorder %s3115_s29, %s2737_s1 }
  0x94   : > { %p2734_p10 = pnand %p2732_p13, %p4543_p0  ;;  %p2740_p2 = scmp.lt.s32.totalorder %s2738_s24, %s2731_s15 }
  0x96   : > { %p2735_p12 = pneg %p2734_p10  ;;  %p2741_p6 = por %p2740_p2, %p2739_p7 }
  0x98   : > { %p2742_p8 = pnand %p2741_p6, %p2735_p12 }
  0x9a   : > { %2745 = shalt.err (!%p2742_p8)
}
  0x9b   : > { %p4544_p4 = scmp.ne.s32.totalorder %s4531_s14, 0  ;;  %s4545_s19 = smov 8  }
  0x9c   : > { %s4546_s4 = smov 128   ;;  %s4547_s5 = smov 256  }
  0x9d   : > { %2556 = dma.hbm_to_vmem [thread:$0]  (!%p4544_p4), %s3110_s23, 512, %s3115_s29, %s307_s18, %s4547_s5, %s4546_s4, %s4545_s19  }
  0x9e   : > { %s4548_s3 = sld [smem:[#allocation92_spill]]  ;;  %s357_s1 = scalar_lea.vmem [#allocation10], %s2266_s10 }
  0x9f   : > { %s364_s24 = sshll.u32 %s357_s1, 4  ;;  %s365_s24 = int_to_ptr.vmem [resolvable:$true] %s364_s24 }
  0xa4   : > { %s3148_s15 = scalar_lea.hbm %s4548_s3, %s3025_s13  ;;  %s2751_s29 = scalar_lea.hbm %s4548_s3, 256 }
  0xa5   : > { %s2746_s0 = scalar_lea.hbm %s3148_s15, 128  ;;  %p2752_p1 = scmp.lt.u32.totalorder %s3148_s15, %s4548_s3 }
  0xa6   : > { %p2747_p11 = scmp.ne.s32.totalorder %s3148_s15, %s2746_s0  ;;  %p2753_p5 = scmp.lt.u32.totalorder %s2751_s29, %s2746_s0 }
  0xa7   : > { %p2755_p10 = scmp.lt.u32.totalorder %s2746_s0, %s3148_s15 }
  0xa8   : > { %p2749_p3 = pnand %p2747_p11, %p4543_p0  ;;  %p2754_p13 = por %p2753_p5, %p2752_p1 }
  0xaa   : > { %p2750_p9 = pneg %p2749_p3  ;;  %p2756_p12 = por %p2755_p10, %p2754_p13 }
  0xac   : > { %p2757_p7 = pnand %p2756_p12, %p2750_p9 }
  0xae   : > { %2760 = shalt.err (!%p2757_p7)
}
  0xaf   : > { %s2761_s26 = scalar_lea.vmem %s365_s24, 128  ;;  %s2869_s10 = smov [#allocation10]  }
  0xb0   : > { %p2762_p2 = scmp.ne.s32.totalorder %s365_s24, %s2761_s26  ;;  %s2766_s19 = sshll.u32 %s2869_s10, 4  ;;  %s2767_s19 = int_to_ptr.vmem [resolvable:$false] %s2766_s19 }
  0xb1   : > { %s2768_s6 = scalar_lea.vmem %s2767_s19, 256  ;;  %p2769_p11 = scmp.lt.s32.totalorder %s365_s24, %s2767_s19 }
  0xb2   : > { %p2764_p6 = pnand %p2762_p2, %p4543_p0  ;;  %p2770_p3 = scmp.lt.s32.totalorder %s2768_s6, %s2761_s26 }
  0xb4   : > { %p2765_p8 = pneg %p2764_p6  ;;  %p2771_p4 = por %p2770_p3, %p2769_p11 }
  0xb6   : > { %p2772_p1 = pnand %p2771_p4, %p2765_p8 }
  0xb8   : > { %2775 = shalt.err (!%p2772_p1)
}
  0xb9   : > { %p4549_p5 = scmp.ne.s32.totalorder %s4531_s14, 0  ;;  %p4550_p9 = scmp.ne.s32.totalorder %s4523_s16, 0 }
  0xbb   : > { %2562 = dma.hbm_to_vmem [thread:$0]  (!%p4549_p5), %s3148_s15, 128, %s365_s24, %s3047_s17  }
  0xbc   : > { %373 = sbr.rel (%p4550_p9) target bundleno = 1292 (0x50c), region = 52 }
  0xc3   : > { %s3173_s0 = sand.u32 1, %s2850_s28   ;;  %p4553_p0 = scmp.ne.s32.totalorder %s4519_s11, 0 }
  0xc4   : > { %4551 = sst [smem:[#allocation33_spill]] %s3173_s0  ;;  %s3176_s20 = sshll.u32 %s3173_s0, 5 }
  0xc5   : > { %4552 = sst [smem:[#allocation34_spill]] %s3176_s20  ;;  %s376_s4 = scalar_lea.sflag [#allocation5], %s3173_s0 }
  0xc6   : > { %s379_s5 = scalar_lea.vmem [#allocation4], %s3176_s20 }
  0xc7   : > { %2821 = dma.done.wait (%p4553_p0), %s376_s4, 512  }
  0xc8   : > { %2823 = vsyncadd (%p4553_p0), %s376_s4, 4294966784  ;;  %s384_s16 = sand.u32 1, %s2947_s9   ;;  %s3186_s14 = scalar_lea.vmem [#allocation8], %s3176_s20 }
  0xc9   : > { %s385_s17 = scalar_lea.sflag [#allocation9], %s384_s16  ;;  %4554 = sst [smem:[#allocation35_spill]] %s3186_s14 }
  0xca   : > { %2825 = dma.done.wait (%p4553_p0), %s385_s17, 640  }
  0xcb   : > { %2827 = vsyncadd (%p4553_p0), %s385_s17, 4294966656  ;;  %s2271_s21 = sshll.u32 %s3173_s0, 3  ;;  %p4555_p4 = scmp.eq.s32.totalorder %s2947_s9, 0 }
  0xcc   : > { %s397_s22 = scalar_lea.vmem [#allocation10], %s2271_s21 }
  0xcd   : > { %2829 = dma.done.wait (%p4555_p4), [#allocation7], 128   ;;  %p4556_p13 = pmov %p4555_p4 }
  0xce   : > { %p4557_p10 = pmov %p4555_p4 }
  0xcf   : > { %2831 = vsyncadd (%p4556_p13), [#allocation7], 4294967168 }
  0xd0   : > { %2833 = dma.done.wait (%p4557_p10), [#allocation13], 80   ;;  %p4558_p12 = pmov %p4555_p4 }
  0xd1   : > { %p4559_p7 = pmov %p4555_p4 }
  0xd2   : > { %2835 = vsyncadd (%p4558_p12), [#allocation13], 4294967216 }
  0xd3   : > { %2837 = dma.done.wait (%p4559_p7), [#allocation16], 16   ;;  %p4560_p2 = pmov %p4555_p4 }
  0xd5   : > { %2839 = vsyncadd (%p4560_p2), [#allocation16], 4294967280 }
  0xd6   : > { %418 = sfence }
  0xd7   : > { %p461_p6 = scmp.lt.s32.totalorder %s2947_s9, 1  ;;  %v465_v0 = vld [vmem:[%s379_s5] sm:$0xff]  ;;  %v466_v1 = vld [vmem:[%s379_s5 + $0x8] sm:$0xff]  ;;  %v467_v2 = vld [vmem:[%s379_s5 + $0x10] sm:$0xff]  ;;  %s4561_s2 = sld [smem:[#allocation91_spill]]  ;;  %vm807_vm0 = vcmask 130048  }
  0xd8   : > { %v468_v3 = vld [vmem:[%s379_s5 + $0x18] sm:$0xff]  ;;  %v3207_v4 = vld [vmem:[%s3186_s14] sm:$0xff]  ;;  %v3212_v6 = vld [vmem:[%s3186_s14 + $0x8] sm:$0xff]  ;;  %s3230_s29 = sld [smem:[#allocation11 + $0x81]]  ;;  %s3237_s13 = sld [smem:[#allocation11 + $0x3]]  ;;  %vm876_vm1 = vcmask 146448  }
  0xd9   : > { %s462_s11 = scalar_select %p461_p6, %s2947_s9, 1  ;;  %v478_v5 = vmul.f32 %v3207_v4, %v465_v0  ;;  %v3215_v7 = vld [vmem:[%s3186_s14 + $0x10] sm:$0xff]  ;;  %v3218_v8 = vld [vmem:[%s3186_s14 + $0x18] sm:$0xff]  ;;  %v483_v9 = vmul.f32 %v3212_v6, %v466_v1  ;;  %v3228_v14 = vld [vmem:[%s397_s22] sm:$0xff]  ;;  %vm945_vm2 = vcmask 162848   ;;  %vm1014_vm3 = vcmask 179248  }
  0xda   : > { %v489_v10 = vmul.f32 %v3215_v7, %v467_v2  ;;  %v495_v12 = vmul.f32 %v3218_v8, %v468_v3  ;;  %s3232_s18 = sld [smem:[#allocation11 + $0x1]]  ;;  %s3239_s26 = sld [smem:[#allocation11 + $0x2]] }
  0xdb   : > { %s2277_s15 = sshll.u32 %s462_s11, 3  ;;  %v484_v11 = vadd.f32 %v483_v9, %v478_v5  ;;  %s3246_s10 = sld [smem:[#allocation11 + $0x101]] }
  0xdc   : > { %s3248_s19 = sld [smem:[#allocation11 + $0x82]]  ;;  %s3266_s4 = sld [smem:[#allocation11 + $0x83]] }
  0xdd   : > { %s3226_s23 = scalar_lea.vmem %s4561_s2, %s2277_s15  ;;  %v490_v13 = vadd.f32 %v489_v10, %v484_v11  ;;  %s3264_s6 = sld [smem:[#allocation11 + $0x102]] }
  0xde   : > { %4562 = sst [smem:[#allocation36_spill]] %s3226_s23  ;;  %v3235_v16 = vld [vmem:[%s3226_s23] sm:$0xff]  ;;  %v558_v22 = vstv %s3230_s29  ;;  %v543_v28 = vstv %s3237_s13  ;;  %s4374_s5 = smov 126  }
  0xdf   : > { %v496_v15 = vadd.f32 %v495_v12, %v490_v13  ;;  %s3286_s16 = sld [smem:[#allocation11 + $0x103]]  ;;  %s3288_s17 = sld [smem:[#allocation11 + $0x181]] }
  0xe0   : > { %v527_v23 = vstv %s3232_s18  ;;  %v535_v29 = vstv %s3239_s26  ;;  %s4378_s21 = smov 122   ;;  %s4376_s22 = smov 124  }
  0xe1   : > { %v3242_v17 = vsub.f32 %v3228_v14, %v496_v15  ;;  %v589_v35 = vstv %s3246_s10  ;;  %s3300_s11 = sld [smem:[#allocation11 + $0x201]]  ;;  %s3302_s15 = sld [smem:[#allocation11 + $0x182]] }
  0xe2   : > { %v566_v36 = vstv %s3248_s19  ;;  %v574_v40 = vstv %s3266_s4  ;;  %s3314_s1 = sld [smem:[#allocation11 + $0x202]]  ;;  %s3316_s24 = sld [smem:[#allocation11 + $0x183]] }
  0xe3   : > { %v499_v18 = vmul.f32 %v3235_v16, %v3242_v17  ;;  %v597_v39 = vstv %s3264_s6  ;;  %s3330_s2 = sld [smem:[#allocation11 + $0x281]]  ;;  %s3344_s7 = sld [smem:[#allocation11 + $0x282]] }
  0xe4   : > { %s3342_s3 = sld [smem:[#allocation11 + $0x301]]  ;;  %s3356_s28 = sld [smem:[#allocation11 + $0x302]] }
  0xe5   : > { %v510_v19 = vmul.f32 %v3212_v6, %v499_v18  ;;  %v518_v20 = vmul.f32 %v3218_v8, %v499_v18  ;;  %v514_v21 = vmul.f32 %v3215_v7, %v499_v18  ;;  %v506_v24 = vmul.f32 %v499_v18, %v3207_v4  ;;  %s3358_s30 = sld [smem:[#allocation11 + $0x283]]  ;;  %s4575_s12 = smov 122  }
  0xe6   : > { %v605_v43 = vstv %s3286_s16  ;;  %v620_v44 = vstv %s3288_s17  ;;  %s3370_s27 = sld [smem:[#allocation11 + $0x303]]  ;;  %s3372_s8 = sld [smem:[#allocation11 + $0x381]]  ;;  %v2873_v18 = vmov 0.0  }
  0xe7   : > { %v3256_v25 = vadd.f32 %v510_v19, %v466_v1  ;;  %v3258_v26 = vadd.f32 %v518_v20, %v468_v3  ;;  %v3260_v27 = vadd.f32 %v514_v21, %v467_v2  ;;  %v3268_v30 = vadd.f32 %v506_v24, %v465_v0  ;;  %4563 = sst [smem:[#allocation37_spill]] %s3300_s11  ;;  %s3384_s25 = sld [smem:[#allocation11 + $0x382]]  ;;  %768 = vst [vmem:[#allocation2] sm:$0xff] %v2873_v18 }
  0xe8   : > { %4564 = sst [smem:[#allocation38_spill]] %s3302_s15  ;;  %v651_v47 = vstv %s3300_s11  ;;  %v628_v48 = vstv %s3302_s15  ;;  %v659_v51 = vstv %s3314_s1  ;;  %v636_v52 = vstv %s3316_s24  ;;  %s3386_s0 = sld [smem:[#allocation11 + $0x383]]  ;;  %769 = vst [vmem:[#allocation2 + $0x8] sm:$0xff] %v2873_v18  ;;  %770 = vst [vmem:[#allocation2 + $0x10] sm:$0xff] %v2873_v18 }
  0xe9   : > { %v559_v31 = vmul.f32 %v558_v22, %v3256_v25  ;;  %v528_v32 = vmul.f32 %v527_v23, %v3256_v25  ;;  %v544_v33 = vmul.f32 %v543_v28, %v3258_v26  ;;  %v536_v34 = vmul.f32 %v535_v29, %v3260_v27  ;;  %4565 = sst [smem:[#allocation39_spill]] %s3314_s1  ;;  %771 = vst [vmem:[#allocation2 + $0x18] sm:$0xff] %v2873_v18  ;;  %s3418_s9 = sld [smem:[#allocation11]] }
  0xea   : > { %v590_v37 = vmul.f32 %v589_v35, %v3256_v25  ;;  %v567_v38 = vmul.f32 %v566_v36, %v3260_v27  ;;  %v598_v41 = vmul.f32 %v597_v39, %v3260_v27  ;;  %v575_v42 = vmul.f32 %v574_v40, %v3258_v26  ;;  %4566 = sst [smem:[#allocation40_spill]] %s3316_s24  ;;  %s3549_s1 = sld [smem:[#allocation14 + $0x182]] }
  0xeb   : > { %561 = vrot.lane.b32.xlu1 %v559_v31, %s4374_s5  ;;  %530 = vrot.lane.b32.xlu0 %v528_v32, %s4374_s5  ;;  %v606_v45 = vmul.f32 %v605_v43, %v3258_v26  ;;  %v621_v46 = vmul.f32 %v620_v44, %v3256_v25  ;;  %4568 = sst [smem:[#allocation42_spill]] %s3330_s2  ;;  %v652_v49 = vmul.f32 %v651_v47, %v3256_v25  ;;  %v682_v56 = vstv %s3330_s2  ;;  %s3420_s20 = sld [smem:[#allocation12]] }
  0xec   : > { %v629_v50 = vmul.f32 %v628_v48, %v3260_v27  ;;  %4570 = sst [smem:[#allocation43_spill]] %s3342_s3  ;;  %v660_v53 = vmul.f32 %v659_v51, %v3260_v27  ;;  %v637_v54 = vmul.f32 %v636_v52, %v3258_v26  ;;  %v683_v58 = vmul.f32 %v682_v56, %v3256_v25  ;;  %s3422_s23 = sld [smem:[#allocation11 + $0x80]] }
  0xed   : > { %4571 = sst [smem:[#allocation44_spill]] %s3344_s7  ;;  %v713_v59 = vstv %s3342_s3  ;;  %v690_v60 = vstv %s3344_s7  ;;  %v721_v63 = vstv %s3356_s28  ;;  %v698_v0 = vstv %s3358_s30  ;;  %s3425_s14 = sld [smem:[#allocation11 + $0x100]] }
  0xee   : > { %4573 = sst [smem:[#allocation45_spill]] %s3356_s28  ;;  %v714_v61 = vmul.f32 %v713_v59, %v3256_v25  ;;  %v691_v62 = vmul.f32 %v690_v60, %v3260_v27  ;;  %v722_v1 = vmul.f32 %v721_v63, %v3260_v27  ;;  %v699_v2 = vmul.f32 %v698_v0, %v3258_v26  ;;  %s3466_s28 = sld [smem:[#allocation14 + $0x101]] }
  0xef   : > { %546 = vrot.lane.b32.xlu1 %v544_v33, %s4378_s21  ;;  %538 = vrot.lane.b32.xlu0 %v536_v34, %s4376_s22  ;;  %4574 = sst [smem:[#allocation46_spill]] %s3358_s30  ;;  %v729_v3 = vstv %s3370_s27  ;;  %v744_v5 = vstv %s3372_s8  ;;  %s3459_s30 = sld [smem:[#allocation14 + $0x81]] }
  0xf0   : > { %4576 = sst [smem:[#allocation47_spill]] %s3370_s27  ;;  %v730_v9 = vmul.f32 %v729_v3, %v3258_v26  ;;  %v745_v10 = vmul.f32 %v744_v5, %v3256_v25  ;;  %v4502_v11 = vstv %s3384_s25  ;;  %v760_v12 = vstv %s3386_s0  ;;  %s3453_s27 = sld [smem:[#allocation11 + $0x200]] }
  0xf1   : > { %4577 = sst [smem:[#allocation48_spill]] %s3372_s8  ;;  %v753_v13 = vmul.f32 %v4502_v11, %v3260_v27  ;;  %v761_v15 = vmul.f32 %v760_v12, %v3258_v26  ;;  %v4500_v19 = vstv %s3418_s9  ;;  %v4499_v21 = vstv %s3420_s20  ;;  %s3511_s3 = sld [smem:[#allocation14 + $0x83]] }
  0xf2   : > { %4578 = sst [smem:[#allocation49_spill]] %s3384_s25  ;;  %v523_v20 = vmul.f32 %v4500_v19, %v3268_v30  ;;  %v4498_v24 = vstv %s3422_s23  ;;  %s3439_s8 = sld [smem:[#allocation14 + $0x80]] }
  0xf3   : > { %592 = vrot.lane.b32.xlu1 %v590_v37, %s4374_s5  ;;  %569 = vrot.lane.b32.xlu0 %v567_v38, %s4376_s22  ;;  %s3328_s5 = sld [smem:[#allocation11 + $0x203]]  ;;  %4579 = sst [smem:[#allocation50_spill]] %s3386_s0  ;;  %v4495_v34 = vstv %s3425_s14  ;;  %v554_v37 = vmul.f32 %v4498_v24, %v3268_v30 }
  0xf4   : > { %4580 = sst [smem:[#allocation51_spill]] %s3418_s9  ;;  %s3427_s25 = sld [smem:[#allocation12 + $0x1]]  ;;  %v525_v31 = vadd.f32 %v4499_v21, %v523_v20 }
  0xf5   : > { %4581 = sst [smem:[#allocation52_spill]] %s3420_s20  ;;  %s3433_s0 = sld [smem:[#allocation12 + $0x2]] }
  0xf6   : > { %4582 = sst [smem:[#allocation53_spill]] %s3422_s23  ;;  %s3445_s9 = sld [smem:[#allocation11 + $0x180]] }
  0xf7   : > { %600 = vrot.lane.b32.xlu1 %v598_v41, %s4376_s22  ;;  %577 = vrot.lane.b32.xlu0 %v575_v42, %s4378_s21  ;;  %s4569_s22 = smov 126   ;;  %4583 = sst [smem:[#allocation54_spill]] %s3425_s14  ;;  %v585_v42 = vmul.f32 %v4495_v34, %v3268_v30 }
  0xf8   : > { %4586 = sst [smem:[#allocation57_spill]] %s3439_s8  ;;  %s3451_s20 = sld [smem:[#allocation14 + $0x100]] }
  0xf9   : > { %4567 = sst [smem:[#allocation41_spill]] %s3328_s5  ;;  %v667_v55 = vstv %s3328_s5  ;;  %s3457_s23 = sld [smem:[#allocation12 + $0x3]] }
  0xfa   : > { %v668_v57 = vmul.f32 %v667_v55, %v3258_v26  ;;  %4584 = sst [smem:[#allocation55_spill]] %s3427_s25  ;;  %v4496_v38 = vstv %s3427_s25  ;;  %s3464_s14 = sld [smem:[#allocation12 + $0x4]] }
  0xfb   : > { %608 = vrot.lane.b32.xlu1 %v606_v45, %s4378_s21  ;;  %623 = vrot.lane.b32.xlu0 %v621_v46, %s4569_s22  ;;  %s4572_s21 = smov 124   ;;  %4585 = sst [smem:[#allocation56_spill]] %s3433_s0 }
  0xfc   : > { %4587 = sst [smem:[#allocation58_spill]] %s3445_s9  ;;  %s3486_s7 = sld [smem:[#allocation11 + $0x280]] }
  0xfd   : > { %4589 = sst [smem:[#allocation60_spill]] %s3453_s27  ;;  %s3471_s25 = sld [smem:[#allocation14 + $0x82]] }
  0xfe   : > { %4588 = sst [smem:[#allocation59_spill]] %s3451_s20  ;;  %s4603_s2 = smov 4  }
  0xff   : > { %654 = vrot.lane.b32.xlu1 %v652_v49, %s4569_s22  ;;  %631 = vrot.lane.b32.xlu0 %v629_v50, %s4572_s21  ;;  %v4452_v49 = vstv %s3433_s0  ;;  %v556_v50 = vadd.f32 %v4496_v38, %v554_v37  ;;  %4590 = sst [smem:[#allocation61_spill]] %s3457_s23  ;;  %s4408_s0 = smov 2  }
 0x100   : > { %4591 = sst [smem:[#allocation62_spill]] %s3459_s30  ;;  %s3535_s5 = sld [smem:[#allocation11 + $0x380]] }
 0x101   : > { %4592 = sst [smem:[#allocation63_spill]] %s3464_s14  ;;  %s3537_s24 = sld [smem:[#allocation14]] }
 0x102   : > { %4593 = sst [smem:[#allocation64_spill]] %s3466_s28  ;;  %s3554_s15 = sld [smem:[#allocation14 + $0x103]] }
 0x103   : > { %662 = vrot.lane.b32.xlu1 %v660_v53, %s4572_s21  ;;  %639 = vrot.lane.b32.xlu0 %v637_v54, %s4575_s12  ;;  %4594 = sst [smem:[#allocation65_spill]] %s3471_s25  ;;  %s3567_s11 = sld [smem:[#allocation14 + $0x3]] }
 0x104   : > { %4596 = sst [smem:[#allocation67_spill]] %s3486_s7  ;;  %s4635_s18 = sld [smem:[#allocation49_spill]] }
 0x105   : > { %4599 = sst [smem:[#allocation70_spill]] %s3511_s3  ;;  %s4636_s13 = sld [smem:[#allocation35_spill]] }
 0x106   : > { %4605 = sst [smem:[#allocation74_spill]] %s3535_s5  ;;  %s4637_s29 = sld [smem:[#allocation51_spill]] }
 0x107   : > { %670 = vrot.lane.b32.xlu1 %v668_v57, %s4575_s12  ;;  %685 = vrot.lane.b32.xlu0 %v683_v58, %s4569_s22  ;;  %v587_v57 = vadd.f32 %v4452_v49, %v585_v42  ;;  %v4438_v42 = vstv %s3459_s30  ;;  %s3523_s30 = sld [smem:[#allocation12 + $0x6]]  ;;  %4606 = sst [smem:[#allocation75_spill]] %s3537_s24 }
 0x108   : > { %v4464_v49 = vstv %s3554_s15  ;;  %s4638_s10 = sld [smem:[#allocation52_spill]]  ;;  %s4639_s19 = sld [smem:[#allocation53_spill]] }
 0x109   : > { %4610 = sst [smem:[#allocation79_spill]] %s3567_s11  ;;  %s4642_s4 = sld [smem:[#allocation54_spill]] }
 0x10a   : > { %s4641_s6 = sld [smem:[#allocation55_spill]]  ;;  %s4645_s16 = sld [smem:[#allocation57_spill]] }
 0x10b   : > { %716 = vrot.lane.b32.xlu1 %v714_v61, %s4569_s22  ;;  %693 = vrot.lane.b32.xlu0 %v691_v62, %s4572_s21  ;;  %v4460_v62 = vstv %s3439_s8  ;;  %s3484_s8 = sld [smem:[#allocation14 + $0x180]]  ;;  %s4651_s26 = sld [smem:[#allocation58_spill]] }
 0x10c   : > { %s4646_s17 = sld [smem:[#allocation56_spill]] }
 0x10d   : > { %4602 = sst [smem:[#allocation72_spill]] %s3523_s30 }
 0x10f   : > { %724 = vrot.lane.b32.xlu1 %v722_v1, %s4572_s21  ;;  %701 = vrot.lane.b32.xlu0 %v699_v2, %s4575_s12 }
 0x111   : > { %4595 = sst [smem:[#allocation66_spill]] %s3484_s8 }
 0x113   : > { %732 = vrot.lane.b32.xlu1 %v730_v9, %s4575_s12  ;;  %747 = vrot.lane.b32.xlu0 %v745_v10, %s4569_s22  ;;  %v4439_v9 = vstv %s3445_s9  ;;  %s4415_s9 = smov 4  }
 0x114   : > { %v616_v37 = vmul.f32 %v4439_v9, %v3268_v30  ;;  %v4456_v9 = vstv %s3535_s5  ;;  %s4614_s5 = smov 6  }
 0x117   : > { %755 = vrot.lane.b32.xlu0 %v753_v13, %s4572_s21  ;;  %763 = vrot.lane.b32.xlu1 %v761_v15, %s4575_s12  ;;  %s3556_s12 = sld [smem:[#allocation12 + $0x7]] }
 0x11d   : > { %4608 = sst [smem:[#allocation77_spill]] %s3556_s12 }
 0x15d   : > { %v562_v32 = vpop.permute.xlu1 %561  ;;  %v531_v33 = vpop.permute.xlu0 %530 }
 0x15e   : > { %v533_v41 = vadd.f32 %v531_v33, %v525_v31  ;;  %v564_v1 = vadd.f32 %v562_v32, %v556_v50  ;;  %v4447_v31 = vstv %s3451_s20  ;;  %v4426_v33 = vstv %s3453_s27  ;;  %s3506_s27 = sld [smem:[#allocation14 + $0x102]]  ;;  %s3509_s20 = sld [smem:[#allocation12 + $0x5]] }
 0x161   : > { %v547_v45 = vpop.permute.xlu1 %546  ;;  %v539_v46 = vpop.permute.xlu0 %538 }
 0x162   : > { %v541_v53 = vadd.f32 %v539_v46, %v533_v41  ;;  %v4427_v41 = vstv %s3457_s23  ;;  %s4600_s23 = smov 2  }
 0x164   : > { %v549_v54 = vadd.f32 %v547_v45, %v541_v53  ;;  %v647_v53 = vmul.f32 %v4426_v33, %v3268_v30  ;;  %4598 = sst [smem:[#allocation69_spill]] %s3509_s20 }
 0x165   : > { %v593_v58 = vpop.permute.xlu1 %592  ;;  %v570_v61 = vpop.permute.xlu0 %569 }
 0x166   : > { %v3468_v2 = vmax.f32 %v549_v54, 0.0  ;;  %v595_v10 = vadd.f32 %v593_v58, %v587_v57  ;;  %v572_v13 = vadd.f32 %v570_v61, %v564_v1  ;;  %v4424_v58 = vstv %s3464_s14  ;;  %s3529_s14 = sld [smem:[#allocation14 + $0x181]] }
 0x167   : > { %v4437_v61 = vstv %s3466_s28  ;;  %s3533_s28 = sld [smem:[#allocation14 + $0x84]] }
 0x168   : > { %v814_v15 = vmul.f32 %v4460_v62, %v3468_v2  ;;  %v883_v50 = vmul.f32 %v4447_v31, %v3468_v2 }
 0x169   : > { %v601_v18 = vpop.permute.xlu1 %600  ;;  %v578_v20 = vpop.permute.xlu0 %577 }
 0x16a   : > { %v580_v32 = vadd.f32 %v578_v20, %v572_v13  ;;  %816 = vrot.lane.b32.xlu0 %v814_v15, %s4408_s0  ;;  %v603_v45 = vadd.f32 %v601_v18, %v595_v10  ;;  %s3498_s0 = sld [smem:[#allocation11 + $0x300]]  ;;  %v618_v13 = vadd.f32 %v4427_v41, %v616_v37  ;;  %v4425_v15 = vstv %s3471_s25  ;;  %s3540_s25 = sld [smem:[#allocation14 + $0x1]] }
 0x16b   : > { %v649_v20 = vadd.f32 %v4424_v58, %v647_v53  ;;  %v4435_v53 = vstv %s3484_s8  ;;  %s3565_s8 = sld [smem:[#allocation14 + $0x2]] }
 0x16c   : > { %v3488_v46 = vmax.f32 %v580_v32, 0.0  ;;  %4604 = sst [smem:[#allocation73_spill]] %s3529_s14  ;;  %v952_v33 = vmul.f32 %v4435_v53, %v3468_v2 }
 0x16d   : > { %v609_v54 = vpop.permute.xlu1 %608  ;;  %v624_v57 = vpop.permute.xlu0 %623 }
 0x16e   : > { %v611_v1 = vadd.f32 %v609_v54, %v603_v45  ;;  %885 = vrot.lane.b32.xlu0 %v883_v50, %s4415_s9  ;;  %v822_v10 = vmul.f32 %v4438_v42, %v3488_v46  ;;  %v891_v32 = vmul.f32 %v4437_v61, %v3488_v46  ;;  %s3521_s9 = sld [smem:[#allocation15]]  ;;  %v626_v50 = vadd.f32 %v624_v57, %v618_v13 }
 0x16f   : > { %v4458_v61 = vstv %s3533_s28  ;;  %v4454_v42 = vstv %s3529_s14  ;;  %s3640_s14 = sld [smem:[#allocation14 + $0x105]] }
 0x170   : > { %4597 = sst [smem:[#allocation68_spill]] %s3498_s0  ;;  %v3513_v18 = vmax.f32 %v611_v1, 0.0  ;;  %824 = vrot.lane.b32.xlu1 %v822_v10, %s4600_s23  ;;  %v4434_v1 = vstv %s3486_s7  ;;  %v4436_v58 = vstv %s3498_s0  ;;  %s4440_s7 = smov 6  }
 0x171   : > { %v655_v37 = vpop.permute.xlu1 %654  ;;  %v632_v45 = vpop.permute.xlu0 %631  ;;  %4607 = sst [smem:[#allocation76_spill]] %s3540_s25  ;;  %v678_v41 = vmul.f32 %v4434_v1, %v3268_v30  ;;  %s3583_s0 = sld [smem:[#allocation14 + $0x85]] }
 0x172   : > { %893 = vrot.lane.b32.xlu0 %v891_v32, %s4603_s2  ;;  %v830_v54 = vmul.f32 %v4425_v15, %v3513_v18  ;;  %v657_v57 = vadd.f32 %v655_v37, %v649_v20  ;;  %v634_v13 = vadd.f32 %v632_v45, %v626_v50  ;;  %v4443_v20 = vstv %s3509_s20  ;;  %4609 = sst [smem:[#allocation78_spill]] %s3565_s8  ;;  %s3596_s20 = sld [smem:[#allocation14 + $0x4]] }
 0x173   : > { %v4446_v37 = vstv %s3506_s27  ;;  %v4444_v45 = vstv %s3511_s3  ;;  %s3598_s3 = sld [smem:[#allocation14 + $0x183]] }
 0x174   : > { %4601 = sst [smem:[#allocation71_spill]] %s3521_s9  ;;  %832 = vrot.lane.b32.xlu1 %v830_v54, %s4600_s23 }
 0x175   : > { %v663_v10 = vpop.permute.xlu1 %662  ;;  %v640_v32 = vpop.permute.xlu0 %639 }
 0x176   : > { %v642_v15 = vadd.f32 %v640_v32, %v634_v13  ;;  %v665_v50 = vadd.f32 %v663_v10, %v657_v57  ;;  %v709_v13 = vmul.f32 %v4436_v58, %v3268_v30  ;;  %v4449_v32 = vstv %s3521_s9  ;;  %s3612_s9 = sld [smem:[#allocation14 + $0x5]] }
 0x177   : > { %v4451_v57 = vstv %s3523_s30  ;;  %v680_v10 = vadd.f32 %v4443_v20, %v678_v41  ;;  %4611 = sst [smem:[#allocation80_spill]] %s3583_s0  ;;  %v4494_v20 = vstv %s3540_s25  ;;  %s3617_s30 = sld [smem:[#allocation14 + $0x86]] }
 0x178   : > { %v3558_v54 = vmax.f32 %v642_v15, 0.0  ;;  %954 = vrot.lane.b32.xlu1 %v952_v33, %s4440_s7  ;;  %v899_v33 = vmul.f32 %v4446_v37, %v3513_v18  ;;  %s3581_s7 = sld [smem:[#allocation14 + $0x104]]  ;;  %v711_v41 = vadd.f32 %v4451_v57, %v709_v13  ;;  %4612 = sst [smem:[#allocation81_spill]] %s3596_s20  ;;  %v960_v13 = vmul.f32 %v4454_v42, %v3488_v46 }
 0x179   : > { %v671_v1 = vpop.permute.xlu1 %670  ;;  %v686_v53 = vpop.permute.xlu0 %685  ;;  %v4493_v57 = vstv %s3549_s1  ;;  %s3638_s25 = sld [smem:[#allocation14 + $0x184]] }
 0x17a   : > { %v673_v15 = vadd.f32 %v671_v1, %v665_v50  ;;  %v838_v58 = vmul.f32 %v4444_v45, %v3558_v54  ;;  %v4457_v1 = vstv %s3537_s24  ;;  %v774_v45 = vadd.f32 %v4449_v32, %v3268_v30  ;;  %s3626_s24 = sld [smem:[#allocation14 + $0x6]] }
 0x17b   : > { %v777_v32 = vmul.f32 %v4457_v1, %v3468_v2  ;;  %v4492_v2 = vstv %s3565_s8  ;;  %s3666_s8 = sld [smem:[#allocation14 + $0x87]] }
 0x17c   : > { %v3586_v50 = vmax.f32 %v673_v15, 0.0  ;;  %901 = vrot.lane.b32.xlu1 %v899_v33, %s4603_s2  ;;  %840 = vrot.lane.b32.xlu0 %v838_v58, %s4600_s23  ;;  %v688_v15 = vadd.f32 %v686_v53, %v680_v10  ;;  %v740_v33 = vmul.f32 %v4456_v9, %v3268_v30  ;;  %v4463_v53 = vstv %s3556_s12  ;;  %s3653_s12 = sld [smem:[#allocation14 + $0x7]] }
 0x17d   : > { %v717_v37 = vpop.permute.xlu1 %716  ;;  %v694_v31 = vpop.permute.xlu0 %693  ;;  %4613 = sst [smem:[#allocation82_spill]] %s3617_s30  ;;  %v781_v30 = vmul.f32 %v4494_v20, %v3488_v46  ;;  %v4470_v9 = vstv %s3567_s11  ;;  %s3664_s11 = sld [smem:[#allocation14 + $0x106]] }
 0x17e   : > { %v846_v58 = vmul.f32 %v4458_v61, %v3586_v50  ;;  %v719_v10 = vadd.f32 %v717_v37, %v711_v41  ;;  %v696_v42 = vadd.f32 %v694_v31, %v688_v15  ;;  %v968_v31 = vmul.f32 %v4493_v57, %v3513_v18 }
 0x17f   : > { %v907_v37 = vmul.f32 %v4464_v49, %v3558_v54  ;;  %v742_v41 = vadd.f32 %v4463_v53, %v740_v33  ;;  %v778_v15 = vadd.f32 %v777_v32, %v774_v45  ;;  %v4469_v46 = vstv %s3581_s7 }
 0x180   : > { %848 = vrot.lane.b32.xlu1 %v846_v58, %s4600_s23  ;;  %962 = vrot.lane.b32.xlu0 %v960_v13, %s4614_s5  ;;  %4615 = sst [smem:[#allocation83_spill]] %s3626_s24  ;;  %v4468_v58 = vstv %s3583_s0  ;;  %v789_v32 = vmul.f32 %v4470_v9, %v3558_v54  ;;  %v4473_v33 = vstv %s3596_s20  ;;  %s3684_s20 = sld [smem:[#allocation14 + $0x107]] }
 0x181   : > { %v725_v1 = vpop.permute.xlu1 %724  ;;  %v702_v61 = vpop.permute.xlu0 %701  ;;  %v782_v45 = vadd.f32 %v781_v30, %v778_v15  ;;  %s3686_s0 = sld [smem:[#allocation14 + $0x185]] }
 0x182   : > { %v704_v62 = vadd.f32 %v702_v61, %v696_v42  ;;  %v785_v42 = vmul.f32 %v4492_v2, %v3513_v18  ;;  %v727_v61 = vadd.f32 %v725_v1, %v719_v10  ;;  %v4491_v18 = vstv %s3598_s3 }
 0x183   : > { %v915_v10 = vmul.f32 %v4469_v46, %v3586_v50  ;;  %v976_v46 = vmul.f32 %v4491_v18, %v3558_v54 }
 0x184   : > { %v3645_v13 = vmax.f32 %v704_v62, 0.0  ;;  %970 = vrot.lane.b32.xlu1 %v968_v31, %s4614_s5  ;;  %909 = vrot.lane.b32.xlu0 %v907_v37, %s4603_s2  ;;  %v4490_v31 = vstv %s3612_s9  ;;  %v4474_v37 = vstv %s3617_s30  ;;  %v786_v15 = vadd.f32 %v785_v42, %v782_v45  ;;  %s3703_s30 = sld [smem:[#allocation14 + $0x186]] }
 0x185   : > { %v733_v53 = vpop.permute.xlu1 %732  ;;  %v748_v49 = vpop.permute.xlu0 %747 }
 0x186   : > { %v735_v1 = vadd.f32 %v733_v53, %v727_v61  ;;  %v750_v62 = vadd.f32 %v748_v49, %v742_v41  ;;  %v854_v30 = vmul.f32 %v4468_v58, %v3645_v13  ;;  %v793_v49 = vmul.f32 %v4473_v33, %v3586_v50  ;;  %4616 = sst [smem:[#allocation84_spill]] %s3684_s20 }
 0x187   : > { %v4475_v41 = vstv %s3626_s24  ;;  %v790_v9 = vadd.f32 %v789_v32, %v786_v15  ;;  %v797_v42 = vmul.f32 %v4490_v31, %v3645_v13  ;;  %4617 = sst [smem:[#allocation85_spill]] %s3686_s0  ;;  %s3701_s24 = sld [smem:[#allocation14 + $0x187]] }
 0x188   : > { %v736_v53 = vmax.f32 %v735_v1, 0.0  ;;  %917 = vrot.lane.b32.xlu1 %v915_v10, %s4603_s2  ;;  %856 = vrot.lane.b32.xlu0 %v854_v30, %s4600_s23  ;;  %v4489_v10 = vstv %s3638_s25  ;;  %v4488_v30 = vstv %s3640_s14 }
 0x189   : > { %v756_v61 = vpop.permute.xlu0 %755  ;;  %v764_v58 = vpop.permute.xlu1 %763  ;;  %v794_v33 = vadd.f32 %v793_v49, %v790_v9  ;;  %v923_v9 = vmul.f32 %v4488_v30, %v3645_v13  ;;  %v4486_v49 = vstv %s3664_s11 }
 0x18a   : > { %v758_v45 = vadd.f32 %v756_v61, %v750_v62  ;;  %v862_v1 = vmul.f32 %v4474_v37, %v736_v53  ;;  %v801_v54 = vmul.f32 %v4475_v41, %v736_v53  ;;  %v4487_v62 = vstv %s3653_s12  ;;  %4618 = sst [smem:[#allocation86_spill]] %s3703_s30 }
 0x18b   : > { %v798_v15 = vadd.f32 %v797_v42, %v794_v33  ;;  %v984_v37 = vmul.f32 %v4489_v10, %v3586_v50  ;;  %v4485_v41 = vstv %s3666_s8  ;;  %v931_v33 = vmul.f32 %v4486_v49, %v736_v53 }
 0x18c   : > { %v766_v32 = vadd.f32 %v764_v58, %v758_v45  ;;  %864 = vrot.lane.b32.xlu1 %v862_v1, %s4600_s23  ;;  %978 = vrot.lane.b32.xlu0 %v976_v46, %s4614_s5  ;;  %v4484_v45 = vstv %s3684_s20  ;;  %v4483_v1 = vstv %s3686_s0  ;;  %s3733_s0 = sld [smem:[#allocation15 + $0x1]]  ;;  %s3735_s20 = sld [smem:[#allocation15 + $0x2]] }
 0x18d   : > { %v802_v46 = vadd.f32 %v801_v54, %v798_v15  ;;  %v992_v54 = vmul.f32 %v4483_v1, %v3645_v13  ;;  %v4480_v15 = vstv %s3703_s30  ;;  %s3738_s30 = sld [smem:[#allocation15 + $0x3]] }
 0x18e   : > { %v767_v61 = vmax.f32 %v766_v32, 0.0  ;;  %v4482_v32 = vstv %s3701_s24 }
 0x190   : > { %v805_v58 = vmul.f32 %v4487_v62, %v767_v61  ;;  %986 = vrot.lane.b32.xlu1 %v984_v37, %s4614_s5  ;;  %925 = vrot.lane.b32.xlu0 %v923_v9, %s4603_s2  ;;  %v870_v42 = vmul.f32 %v4485_v41, %v767_v61  ;;  %v939_v37 = vmul.f32 %v4484_v45, %v767_v61 }
 0x191   : > { %v1008_v9 = vmul.f32 %v4482_v32, %v767_v61 }
 0x192   : > { %v806_v50 = vadd.f32 %v805_v58, %v802_v46  ;;  %v1000_v46 = vmul.f32 %v4480_v15, %v736_v53  ;;  %4619 = sst [smem:[#allocation87_spill]] %s3735_s20  ;;  %v4501_v32 = vstv %s3735_s20  ;;  %s4622_s20 = smov 122  }
 0x193   : > { %4620 = sst [smem:[#allocation88_spill]] %s3738_s30  ;;  %v880_v49 = vadd.f32 %v4501_v32, %v3260_v27  ;;  %v948_v31 = vstv %s3738_s30  ;;  %s4648_s30 = sld [smem:[#allocation59_spill]] }
 0x194   : > { %933 = vrot.lane.b32.xlu1 %v931_v33, %s4603_s2  ;;  %872 = vrot.lane.b32.xlu0 %v870_v42, %s4600_s23  ;;  %808 = vst.msk [vmem:[#allocation2] sm:$0xff] %vm807_vm0, %v806_v50  ;;  %v949_v38 = vadd.f32 %v948_v31, %v3258_v26 }
 0x198   : > { %941 = vrot.lane.b32.xlu1 %v939_v37, %s4603_s2  ;;  %994 = vrot.lane.b32.xlu0 %v992_v54, %s4614_s5  ;;  %v4497_v54 = vstv %s3733_s0 }
 0x19c   : > { %1010 = vrot.lane.b32.xlu1 %v1008_v9, %s4614_s5  ;;  %1002 = vrot.lane.b32.xlu0 %v1000_v46, %s4614_s5  ;;  %v811_v46 = vadd.f32 %v4497_v54, %v3256_v25 }
 0x1dc   : > { %v817_v58 = vpop.permute.xlu0 %816 }
 0x1dd   : > { %v819_v41 = vadd.f32 %v817_v58, %v811_v46 }
 0x1e0   : > { %v886_v33 = vpop.permute.xlu0 %885 }
 0x1e1   : > { %v888_v18 = vadd.f32 %v886_v33, %v880_v49 }
 0x1e2   : > { %v825_v50 = vpop.permute.xlu1 %824 }
 0x1e3   : > { %v827_v10 = vadd.f32 %v825_v50, %v819_v41 }
 0x1e4   : > { %v894_v13 = vpop.permute.xlu0 %893 }
 0x1e5   : > { %v896_v34 = vadd.f32 %v894_v13, %v888_v18 }
 0x1e6   : > { %v833_v42 = vpop.permute.xlu1 %832 }
 0x1e7   : > { %v835_v2 = vadd.f32 %v833_v42, %v827_v10 }
 0x1ea   : > { %v955_v37 = vpop.permute.xlu1 %954 }
 0x1eb   : > { %v957_v46 = vadd.f32 %v955_v37, %v949_v38 }
 0x1ee   : > { %v902_v61 = vpop.permute.xlu1 %901  ;;  %v841_v53 = vpop.permute.xlu0 %840 }
 0x1ef   : > { %v843_v25 = vadd.f32 %v841_v53, %v835_v2  ;;  %v904_v54 = vadd.f32 %v902_v61, %v896_v34  ;;  %v502_v53 = vadd.f32 %v3242_v17, %v3228_v14 }
 0x1f2   : > { %v849_v9 = vpop.permute.xlu1 %848  ;;  %v963_v15 = vpop.permute.xlu0 %962 }
 0x1f3   : > { %v851_v24 = vadd.f32 %v849_v9, %v843_v25  ;;  %v965_v32 = vadd.f32 %v963_v15, %v957_v46 }
 0x1f6   : > { %v971_v1 = vpop.permute.xlu1 %970  ;;  %v910_v45 = vpop.permute.xlu0 %909 }
 0x1f7   : > { %v912_v19 = vadd.f32 %v910_v45, %v904_v54  ;;  %v973_v49 = vadd.f32 %v971_v1, %v965_v32 }
 0x1fa   : > { %v918_v62 = vpop.permute.xlu1 %917  ;;  %v857_v30 = vpop.permute.xlu0 %856 }
 0x1fb   : > { %v859_v27 = vadd.f32 %v857_v30, %v851_v24  ;;  %v920_v11 = vadd.f32 %v918_v62, %v912_v19 }
 0x1fe   : > { %v865_v57 = vpop.permute.xlu1 %864  ;;  %v979_v20 = vpop.permute.xlu0 %978 }
 0x1ff   : > { %v867_v41 = vadd.f32 %v865_v57, %v859_v27  ;;  %v981_v42 = vadd.f32 %v979_v20, %v973_v49 }
 0x202   : > { %v987_v21 = vpop.permute.xlu1 %986  ;;  %v926_v58 = vpop.permute.xlu0 %925 }
 0x203   : > { %v928_v33 = vadd.f32 %v926_v58, %v920_v11  ;;  %v989_v2 = vadd.f32 %v987_v21, %v981_v42  ;;  %v3754_v11 = vld [vmem:[#allocation2] sm:$0xff] }
 0x204   : > { %v1019_v21 = vmul.f32 %v3754_v11, %v3207_v4 }
 0x206   : > { %v934_v50 = vpop.permute.xlu1 %933  ;;  %v873_v10 = vpop.permute.xlu0 %872 }
 0x207   : > { %v875_v18 = vadd.f32 %v873_v10, %v867_v41  ;;  %v936_v13 = vadd.f32 %v934_v50, %v928_v33 }
 0x209   : > { %877 = vst.msk [vmem:[#allocation2 + $0x8] sm:$0xff] %vm876_vm1, %v875_v18  ;;  %v4643_v18 = vstv %s4637_s29  ;;  %s4655_s29 = sld [smem:[#allocation64_spill]] }
 0x20a   : > { %v942_v26 = vpop.permute.xlu1 %941  ;;  %v995_v34 = vpop.permute.xlu0 %994 }
 0x20b   : > { %v944_v38 = vadd.f32 %v942_v26, %v936_v13  ;;  %v997_v24 = vadd.f32 %v995_v34, %v989_v2 }
 0x20d   : > { %946 = vst.msk [vmem:[#allocation2 + $0x10] sm:$0xff] %vm945_vm2, %v944_v38 }
 0x20e   : > { %v1003_v19 = vpop.permute.xlu0 %1002  ;;  %v1011_v30 = vpop.permute.xlu1 %1010 }
 0x20f   : > { %v1005_v57 = vadd.f32 %v1003_v19, %v997_v24  ;;  %v4647_v24 = vstv %s4639_s19  ;;  %s4657_s19 = sld [smem:[#allocation60_spill]] }
 0x210   : > { %v1021_v45 = vld [vmem:[#allocation2 + $0x8] sm:$0xff] }
 0x211   : > { %v1013_v62 = vadd.f32 %v1011_v30, %v1005_v57  ;;  %v1022_v1 = vmul.f32 %v3212_v6, %v1021_v45 }
 0x213   : > { %1015 = vst.msk [vmem:[#allocation2 + $0x18] sm:$0xff] %vm1014_vm3, %v1013_v62  ;;  %v1023_v15 = vadd.f32 %v1022_v1, %v1019_v21  ;;  %v4650_v1 = vstv %s4642_s4  ;;  %s4661_s4 = sld [smem:[#allocation63_spill]] }
 0x214   : > { %v1025_v20 = vld [vmem:[#allocation2 + $0x10] sm:$0xff] }
 0x215   : > { %v1026_v32 = vmul.f32 %v3215_v7, %v1025_v20 }
 0x217   : > { %v1027_v61 = vadd.f32 %v1026_v32, %v1023_v15 }
 0x21a   : > { %v1029_v37 = vld [vmem:[#allocation2 + $0x18] sm:$0xff] }
 0x21b   : > { %v1030_v54 = vmul.f32 %v3218_v8, %v1029_v37 }
 0x21d   : > { %v1031_v9 = vadd.f32 %v1030_v54, %v1027_v61  ;;  %v4652_v61 = vstv %s4645_s16  ;;  %v4653_v54 = vstv %s4646_s17  ;;  %s4665_s16 = sld [smem:[#allocation66_spill]]  ;;  %s4667_s17 = sld [smem:[#allocation67_spill]] }
 0x21f   : > { %v1032_v25 = vsub.f32 %v502_v53, %v1031_v9  ;;  %v1036_v58 = vsub.f32 %v3228_v14, %v1031_v9 }
 0x221   : > { %v1034_v4 = vmul.f32 %v1032_v25, %v3235_v16  ;;  %v3765_v46 = vadd.f32 %v1036_v58, %v502_v53 }
 0x223   : > { %v1053_v27 = vmul.f32 %v3218_v8, %v1034_v4  ;;  %v1049_v41 = vmul.f32 %v3215_v7, %v1034_v4  ;;  %v1045_v17 = vmul.f32 %v3212_v6, %v1034_v4 }
 0x225   : > { %v3770_v50 = vadd.f32 %v1049_v41, %v1025_v20  ;;  %v3772_v10 = vadd.f32 %v1045_v17, %v1021_v45  ;;  %v3774_v49 = vadd.f32 %v1053_v27, %v1029_v37  ;;  %v4658_v17 = vstv %s4648_s30  ;;  %s4670_s30 = sld [smem:[#allocation70_spill]] }
 0x227   : > { %v1071_v14 = vmul.f32 %v3770_v50, %v535_v29  ;;  %v1063_v16 = vmul.f32 %v3772_v10, %v527_v23  ;;  %v1079_v6 = vmul.f32 %v3774_v49, %v543_v28  ;;  %v1094_v7 = vmul.f32 %v3772_v10, %v558_v22 }
 0x228   : > { %v1125_v8 = vmul.f32 %v3772_v10, %v589_v35  ;;  %v1102_v23 = vmul.f32 %v3770_v50, %v566_v36  ;;  %v1133_v22 = vmul.f32 %v3770_v50, %v597_v39  ;;  %v1110_v28 = vmul.f32 %v3774_v49, %v574_v40 }
 0x229   : > { %1073 = vrot.lane.b32.xlu1 %v1071_v14, %s4572_s21  ;;  %1065 = vrot.lane.b32.xlu0 %v1063_v16, %s4569_s22  ;;  %v1141_v29 = vmul.f32 %v3774_v49, %v605_v43  ;;  %v1156_v35 = vmul.f32 %v3772_v10, %v620_v44  ;;  %v1187_v36 = vmul.f32 %v3772_v10, %v651_v47 }
 0x22a   : > { %v1164_v39 = vmul.f32 %v3770_v50, %v628_v48  ;;  %v1195_v40 = vmul.f32 %v3770_v50, %v659_v51  ;;  %v1172_v43 = vmul.f32 %v3774_v49, %v636_v52  ;;  %v1203_v44 = vmul.f32 %v3774_v49, %v667_v55 }
 0x22b   : > { %v1218_v47 = vmul.f32 %v3772_v10, %v682_v56  ;;  %v1249_v48 = vmul.f32 %v3772_v10, %v713_v59  ;;  %v1226_v51 = vmul.f32 %v3770_v50, %v690_v60  ;;  %v1257_v52 = vmul.f32 %v3770_v50, %v721_v63 }
 0x22c   : > { %v1234_v55 = vmul.f32 %v3774_v49, %v698_v0  ;;  %v1265_v56 = vmul.f32 %v3774_v49, %v729_v3  ;;  %v1280_v59 = vmul.f32 %v3772_v10, %v744_v5  ;;  %v1296_v60 = vmul.f32 %v3774_v49, %v760_v12  ;;  %v3873_v3 = vld [vmem:[%s4636_s13] sm:$0xff] }
 0x22d   : > { %1081 = vrot.lane.b32.xlu1 %v1079_v6, %s4622_s20  ;;  %1096 = vrot.lane.b32.xlu0 %v1094_v7, %s4569_s22  ;;  %v4640_v63 = vstv %s4635_s18  ;;  %v1041_v5 = vmul.f32 %v3873_v3, %v1034_v4  ;;  %v4644_v12 = vstv %s4638_s10  ;;  %s4654_s18 = sld [smem:[#allocation62_spill]]  ;;  %s4656_s10 = sld [smem:[#allocation61_spill]] }
 0x22e   : > { %v1288_v0 = vmul.f32 %v3770_v50, %v4640_v63  ;;  %v4660_v7 = vstv %s4651_s26  ;;  %s4671_s26 = sld [smem:[#allocation69_spill]] }
 0x22f   : > { %v3877_v33 = vadd.f32 %v1041_v5, %v3754_v11  ;;  %v4649_v11 = vstv %s4641_s6  ;;  %s4659_s6 = sld [smem:[#allocation65_spill]] }
 0x231   : > { %1127 = vrot.lane.b32.xlu1 %v1125_v8, %s4569_s22  ;;  %1104 = vrot.lane.b32.xlu0 %v1102_v23, %s4572_s21  ;;  %v1058_v42 = vmul.f32 %v3877_v33, %v4643_v18  ;;  %v1089_v19 = vmul.f32 %v3877_v33, %v4647_v24  ;;  %v1120_v21 = vmul.f32 %v3877_v33, %v4650_v1 }
 0x232   : > { %v1151_v8 = vmul.f32 %v3877_v33, %v4660_v7 }
 0x233   : > { %v1060_v13 = vadd.f32 %v1058_v42, %v4644_v12  ;;  %v1091_v20 = vadd.f32 %v1089_v19, %v4649_v11  ;;  %v1122_v9 = vadd.f32 %v1120_v21, %v4653_v54 }
 0x235   : > { %1135 = vrot.lane.b32.xlu1 %v1133_v22, %s4572_s21  ;;  %1112 = vrot.lane.b32.xlu0 %v1110_v28, %s4622_s20 }
 0x239   : > { %1143 = vrot.lane.b32.xlu1 %v1141_v29, %s4622_s20  ;;  %1158 = vrot.lane.b32.xlu0 %v1156_v35, %s4569_s22  ;;  %v4662_v29 = vstv %s4654_s18  ;;  %s4672_s18 = sld [smem:[#allocation68_spill]] }
 0x23d   : > { %1189 = vrot.lane.b32.xlu1 %v1187_v36, %s4569_s22  ;;  %1166 = vrot.lane.b32.xlu0 %v1164_v39, %s4572_s21  ;;  %v4663_v36 = vstv %s4655_s29  ;;  %s4675_s29 = sld [smem:[#allocation73_spill]] }
 0x241   : > { %1197 = vrot.lane.b32.xlu1 %v1195_v40, %s4572_s21  ;;  %1174 = vrot.lane.b32.xlu0 %v1172_v43, %s4622_s20  ;;  %v4664_v43 = vstv %s4656_s10  ;;  %s4676_s10 = sld [smem:[#allocation75_spill]] }
 0x245   : > { %1205 = vrot.lane.b32.xlu1 %v1203_v44, %s4622_s20  ;;  %1220 = vrot.lane.b32.xlu0 %v1218_v47, %s4569_s22  ;;  %v1153_v44 = vadd.f32 %v1151_v8, %v4664_v43  ;;  %v4666_v47 = vstv %s4657_s19  ;;  %s4677_s19 = sld [smem:[#allocation72_spill]] }
 0x249   : > { %1251 = vrot.lane.b32.xlu1 %v1249_v48, %s4569_s22  ;;  %1228 = vrot.lane.b32.xlu0 %v1226_v51, %s4572_s21  ;;  %v1182_v48 = vmul.f32 %v3877_v33, %v4666_v47 }
 0x24d   : > { %1259 = vrot.lane.b32.xlu1 %v1257_v52, %s4572_s21  ;;  %1236 = vrot.lane.b32.xlu0 %v1234_v55, %s4622_s20 }
 0x251   : > { %1267 = vrot.lane.b32.xlu1 %v1265_v56, %s4622_s20  ;;  %1282 = vrot.lane.b32.xlu0 %v1280_v59, %s4569_s22  ;;  %v4668_v56 = vstv %s4659_s6  ;;  %s4680_s6 = sld [smem:[#allocation71_spill]] }
 0x255   : > { %1298 = vrot.lane.b32.xlu1 %v1296_v60, %s4622_s20  ;;  %1290 = vrot.lane.b32.xlu0 %v1288_v0, %s4572_s21  ;;  %v4669_v60 = vstv %s4661_s4  ;;  %s4682_s4 = sld [smem:[#allocation76_spill]] }
 0x256   : > { %v1184_v63 = vadd.f32 %v1182_v48, %v4669_v60  ;;  %v4697_v48 = vstv %s3554_s15  ;;  %s4702_s15 = sld [smem:[#allocation82_spill]] }
 0x257   : > { %v4690_v8 = vstv %s4680_s6  ;;  %s2452_s6 = sld [smem:[#allocation11 + $0x181]] }
 0x29b   : > { %v1074_v26 = vpop.permute.xlu1 %1073  ;;  %v1066_v34 = vpop.permute.xlu0 %1065 }
 0x29c   : > { %v1068_v2 = vadd.f32 %v1066_v34, %v1060_v13  ;;  %v4673_v13 = vstv %s4665_s16  ;;  %s4684_s16 = sld [smem:[#allocation74_spill]] }
 0x29e   : > { %v1076_v38 = vadd.f32 %v1074_v26, %v1068_v2 }
 0x29f   : > { %v1082_v57 = vpop.permute.xlu1 %1081  ;;  %v1097_v30 = vpop.permute.xlu0 %1096 }
 0x2a0   : > { %v1084_v62 = vadd.f32 %v1082_v57, %v1076_v38  ;;  %v1099_v37 = vadd.f32 %v1097_v30, %v1091_v20  ;;  %v4674_v38 = vstv %s4667_s17  ;;  %v4679_v20 = vstv %s4670_s30  ;;  %s4694_s17 = sld [smem:[#allocation79_spill]]  ;;  %s4696_s30 = sld [smem:[#allocation80_spill]] }
 0x2a1   : > { %v1213_v24 = vmul.f32 %v3877_v33, %v4674_v38 }
 0x2a2   : > { %v1085_v45 = vmax.f32 %v1084_v62, 0.0  ;;  %v4678_v62 = vstv %s3506_s27  ;;  %s4688_s27 = sld [smem:[#allocation78_spill]] }
 0x2a3   : > { %v1128_v32 = vpop.permute.xlu1 %1127  ;;  %v1105_v15 = vpop.permute.xlu0 %1104 }
 0x2a4   : > { %v1344_v53 = vmul.f32 %v1085_v45, %v4652_v61  ;;  %v1107_v25 = vadd.f32 %v1105_v15, %v1099_v37  ;;  %v1130_v27 = vadd.f32 %v1128_v32, %v1122_v9  ;;  %v1412_v14 = vmul.f32 %v1085_v45, %v4658_v17 }
 0x2a5   : > { %v1480_v26 = vmul.f32 %v1085_v45, %v4673_v13  ;;  %v4681_v32 = vstv %s4671_s26  ;;  %v4683_v37 = vstv %s4672_s18  ;;  %s4698_s26 = sld [smem:[#allocation81_spill]]  ;;  %v4703_v13 = vstv %s3581_s7  ;;  %s4711_s7 = sld [smem:[#allocation84_spill]] }
 0x2a6   : > { %1346 = vrot.lane.b32.xlu0 %v1344_v53, %s4600_s23  ;;  %v1215_v15 = vadd.f32 %v1213_v24, %v4681_v32  ;;  %v1244_v61 = vmul.f32 %v3877_v33, %v4683_v37  ;;  %v4708_v32 = vstv %s3612_s9  ;;  %s4715_s9 = sld [smem:[#allocation86_spill]]  ;;  %s2443_s18 = sld [smem:[#allocation11 + $0x82]] }
 0x2a7   : > { %v1136_v58 = vpop.permute.xlu1 %1135  ;;  %v1113_v4 = vpop.permute.xlu0 %1112 }
 0x2a8   : > { %v1115_v41 = vadd.f32 %v1113_v4, %v1107_v25  ;;  %v1138_v16 = vadd.f32 %v1136_v58, %v1130_v27  ;;  %v4685_v25 = vstv %s3533_s28  ;;  %v4686_v4 = vstv %s4675_s29  ;;  %s4692_s28 = sld [smem:[#allocation77_spill]]  ;;  %s2448_s29 = sld [smem:[#allocation11 + $0x102]] }
 0x2aa   : > { %v1116_v6 = vmax.f32 %v1115_v41, 0.0  ;;  %1414 = vrot.lane.b32.xlu0 %v1412_v14, %s4603_s2  ;;  %v4687_v41 = vstv %s4676_s10  ;;  %v4689_v14 = vstv %s4677_s19  ;;  %s2444_s10 = sld [smem:[#allocation11 + $0x83]] }
 0x2ab   : > { %v1144_v23 = vpop.permute.xlu1 %1143  ;;  %v1159_v22 = vpop.permute.xlu0 %1158  ;;  %v1308_v17 = vmul.f32 %v1085_v45, %v4687_v41  ;;  %v4706_v24 = vstv %s4698_s26  ;;  %v4713_v41 = vstv %s3638_s25  ;;  %s4727_s25 = sld [smem:[#allocation36_spill]]  ;;  %s2449_s19 = sld [smem:[#allocation11 + $0x103]] }
 0x2ac   : > { %v1146_v28 = vadd.f32 %v1144_v23, %v1138_v16  ;;  %v1352_v35 = vmul.f32 %v1116_v6, %v4662_v29  ;;  %v1420_v39 = vmul.f32 %v1116_v6, %v4663_v36  ;;  %v1161_v55 = vadd.f32 %v1159_v22, %v1153_v44  ;;  %s2467_s26 = sld [smem:[#allocation11 + $0x301]] }
 0x2ad   : > { %v1488_v27 = vmul.f32 %v1116_v6, %v4686_v4  ;;  %v1246_v16 = vadd.f32 %v1244_v61, %v4689_v14  ;;  %v1305_v23 = vadd.f32 %v3877_v33, %v4690_v8  ;;  %v4691_v22 = vstv %s4682_s4  ;;  %s2457_s4 = sld [smem:[#allocation11 + $0x201]] }
 0x2ae   : > { %v1147_v40 = vmax.f32 %v1146_v28, 0.0  ;;  %1354 = vrot.lane.b32.xlu1 %v1352_v35, %s4600_s23  ;;  %1422 = vrot.lane.b32.xlu0 %v1420_v39, %s4603_s2  ;;  %v1312_v28 = vmul.f32 %v1116_v6, %v4691_v22  ;;  %v4693_v36 = vstv %s4684_s16  ;;  %v4695_v44 = vstv %s3549_s1  ;;  %s4705_s1 = sld [smem:[#allocation83_spill]]  ;;  %s2453_s16 = sld [smem:[#allocation11 + $0x182]] }
 0x2af   : > { %v1190_v51 = vpop.permute.xlu1 %1189  ;;  %v1167_v52 = vpop.permute.xlu0 %1166  ;;  %v1275_v39 = vmul.f32 %v3877_v33, %v4693_v36  ;;  %v4709_v61 = vstv %s4702_s15  ;;  %v4714_v14 = vstv %s3640_s14  ;;  %v4716_v8 = vstv %s3653_s12  ;;  %s2437_s14 = sld [smem:[#allocation11 + $0x1]]  ;;  %s2463_s15 = sld [smem:[#allocation11 + $0x282]] }
 0x2b0   : > { %v1360_v59 = vmul.f32 %v1147_v40, %v4668_v56  ;;  %v1169_v0 = vadd.f32 %v1167_v52, %v1161_v55  ;;  %v1192_v42 = vadd.f32 %v1190_v51, %v1184_v63  ;;  %v1428_v11 = vmul.f32 %v1147_v40, %v4678_v62  ;;  %s2473_s12 = sld [smem:[#allocation11 + $0x382]] }
 0x2b1   : > { %v1496_v47 = vmul.f32 %v1147_v40, %v4695_v44  ;;  %v1309_v52 = vadd.f32 %v1308_v17, %v1305_v23  ;;  %v4699_v55 = vstv %s4688_s27  ;;  %v4721_v44 = vstv %s3701_s24  ;;  %s2442_s24 = sld [smem:[#allocation11 + $0x81]]  ;;  %s2458_s27 = sld [smem:[#allocation11 + $0x202]] }
 0x2b2   : > { %1362 = vrot.lane.b32.xlu1 %v1360_v59, %s4600_s23  ;;  %v1316_v56 = vmul.f32 %v1147_v40, %v4699_v55  ;;  %v4704_v40 = vstv %s4696_s30  ;;  %s2462_s30 = sld [smem:[#allocation11 + $0x281]] }
 0x2b3   : > { %v1198_v5 = vpop.permute.xlu1 %1197  ;;  %v1175_v18 = vpop.permute.xlu0 %1174  ;;  %v1313_v33 = vadd.f32 %v1312_v28, %v1309_v52  ;;  %v4717_v28 = vstv %s3664_s11  ;;  %s2439_s11 = sld [smem:[#allocation11 + $0x3]] }
 0x2b4   : > { %v1177_v12 = vadd.f32 %v1175_v18, %v1169_v0  ;;  %v1200_v34 = vadd.f32 %v1198_v5, %v1192_v42  ;;  %v4700_v0 = vstv %s4692_s28  ;;  %v4701_v18 = vstv %s4694_s17  ;;  %s2454_s28 = sld [smem:[#allocation11 + $0x183]] }
 0x2b5   : > { %v1277_v5 = vadd.f32 %v1275_v39, %v4700_v0  ;;  %v1317_v38 = vadd.f32 %v1316_v56, %v1313_v33  ;;  %s2459_s17 = sld [smem:[#allocation11 + $0x203]] }
 0x2b6   : > { %v1178_v2 = vmax.f32 %v1177_v12, 0.0  ;;  %1482 = vrot.lane.b32.xlu1 %v1480_v26, %s4614_s5 }
 0x2b7   : > { %v1206_v19 = vpop.permute.xlu1 %1205  ;;  %v1221_v57 = vpop.permute.xlu0 %1220 }
 0x2b8   : > { %v1208_v30 = vadd.f32 %v1206_v19, %v1200_v34  ;;  %v1368_v1 = vmul.f32 %v1178_v2, %v4679_v20  ;;  %v1223_v9 = vadd.f32 %v1221_v57, %v1215_v15  ;;  %v1436_v51 = vmul.f32 %v1178_v2, %v4697_v48 }
 0x2b9   : > { %v1320_v42 = vmul.f32 %v1178_v2, %v4701_v18  ;;  %v4722_v48 = vstv %s4715_s9  ;;  %s2472_s9 = sld [smem:[#allocation11 + $0x381]] }
 0x2ba   : > { %v1209_v21 = vmax.f32 %v1208_v30, 0.0  ;;  %1430 = vrot.lane.b32.xlu1 %v1428_v11, %s4603_s2  ;;  %1370 = vrot.lane.b32.xlu0 %v1368_v1, %s4600_s23  ;;  %v4707_v11 = vstv %s3598_s3  ;;  %s4712_s3 = sld [smem:[#allocation85_spill]] }
 0x2bb   : > { %v1252_v53 = vpop.permute.xlu1 %1251  ;;  %v1229_v54 = vpop.permute.xlu0 %1228  ;;  %v1504_v20 = vmul.f32 %v1178_v2, %v4707_v11  ;;  %v1321_v1 = vadd.f32 %v1320_v42, %v1317_v38 }
 0x2bc   : > { %v1376_v58 = vmul.f32 %v1209_v21, %v4685_v25  ;;  %v1231_v7 = vadd.f32 %v1229_v54, %v1223_v9  ;;  %v1254_v45 = vadd.f32 %v1252_v53, %v1246_v16  ;;  %v1444_v26 = vmul.f32 %v1209_v21, %v4703_v13 }
 0x2bd   : > { %v1324_v19 = vmul.f32 %v1209_v21, %v4706_v24  ;;  %v4710_v25 = vstv %s4705_s1  ;;  %v1512_v17 = vmul.f32 %v1209_v21, %v4713_v41  ;;  %v4719_v21 = vstv %s4711_s7  ;;  %s2468_s1 = sld [smem:[#allocation11 + $0x302]]  ;;  %s2464_s7 = sld [smem:[#allocation11 + $0x283]] }
 0x2be   : > { %1378 = vrot.lane.b32.xlu1 %v1376_v58, %s4600_s23  ;;  %1490 = vrot.lane.b32.xlu0 %v1488_v27, %s4614_s5 }
 0x2bf   : > { %v1260_v29 = vpop.permute.xlu1 %1259  ;;  %v1237_v35 = vpop.permute.xlu0 %1236  ;;  %v1325_v9 = vadd.f32 %v1324_v19, %v1321_v1 }
 0x2c0   : > { %v1239_v43 = vadd.f32 %v1237_v35, %v1231_v7  ;;  %v1262_v6 = vadd.f32 %v1260_v29, %v1254_v45  ;;  %v4718_v35 = vstv %s3666_s8  ;;  %v4720_v45 = vstv %s4712_s3  ;;  %s4723_s8 = sld [smem:[#allocation87_spill]]  ;;  %s2469_s3 = sld [smem:[#allocation11 + $0x303]] }
 0x2c2   : > { %v1240_v59 = vmax.f32 %v1239_v43, 0.0  ;;  %1498 = vrot.lane.b32.xlu1 %v1496_v47, %s4614_s5  ;;  %1438 = vrot.lane.b32.xlu0 %v1436_v51, %s4603_s2 }
 0x2c3   : > { %v1268_v60 = vpop.permute.xlu1 %1267  ;;  %v1283_v63 = vpop.permute.xlu0 %1282 }
 0x2c4   : > { %v1270_v12 = vadd.f32 %v1268_v60, %v1262_v6  ;;  %v1384_v34 = vmul.f32 %v1240_v59, %v4704_v40  ;;  %v1285_v30 = vadd.f32 %v1283_v63, %v1277_v5  ;;  %v1328_v15 = vmul.f32 %v1240_v59, %v4708_v32 }
 0x2c5   : > { %v1452_v16 = vmul.f32 %v1240_v59, %v4714_v14  ;;  %v1520_v43 = vmul.f32 %v1240_v59, %v4720_v45  ;;  %v1477_v32 = vadd.f32 %v3774_v49, %v948_v31  ;;  %v2435_v45 = vld [vmem:[%s4636_s13 + $0x10] sm:$0xff] }
 0x2c6   : > { %v1271_v57 = vmax.f32 %v1270_v12, 0.0  ;;  %1446 = vrot.lane.b32.xlu1 %v1444_v26, %s4603_s2  ;;  %1386 = vrot.lane.b32.xlu0 %v1384_v34, %s4600_s23  ;;  %v1329_v2 = vadd.f32 %v1328_v15, %v1325_v9  ;;  %v4725_v12 = vstv %s3733_s0  ;;  %v4726_v38 = vstv %s4723_s8  ;;  %s2438_s0 = sld [smem:[#allocation11 + $0x2]]  ;;  %s2474_s8 = sld [smem:[#allocation11 + $0x383]] }
 0x2c7   : > { %v1291_v62 = vpop.permute.xlu0 %1290  ;;  %v1299_v54 = vpop.permute.xlu1 %1298  ;;  %v1341_v13 = vadd.f32 %v3772_v10, %v4725_v12  ;;  %v1409_v24 = vadd.f32 %v3770_v50, %v4726_v38  ;;  %v1577_v12 = vstv %s2437_s14  ;;  %v1593_v38 = vstv %s2439_s11  ;;  %s2441_s14 = sld [smem:[#allocation11 + $0x80]]  ;;  %s2440_s11 = sld [smem:[#allocation12 + $0x1]] }
 0x2c8   : > { %v1293_v37 = vadd.f32 %v1291_v62, %v1285_v30  ;;  %v1392_v53 = vmul.f32 %v1271_v57, %v4709_v61  ;;  %v1332_v58 = vmul.f32 %v1271_v57, %v4710_v25  ;;  %v1460_v29 = vmul.f32 %v1271_v57, %v4717_v28 }
 0x2c9   : > { %v1528_v51 = vmul.f32 %v1271_v57, %v4722_v48 }
 0x2ca   : > { %v1301_v4 = vadd.f32 %v1299_v54, %v1293_v37  ;;  %1394 = vrot.lane.b32.xlu1 %v1392_v53, %s4600_s23  ;;  %1506 = vrot.lane.b32.xlu0 %v1504_v20, %s4614_s5  ;;  %v1333_v7 = vadd.f32 %v1332_v58, %v1329_v2 }
 0x2cc   : > { %v1302_v27 = vmax.f32 %v1301_v4, 0.0 }
 0x2ce   : > { %v1336_v23 = vmul.f32 %v1302_v27, %v4716_v8  ;;  %1514 = vrot.lane.b32.xlu1 %v1512_v17, %s4614_s5  ;;  %1454 = vrot.lane.b32.xlu0 %v1452_v16, %s4603_s2  ;;  %v1400_v36 = vmul.f32 %v1302_v27, %v4718_v35  ;;  %v1468_v39 = vmul.f32 %v1302_v27, %v4719_v21 }
 0x2cf   : > { %v1536_v47 = vmul.f32 %v1302_v27, %v4721_v44 }
 0x2d0   : > { %v1337_v22 = vadd.f32 %v1336_v23, %v1333_v7 }
 0x2d2   : > { %1338 = vst.msk [vmem:[#allocation2] sm:$0xff] %vm807_vm0, %v1337_v22  ;;  %1462 = vrot.lane.b32.xlu1 %v1460_v29, %s4603_s2  ;;  %1402 = vrot.lane.b32.xlu0 %v1400_v36, %s4600_s23  ;;  %v2434_v36 = vld [vmem:[%s4636_s13 + $0x8] sm:$0xff] }
 0x2d6   : > { %1470 = vrot.lane.b32.xlu1 %v1468_v39, %s4603_s2  ;;  %1522 = vrot.lane.b32.xlu0 %v1520_v43, %s4614_s5 }
 0x2d9   : > { %v4024_v39 = vld [vmem:[#allocation2] sm:$0xff] }
 0x2da   : > { %1538 = vrot.lane.b32.xlu1 %v1536_v47, %s4614_s5  ;;  %1530 = vrot.lane.b32.xlu0 %v1528_v51, %s4614_s5  ;;  %v1546_v47 = vmul.f32 %v4024_v39, %v3873_v3  ;;  %v2436_v51 = vld [vmem:[%s4636_s13 + $0x18] sm:$0xff]  ;;  %s2447_s13 = sld [smem:[#allocation11 + $0x101]] }
 0x318   : > { %v1347_v52 = vpop.permute.xlu0 %1346 }
 0x319   : > { %v1349_v26 = vadd.f32 %v1347_v52, %v1341_v13 }
 0x31c   : > { %v1415_v56 = vpop.permute.xlu0 %1414 }
 0x31d   : > { %v1417_v57 = vadd.f32 %v1415_v56, %v1409_v24  ;;  %v1608_v24 = vstv %s2442_s24  ;;  %s2446_s24 = sld [smem:[#allocation11 + $0x100]] }
 0x320   : > { %v1355_v55 = vpop.permute.xlu1 %1354  ;;  %v1423_v33 = vpop.permute.xlu0 %1422 }
 0x321   : > { %v1357_v19 = vadd.f32 %v1355_v55, %v1349_v26  ;;  %v1425_v20 = vadd.f32 %v1423_v33, %v1417_v57 }
 0x324   : > { %v1363_v6 = vpop.permute.xlu1 %1362 }
 0x325   : > { %v1365_v30 = vadd.f32 %v1363_v6, %v1357_v19 }
 0x328   : > { %v1483_v59 = vpop.permute.xlu1 %1482 }
 0x329   : > { %v1485_v53 = vadd.f32 %v1483_v59, %v1477_v32  ;;  %v1560_v59 = vld [vmem:[%s4727_s25] sm:$0xff]  ;;  %v1624_v32 = vstv %s2444_s10  ;;  %s1571_s25 = sld [smem:[#allocation11]] }
 0x32a   : > { %s4098_s10 = sld [smem:[#allocation14 + $0x180]] }
 0x32c   : > { %v1431_v60 = vpop.permute.xlu1 %1430  ;;  %v1371_v63 = vpop.permute.xlu0 %1370 }
 0x32d   : > { %v1373_v1 = vadd.f32 %v1371_v63, %v1365_v30  ;;  %v1433_v15 = vadd.f32 %v1431_v60, %v1425_v20  ;;  %v1639_v30 = vstv %s2447_s13  ;;  %s2493_s13 = sld [smem:[#allocation14 + $0x100]] }
 0x330   : > { %v1379_v0 = vpop.permute.xlu1 %1378  ;;  %v1491_v5 = vpop.permute.xlu0 %1490 }
 0x331   : > { %v1381_v37 = vadd.f32 %v1379_v0, %v1373_v1  ;;  %v1493_v25 = vadd.f32 %v1491_v5, %v1485_v53  ;;  %v1647_v1 = vstv %s2448_s29  ;;  %s2445_s29 = sld [smem:[#allocation12 + $0x2]] }
 0x334   : > { %v1499_v18 = vpop.permute.xlu1 %1498  ;;  %v1439_v42 = vpop.permute.xlu0 %1438 }
 0x335   : > { %v1441_v54 = vadd.f32 %v1439_v42, %v1433_v15  ;;  %v1501_v27 = vadd.f32 %v1499_v18, %v1493_v25  ;;  %v1585_v42 = vstv %s2438_s0  ;;  %v1678_v25 = vstv %s2453_s16  ;;  %s1570_s0 = sld [smem:[#allocation12]]  ;;  %s4109_s16 = sld [smem:[#allocation12 + $0x3]] }
 0x338   : > { %v1447_v40 = vpop.permute.xlu1 %1446  ;;  %v1387_v34 = vpop.permute.xlu0 %1386 }
 0x339   : > { %v1389_v9 = vadd.f32 %v1387_v34, %v1381_v37  ;;  %v1449_v58 = vadd.f32 %v1447_v40, %v1441_v54 }
 0x33c   : > { %v1395_v62 = vpop.permute.xlu1 %1394  ;;  %v1507_v11 = vpop.permute.xlu0 %1506 }
 0x33d   : > { %v1397_v50 = vadd.f32 %v1395_v62, %v1389_v9  ;;  %v1509_v14 = vadd.f32 %v1507_v11, %v1501_v27  ;;  %v1616_v62 = vstv %s2443_s18  ;;  %v1701_v9 = vstv %s2457_s4  ;;  %s2483_s18 = sld [smem:[#allocation14 + $0x80]]  ;;  %s4107_s4 = sld [smem:[#allocation14 + $0x101]] }
 0x340   : > { %v1515_v61 = vpop.permute.xlu1 %1514  ;;  %v1455_v10 = vpop.permute.xlu0 %1454 }
 0x341   : > { %v1457_v41 = vadd.f32 %v1455_v10, %v1449_v58  ;;  %v1517_v7 = vadd.f32 %v1515_v61, %v1509_v14  ;;  %v1655_v61 = vstv %s2449_s19  ;;  %v1670_v10 = vstv %s2452_s6  ;;  %s4100_s19 = sld [smem:[#allocation11 + $0x180]]  ;;  %s4102_s6 = sld [smem:[#allocation14 + $0x81]] }
 0x342   : > { %v1732_v14 = vstv %s2462_s30  ;;  %s4123_s30 = sld [smem:[#allocation12 + $0x4]] }
 0x344   : > { %v1463_v4 = vpop.permute.xlu1 %1462  ;;  %v1403_v2 = vpop.permute.xlu0 %1402 }
 0x345   : > { %v1405_v17 = vadd.f32 %v1403_v2, %v1397_v50  ;;  %v1465_v16 = vadd.f32 %v1463_v4, %v1457_v41  ;;  %v1709_v4 = vstv %s2458_s27  ;;  %v1686_v2 = vstv %s2454_s28  ;;  %s4111_s27 = sld [smem:[#allocation11 + $0x200]]  ;;  %s4115_s28 = sld [smem:[#allocation14 + $0x181]] }
 0x347   : > { %1406 = vst.msk [vmem:[#allocation2 + $0x8] sm:$0xff] %vm876_vm1, %v1405_v17  ;;  %v1717_v17 = vstv %s2459_s17  ;;  %s4117_s17 = sld [smem:[#allocation14 + $0x82]] }
 0x348   : > { %v1471_v31 = vpop.permute.xlu1 %1470  ;;  %v1523_v49 = vpop.permute.xlu0 %1522 }
 0x349   : > { %v1473_v8 = vadd.f32 %v1471_v31, %v1465_v16  ;;  %v1525_v23 = vadd.f32 %v1523_v49, %v1517_v7  ;;  %v1763_v49 = vstv %s2467_s26  ;;  %v1740_v7 = vstv %s2463_s15  ;;  %s4127_s26 = sld [smem:[#allocation14 + $0x102]] }
 0x34a   : > { %s4133_s15 = sld [smem:[#allocation14 + $0x182]] }
 0x34b   : > { %1474 = vst.msk [vmem:[#allocation2 + $0x10] sm:$0xff] %vm945_vm2, %v1473_v8 }
 0x34c   : > { %v1531_v22 = vpop.permute.xlu0 %1530  ;;  %v1539_v29 = vpop.permute.xlu1 %1538 }
 0x34d   : > { %v1533_v28 = vadd.f32 %v1531_v22, %v1525_v23  ;;  %v1771_v22 = vstv %s2468_s1  ;;  %s4138_s1 = sld [smem:[#allocation11 + $0x280]] }
 0x34e   : > { %v1548_v21 = vld [vmem:[#allocation2 + $0x8] sm:$0xff] }
 0x34f   : > { %v1541_v35 = vadd.f32 %v1539_v29, %v1533_v28  ;;  %v1549_v44 = vmul.f32 %v2434_v36, %v1548_v21  ;;  %v1748_v28 = vstv %s2464_s7  ;;  %s4144_s7 = sld [smem:[#allocation14 + $0x83]] }
 0x351   : > { %1542 = vst.msk [vmem:[#allocation2 + $0x18] sm:$0xff] %vm1014_vm3, %v1541_v35  ;;  %v1550_v52 = vadd.f32 %v1549_v44, %v1546_v47  ;;  %v1810_v44 = vstv %s2474_s8  ;;  %v1802_v47 = vstv %s2473_s12  ;;  %s4156_s8 = sld [smem:[#allocation11 + $0x300]]  ;;  %s4161_s12 = sld [smem:[#allocation14 + $0x183]] }
 0x352   : > { %v1552_v43 = vld [vmem:[#allocation2 + $0x10] sm:$0xff] }
 0x353   : > { %v1553_v48 = vmul.f32 %v2435_v45, %v1552_v43 }
 0x355   : > { %v1554_v56 = vadd.f32 %v1553_v48, %v1550_v52 }
 0x358   : > { %v1556_v55 = vld [vmem:[#allocation2 + $0x18] sm:$0xff] }
 0x359   : > { %v1557_v6 = vmul.f32 %v2436_v51, %v1556_v55 }
 0x35b   : > { %v1558_v33 = vadd.f32 %v1557_v6, %v1554_v56  ;;  %v1572_v56 = vstv %s1571_s25  ;;  %s4163_s25 = sld [smem:[#allocation14 + $0x84]] }
 0x35d   : > { %v1559_v60 = vsub.f32 %v3765_v46, %v1558_v33  ;;  %v1574_v33 = vstv %s1570_s0  ;;  %s4165_s0 = sld [smem:[#allocation15]] }
 0x35f   : > { %v4032_v63 = vmul.f32 %v1560_v59, %v1559_v60 }
 0x361   : > { %v1566_v0 = vmul.f32 %v2435_v45, %v4032_v63  ;;  %v1564_v5 = vmul.f32 %v2434_v36, %v4032_v63  ;;  %v1568_v18 = vmul.f32 %v2436_v51, %v4032_v63  ;;  %v1779_v36 = vstv %s2469_s3  ;;  %s4150_s3 = sld [smem:[#allocation14 + $0x103]] }
 0x362   : > { %v1562_v52 = vmul.f32 %v4032_v63, %v3873_v3 }
 0x363   : > { %v4037_v13 = vadd.f32 %v1566_v0, %v1552_v43  ;;  %v4039_v26 = vadd.f32 %v1564_v5, %v1548_v21  ;;  %v4043_v34 = vadd.f32 %v1568_v18, %v1556_v55  ;;  %v1794_v21 = vstv %s2472_s9  ;;  %s4154_s9 = sld [smem:[#allocation12 + $0x5]] }
 0x364   : > { %v4094_v55 = vadd.f32 %v1562_v52, %v4024_v39  ;;  %v1603_v5 = vstv %s2441_s14  ;;  %s4167_s14 = sld [smem:[#allocation14]] }
 0x365   : > { %v1586_v46 = vmul.f32 %v1585_v42, %v4037_v13  ;;  %v1578_v40 = vmul.f32 %v1577_v12, %v4039_v26  ;;  %v1594_v19 = vmul.f32 %v1593_v38, %v4043_v34  ;;  %v1609_v57 = vmul.f32 %v1608_v24, %v4039_v26 }
 0x366   : > { %v1640_v11 = vmul.f32 %v1639_v30, %v4039_v26  ;;  %v1617_v20 = vmul.f32 %v1616_v62, %v4037_v13  ;;  %v1648_v15 = vmul.f32 %v1647_v1, %v4037_v13  ;;  %v1625_v37 = vmul.f32 %v1624_v32, %v4043_v34 }
 0x367   : > { %1588 = vrot.lane.b32.xlu1 %v1586_v46, %s4572_s21  ;;  %1580 = vrot.lane.b32.xlu0 %v1578_v40, %s4569_s22  ;;  %v1656_v53 = vmul.f32 %v1655_v61, %v4043_v34  ;;  %v1671_v54 = vmul.f32 %v1670_v10, %v4039_v26  ;;  %v1702_v58 = vmul.f32 %v1701_v9, %v4039_v26  ;;  %v1605_v42 = vstv %s2440_s11  ;;  %s4173_s11 = sld [smem:[#allocation12 + $0x6]] }
 0x368   : > { %v1679_v50 = vmul.f32 %v1678_v25, %v4037_v13  ;;  %v1710_v27 = vmul.f32 %v1709_v4, %v4037_v13  ;;  %v1687_v41 = vmul.f32 %v1686_v2, %v4043_v34  ;;  %v1718_v16 = vmul.f32 %v1717_v17, %v4043_v34 }
 0x369   : > { %v1733_v31 = vmul.f32 %v1732_v14, %v4039_v26  ;;  %v1764_v8 = vmul.f32 %v1763_v49, %v4039_v26  ;;  %v1741_v23 = vmul.f32 %v1740_v7, %v4037_v13  ;;  %v1772_v29 = vmul.f32 %v1771_v22, %v4037_v13 }
 0x36a   : > { %v1749_v35 = vmul.f32 %v1748_v28, %v4043_v34  ;;  %v1780_v45 = vmul.f32 %v1779_v36, %v4043_v34  ;;  %v1795_v43 = vmul.f32 %v1794_v21, %v4039_v26  ;;  %v1811_v48 = vmul.f32 %v1810_v44, %v4043_v34 }
 0x36b   : > { %1596 = vrot.lane.b32.xlu1 %v1594_v19, %s4622_s20  ;;  %1611 = vrot.lane.b32.xlu0 %v1609_v57, %s4569_s22  ;;  %v1803_v51 = vmul.f32 %v1802_v47, %v4037_v13  ;;  %v1573_v6 = vmul.f32 %v1572_v56, %v4094_v55  ;;  %v1604_v63 = vmul.f32 %v1603_v5, %v4094_v55  ;;  %v1634_v46 = vstv %s2446_s24  ;;  %s4175_s24 = sld [smem:[#allocation11 + $0x380]] }
 0x36c   : > { %v1931_v38 = vstv %s2493_s13  ;;  %v1635_v57 = vmul.f32 %v1634_v46, %v4094_v55  ;;  %v1858_v30 = vstv %s2483_s18  ;;  %v1636_v62 = vstv %s2445_s29  ;;  %s4177_s13 = sld [smem:[#allocation14 + $0x1]]  ;;  %s4182_s18 = sld [smem:[#allocation14 + $0x104]] }
 0x36d   : > { %v1575_v59 = vadd.f32 %v1574_v33, %v1573_v6  ;;  %v1606_v19 = vadd.f32 %v1605_v42, %v1604_v63  ;;  %v2004_v10 = vstv %s4098_s10  ;;  %v1665_v9 = vstv %s4100_s19  ;;  %s4184_s29 = sld [smem:[#allocation14 + $0x2]]  ;;  %s4191_s10 = sld [smem:[#allocation14 + $0x184]] }
 0x36e   : > { %v1866_v4 = vstv %s4102_s6  ;;  %v1939_v17 = vstv %s4107_s4  ;;  %v1696_v49 = vstv %s4111_s27  ;;  %v2012_v22 = vstv %s4115_s28  ;;  %s4196_s19 = sld [smem:[#allocation12 + $0x7]]  ;;  %s4198_s6 = sld [smem:[#allocation14 + $0x3]] }
 0x36f   : > { %1642 = vrot.lane.b32.xlu1 %v1640_v11, %s4569_s22  ;;  %1619 = vrot.lane.b32.xlu0 %v1617_v20, %s4572_s21  ;;  %v1874_v28 = vstv %s4117_s17  ;;  %v1697_v36 = vmul.f32 %v1696_v49, %v4094_v55  ;;  %v1698_v21 = vstv %s4123_s30  ;;  %s4204_s4 = sld [smem:[#allocation14 + $0x85]]  ;;  %s4214_s27 = sld [smem:[#allocation14 + $0x4]] }
 0x370   : > { %v2020_v6 = vstv %s4133_s15  ;;  %v1882_v63 = vstv %s4144_s7  ;;  %v1955_v46 = vstv %s4150_s3  ;;  %s4222_s28 = sld [smem:[#allocation14 + $0x5]]  ;;  %s4228_s30 = sld [smem:[#allocation14 + $0x86]] }
 0x371   : > { %v1699_v52 = vadd.f32 %v1698_v21, %v1697_v36  ;;  %s4226_s17 = sld [smem:[#allocation14 + $0x185]]  ;;  %s4245_s15 = sld [smem:[#allocation14 + $0x106]] }
 0x372   : > { %s4254_s7 = sld [smem:[#allocation14 + $0x7]] }
 0x373   : > { %1650 = vrot.lane.b32.xlu1 %v1648_v15, %s4572_s21  ;;  %1627 = vrot.lane.b32.xlu0 %v1625_v37, %s4622_s20  ;;  %v1637_v37 = vadd.f32 %v1636_v62, %v1635_v57  ;;  %v1758_v57 = vstv %s4156_s8  ;;  %v2036_v49 = vstv %s4191_s10  ;;  %s4259_s3 = sld [smem:[#allocation14 + $0x87]] }
 0x374   : > { %s2510_s8 = sld [smem:[#allocation14 + $0x187]] }
 0x377   : > { %1658 = vrot.lane.b32.xlu1 %v1656_v53, %s4622_s20  ;;  %1673 = vrot.lane.b32.xlu0 %v1671_v54, %s4569_s22 }
 0x37b   : > { %1704 = vrot.lane.b32.xlu1 %v1702_v58, %s4569_s22  ;;  %1681 = vrot.lane.b32.xlu0 %v1679_v50, %s4572_s21 }
 0x37f   : > { %1712 = vrot.lane.b32.xlu1 %v1710_v27, %s4572_s21  ;;  %1689 = vrot.lane.b32.xlu0 %v1687_v41, %s4622_s20  ;;  %v1666_v41 = vmul.f32 %v1665_v9, %v4094_v55 }
 0x383   : > { %1720 = vrot.lane.b32.xlu1 %v1718_v16, %s4622_s20  ;;  %1735 = vrot.lane.b32.xlu0 %v1733_v31, %s4569_s22  ;;  %v1667_v16 = vstv %s4109_s16  ;;  %s4211_s16 = sld [smem:[#allocation14 + $0x105]] }
 0x387   : > { %1766 = vrot.lane.b32.xlu1 %v1764_v8, %s4569_s22  ;;  %1743 = vrot.lane.b32.xlu0 %v1741_v23, %s4572_s21 }
 0x38b   : > { %1774 = vrot.lane.b32.xlu1 %v1772_v29, %s4572_s21  ;;  %1751 = vrot.lane.b32.xlu0 %v1749_v35, %s4622_s20  ;;  %v1668_v35 = vadd.f32 %v1667_v16, %v1666_v41 }
 0x38f   : > { %1782 = vrot.lane.b32.xlu1 %v1780_v45, %s4622_s20  ;;  %1797 = vrot.lane.b32.xlu0 %v1795_v43, %s4569_s22 }
 0x393   : > { %1813 = vrot.lane.b32.xlu1 %v1811_v48, %s4622_s20  ;;  %1805 = vrot.lane.b32.xlu0 %v1803_v51, %s4572_s21  ;;  %v1947_v51 = vstv %s4127_s26  ;;  %s4236_s26 = sld [smem:[#allocation14 + $0x6]] }
 0x3d9   : > { %v1589_v60 = vpop.permute.xlu1 %1588  ;;  %v1581_v0 = vpop.permute.xlu0 %1580 }
 0x3da   : > { %v1583_v18 = vadd.f32 %v1581_v0, %v1575_v59 }
 0x3dc   : > { %v1591_v3 = vadd.f32 %v1589_v60, %v1583_v18  ;;  %v1727_v60 = vstv %s4138_s1  ;;  %s4249_s1 = sld [smem:[#allocation14 + $0x186]] }
 0x3dd   : > { %v1597_v39 = vpop.permute.xlu1 %1596  ;;  %v1612_v12 = vpop.permute.xlu0 %1611 }
 0x3de   : > { %v1599_v40 = vadd.f32 %v1597_v39, %v1591_v3  ;;  %v1614_v1 = vadd.f32 %v1612_v12, %v1606_v19  ;;  %v1728_v12 = vmul.f32 %v1727_v60, %v4094_v55 }
 0x3e0   : > { %v4104_v24 = vmax.f32 %v1599_v40, 0.0 }
 0x3e1   : > { %v1643_v11 = vpop.permute.xlu1 %1642  ;;  %v1620_v20 = vpop.permute.xlu0 %1619 }
 0x3e2   : > { %v1932_v32 = vmul.f32 %v1931_v38, %v4104_v24  ;;  %v1859_v15 = vmul.f32 %v1858_v30, %v4104_v24  ;;  %v1622_v61 = vadd.f32 %v1620_v20, %v1614_v1  ;;  %v1645_v25 = vadd.f32 %v1643_v11, %v1637_v37 }
 0x3e3   : > { %v2005_v50 = vmul.f32 %v2004_v10, %v4104_v24  ;;  %v1729_v38 = vstv %s4154_s9  ;;  %v2028_v20 = vstv %s4161_s12  ;;  %v1890_v1 = vstv %s4163_s25  ;;  %s4263_s9 = sld [smem:[#allocation14 + $0x107]]  ;;  %s4728_s12 = sld [smem:[#allocation34_spill]] }
 0x3e4   : > { %1934 = vrot.lane.b32.xlu1 %v1932_v32, %s4603_s2  ;;  %1861 = vrot.lane.b32.xlu0 %v1859_v15, %s4600_s23  ;;  %v1822_v32 = vstv %s4167_s14  ;;  %v1730_v37 = vadd.f32 %v1729_v38, %v1728_v12  ;;  %v1819_v10 = vstv %s4165_s0  ;;  %s2492_s0 = sld [smem:[#allocation15 + $0x2]]  ;;  %s2502_s14 = sld [smem:[#allocation15 + $0x3]] }
 0x3e5   : > { %v1651_v53 = vpop.permute.xlu1 %1650  ;;  %v1628_v54 = vpop.permute.xlu0 %1627  ;;  %v1823_v41 = vmul.f32 %v1822_v32, %v4104_v24  ;;  %v1846_v38 = vstv %s4236_s26 }
 0x3e6   : > { %v1630_v58 = vadd.f32 %v1628_v54, %v1622_v61  ;;  %v1653_v2 = vadd.f32 %v1651_v53, %v1645_v25  ;;  %v1759_v61 = vmul.f32 %v1758_v57, %v4094_v55  ;;  %v1760_v53 = vstv %s4173_s11  ;;  %s4731_s11 = sld [smem:[#allocation32_spill]] }
 0x3e7   : > { %v1789_v25 = vstv %s4175_s24 }
 0x3e8   : > { %v4129_v27 = vmax.f32 %v1630_v58, 0.0  ;;  %2007 = vrot.lane.b32.xlu0 %v2005_v50, %s4614_s5  ;;  %v1826_v58 = vstv %s4177_s13  ;;  %v1761_v16 = vadd.f32 %v1760_v53, %v1759_v61  ;;  %v2052_v61 = vstv %s4249_s1 }
 0x3e9   : > { %v1659_v14 = vpop.permute.xlu1 %1658  ;;  %v1674_v31 = vpop.permute.xlu0 %1673  ;;  %s4278_s25 = scalar_lea.vmem [#allocation17], %s4728_s12 }
 0x3ea   : > { %v1661_v7 = vadd.f32 %v1659_v14, %v1653_v2  ;;  %v1867_v8 = vmul.f32 %v1866_v4, %v4129_v27  ;;  %v1940_v23 = vmul.f32 %v1939_v17, %v4129_v27  ;;  %v1676_v44 = vadd.f32 %v1674_v31, %v1668_v35  ;;  %s2086_s24 = sshll.u32 %s4278_s25, 4  ;;  %s4292_s24 = int_to_ptr.vmem [resolvable:$true] %s2086_s24 }
 0x3eb   : > { %v2013_v47 = vmul.f32 %v2012_v22, %v4129_v27  ;;  %v1963_v17 = vstv %s4182_s18  ;;  %v1830_v14 = vstv %s4184_s29  ;;  %v1791_v22 = vstv %s4196_s19  ;;  %s4732_s18 = sld [smem:[#allocation97_spill]]  ;;  %s2776_s10 = scalar_lea.vmem %s4292_s24, 512 }
 0x3ec   : > { %v4146_v29 = vmax.f32 %v1661_v7, 0.0  ;;  %1869 = vrot.lane.b32.xlu1 %v1867_v8, %s4600_s23  ;;  %1942 = vrot.lane.b32.xlu0 %v1940_v23, %s4603_s2  ;;  %v1820_v7 = vadd.f32 %v1819_v10, %v4094_v55  ;;  %v1827_v8 = vmul.f32 %v1826_v58, %v4129_v27  ;;  %v1834_v35 = vstv %s4198_s6  ;;  %p2777_p8 = scmp.ne.s32.totalorder %s4292_s24, %s2776_s10  ;;  %p4733_p11 = scmp.ne.s32.totalorder %s4731_s11, 0 }
 0x3ed   : > { %v1705_v45 = vpop.permute.xlu1 %1704  ;;  %v1682_v43 = vpop.permute.xlu0 %1681  ;;  %v1850_v10 = vstv %s4254_s7  ;;  %v1914_v58 = vstv %s4259_s3  ;;  %s2877_s19 = smov [#allocation17]  }
 0x3ee   : > { %v1875_v48 = vmul.f32 %v1874_v28, %v4146_v29  ;;  %v1684_v56 = vadd.f32 %v1682_v43, %v1676_v44  ;;  %v1707_v0 = vadd.f32 %v1705_v45, %v1699_v52  ;;  %v1948_v18 = vmul.f32 %v1947_v51, %v4146_v29  ;;  %p2778_p3 = pnand %p2777_p8, %p4733_p11  ;;  %s2780_s6 = sshll.u32 %s2877_s19, 4  ;;  %s2781_s6 = int_to_ptr.vmem [resolvable:$false] %s2780_s6 }
 0x3ef   : > { %v2021_v3 = vmul.f32 %v2020_v6, %v4146_v29  ;;  %v1790_v28 = vmul.f32 %v1789_v25, %v4094_v55  ;;  %v1824_v43 = vadd.f32 %v1823_v41, %v1820_v7  ;;  %v1831_v44 = vmul.f32 %v1830_v14, %v4146_v29  ;;  %p2783_p5 = scmp.lt.s32.totalorder %s4292_s24, %s2781_s6 }
 0x3f0   : > { %2015 = vrot.lane.b32.xlu1 %v2013_v47, %s4614_s5  ;;  %1877 = vrot.lane.b32.xlu0 %v1875_v48, %s4600_s23  ;;  %v1898_v47 = vstv %s4204_s4  ;;  %v1971_v55 = vstv %s4211_s16  ;;  %p2779_p1 = pneg %p2778_p3  ;;  %s2782_s4 = scalar_lea.vmem %s2781_s6, 1024 }
 0x3f1   : > { %v1713_v33 = vpop.permute.xlu1 %1712  ;;  %v1690_v59 = vpop.permute.xlu0 %1689  ;;  %v1828_v52 = vadd.f32 %v1827_v8, %v1824_v43  ;;  %v1838_v6 = vstv %s4214_s27  ;;  %p2784_p9 = scmp.lt.s32.totalorder %s2782_s4, %s2776_s10 }
 0x3f2   : > { %v1692_v5 = vadd.f32 %v1690_v59, %v1684_v56  ;;  %v1715_v39 = vadd.f32 %v1713_v33, %v1707_v0  ;;  %v1842_v59 = vstv %s4222_s28  ;;  %v1792_v0 = vadd.f32 %v1791_v22, %v1790_v28 }
 0x3f3   : > { %p2785_p0 = por %p2784_p9, %p2783_p5 }
 0x3f4   : > { %v4186_v42 = vmax.f32 %v1692_v5, 0.0  ;;  %1950 = vrot.lane.b32.xlu1 %v1948_v18, %s4603_s2  ;;  %2023 = vrot.lane.b32.xlu0 %v2021_v3, %s4614_s5  ;;  %v1832_v18 = vadd.f32 %v1831_v44, %v1828_v52 }
 0x3f5   : > { %v1721_v40 = vpop.permute.xlu1 %1720  ;;  %v1736_v19 = vpop.permute.xlu0 %1735  ;;  %p2786_p4 = pnand %p2785_p0, %p2779_p1 }
 0x3f6   : > { %v1723_v30 = vadd.f32 %v1721_v40, %v1715_v39  ;;  %v1883_v62 = vmul.f32 %v1882_v63, %v4186_v42  ;;  %v1956_v11 = vmul.f32 %v1955_v46, %v4186_v42  ;;  %v1738_v50 = vadd.f32 %v1736_v19, %v1730_v37 }
 0x3f7   : > { %v2029_v4 = vmul.f32 %v2028_v20, %v4186_v42  ;;  %v1835_v56 = vmul.f32 %v1834_v35, %v4186_v42  ;;  %v2044_v63 = vstv %s4226_s17  ;;  %v1906_v39 = vstv %s4228_s30 }
 0x3f8   : > { %v4207_v15 = vmax.f32 %v1723_v30, 0.0  ;;  %1885 = vrot.lane.b32.xlu1 %v1883_v62, %s4600_s23  ;;  %1958 = vrot.lane.b32.xlu0 %v1956_v11, %s4603_s2 }
 0x3f9   : > { %v1767_v54 = vpop.permute.xlu1 %1766  ;;  %v1744_v9 = vpop.permute.xlu0 %1743  ;;  %v1836_v40 = vadd.f32 %v1835_v56, %v1832_v18  ;;  %v2001_v56 = vstv %s2502_s14 }
 0x3fa   : > { %v1891_v2 = vmul.f32 %v1890_v1, %v4207_v15  ;;  %v1746_v31 = vadd.f32 %v1744_v9, %v1738_v50  ;;  %v1769_v36 = vadd.f32 %v1767_v54, %v1761_v16  ;;  %v1964_v45 = vmul.f32 %v1963_v17, %v4207_v15 }
 0x3fb   : > { %v2037_v27 = vmul.f32 %v2036_v49, %v4207_v15  ;;  %v1839_v42 = vmul.f32 %v1838_v6, %v4207_v15  ;;  %v1979_v1 = vstv %s4245_s15  ;;  %v2060_v16 = vstv %s2510_s8 }
 0x3fc   : > { %2031 = vrot.lane.b32.xlu1 %v2029_v4, %s4614_s5  ;;  %1893 = vrot.lane.b32.xlu0 %v1891_v2, %s4600_s23  ;;  %v1987_v2 = vstv %s4263_s9 }
 0x3fd   : > { %v1775_v24 = vpop.permute.xlu1 %1774  ;;  %v1752_v23 = vpop.permute.xlu0 %1751  ;;  %v1840_v32 = vadd.f32 %v1839_v42, %v1836_v40 }
 0x3fe   : > { %v1754_v21 = vadd.f32 %v1752_v23, %v1746_v31  ;;  %v1777_v48 = vadd.f32 %v1775_v24, %v1769_v36 }
 0x400   : > { %v1755_v51 = vmax.f32 %v1754_v21, 0.0  ;;  %1966 = vrot.lane.b32.xlu1 %v1964_v45, %s4603_s2  ;;  %2039 = vrot.lane.b32.xlu0 %v2037_v27, %s4614_s5 }
 0x401   : > { %v1783_v29 = vpop.permute.xlu1 %1782  ;;  %v1798_v33 = vpop.permute.xlu0 %1797 }
 0x402   : > { %v1785_v60 = vadd.f32 %v1783_v29, %v1777_v48  ;;  %v1899_v5 = vmul.f32 %v1898_v47, %v1755_v51  ;;  %v1972_v3 = vmul.f32 %v1971_v55, %v1755_v51  ;;  %v1800_v46 = vadd.f32 %v1798_v33, %v1792_v0 }
 0x403   : > { %v1843_v57 = vmul.f32 %v1842_v59, %v1755_v51  ;;  %v2045_v62 = vmul.f32 %v2044_v63, %v1755_v51  ;;  %v1928_v47 = vstv %s2492_s0  ;;  %v2002_v59 = vadd.f32 %v2001_v56, %v4043_v34 }
 0x404   : > { %v1786_v12 = vmax.f32 %v1785_v60, 0.0  ;;  %1901 = vrot.lane.b32.xlu1 %v1899_v5, %s4600_s23  ;;  %1974 = vrot.lane.b32.xlu0 %v1972_v3, %s4603_s2  ;;  %v1929_v52 = vadd.f32 %v1928_v47, %v4037_v13 }
 0x405   : > { %v1806_v19 = vpop.permute.xlu0 %1805  ;;  %v1814_v20 = vpop.permute.xlu1 %1813  ;;  %v1844_v53 = vadd.f32 %v1843_v57, %v1840_v32 }
 0x406   : > { %v1808_v30 = vadd.f32 %v1806_v19, %v1800_v46  ;;  %v1907_v11 = vmul.f32 %v1906_v39, %v1786_v12  ;;  %v1847_v15 = vmul.f32 %v1846_v38, %v1786_v12  ;;  %v1980_v9 = vmul.f32 %v1979_v1, %v1786_v12 }
 0x407   : > { %v2053_v25 = vmul.f32 %v2052_v61, %v1786_v12 }
 0x408   : > { %v1816_v37 = vadd.f32 %v1814_v20, %v1808_v30  ;;  %2047 = vrot.lane.b32.xlu1 %v2045_v62, %s4614_s5  ;;  %1909 = vrot.lane.b32.xlu0 %v1907_v11, %s4600_s23  ;;  %v1848_v50 = vadd.f32 %v1847_v15, %v1844_v53 }
 0x40a   : > { %v1817_v54 = vmax.f32 %v1816_v37, 0.0 }
 0x40c   : > { %v1851_v4 = vmul.f32 %v1850_v10, %v1817_v54  ;;  %1982 = vrot.lane.b32.xlu1 %v1980_v9, %s4603_s2  ;;  %2055 = vrot.lane.b32.xlu0 %v2053_v25, %s4614_s5  ;;  %v1915_v17 = vmul.f32 %v1914_v58, %v1817_v54  ;;  %v1988_v14 = vmul.f32 %v1987_v2, %v1817_v54 }
 0x40d   : > { %v2061_v31 = vmul.f32 %v2060_v16, %v1817_v54 }
 0x40e   : > { %v1852_v41 = vadd.f32 %v1851_v4, %v1848_v50 }
 0x410   : > { %1917 = vrot.lane.b32.xlu1 %v1915_v17, %s4600_s23  ;;  %1853 = vst.msk [vmem:[%s4278_s25] sm:$0xff] %vm807_vm0, %v1852_v41  ;;  %1990 = vrot.lane.b32.xlu0 %v1988_v14, %s4603_s2  ;;  %s2482_s23 = sld [smem:[#allocation15 + $0x1]]  ;;  %s4729_s2 = sld [smem:[#allocation28_spill]] }
 0x414   : > { %2063 = vrot.lane.b32.xlu1 %v2061_v31, %s4614_s5  ;;  %s4730_s5 = sld [smem:[#allocation33_spill]] }
 0x416   : > { %v1855_v27 = vstv %s2482_s23  ;;  %s2513_s13 = sshll.u32 %s4729_s2, 7 }
 0x417   : > { %v1856_v51 = vadd.f32 %v1855_v27, %v4039_v26  ;;  %s4301_s29 = scalar_lea.hbm %s4732_s18, %s2513_s13 }
 0x456   : > { %v1862_v49 = vpop.permute.xlu0 %1861  ;;  %v1935_v7 = vpop.permute.xlu1 %1934 }
 0x457   : > { %v1864_v6 = vadd.f32 %v1862_v49, %v1856_v51  ;;  %v1937_v29 = vadd.f32 %v1935_v7, %v1929_v52 }
 0x45a   : > { %v2008_v8 = vpop.permute.xlu0 %2007 }
 0x45b   : > { %v2010_v18 = vadd.f32 %v2008_v8, %v2002_v59 }
 0x45e   : > { %v1870_v24 = vpop.permute.xlu1 %1869  ;;  %v1943_v23 = vpop.permute.xlu0 %1942 }
 0x45f   : > { %v1872_v60 = vadd.f32 %v1870_v24, %v1864_v6  ;;  %v1945_v5 = vadd.f32 %v1943_v23, %v1937_v29 }
 0x462   : > { %v2016_v22 = vpop.permute.xlu1 %2015  ;;  %v1878_v28 = vpop.permute.xlu0 %1877 }
 0x463   : > { %v1880_v3 = vadd.f32 %v1878_v28, %v1872_v60  ;;  %v2018_v42 = vadd.f32 %v2016_v22, %v2010_v18 }
 0x466   : > { %v1951_v35 = vpop.permute.xlu1 %1950  ;;  %v2024_v36 = vpop.permute.xlu0 %2023 }
 0x467   : > { %v1953_v63 = vadd.f32 %v1951_v35, %v1945_v5  ;;  %v2026_v40 = vadd.f32 %v2024_v36, %v2018_v42 }
 0x46a   : > { %v1886_v21 = vpop.permute.xlu1 %1885  ;;  %v1959_v45 = vpop.permute.xlu0 %1958 }
 0x46b   : > { %v1888_v12 = vadd.f32 %v1886_v21, %v1880_v3  ;;  %v1961_v26 = vadd.f32 %v1959_v45, %v1953_v63 }
 0x46e   : > { %v2032_v43 = vpop.permute.xlu1 %2031  ;;  %v1894_v44 = vpop.permute.xlu0 %1893 }
 0x46f   : > { %v1896_v38 = vadd.f32 %v1894_v44, %v1888_v12  ;;  %v2034_v57 = vadd.f32 %v2032_v43, %v2026_v40 }
 0x472   : > { %v1967_v48 = vpop.permute.xlu1 %1966  ;;  %v2040_v55 = vpop.permute.xlu0 %2039 }
 0x473   : > { %v1969_v13 = vadd.f32 %v1967_v48, %v1961_v26  ;;  %v2042_v11 = vadd.f32 %v2040_v55, %v2034_v57 }
 0x476   : > { %v1902_v33 = vpop.permute.xlu1 %1901  ;;  %v1975_v0 = vpop.permute.xlu0 %1974 }
 0x477   : > { %v1904_v30 = vadd.f32 %v1902_v33, %v1896_v38  ;;  %v1977_v34 = vadd.f32 %v1975_v0, %v1969_v13 }
 0x47a   : > { %v2048_v39 = vpop.permute.xlu1 %2047  ;;  %v1910_v46 = vpop.permute.xlu0 %1909 }
 0x47b   : > { %v1912_v20 = vadd.f32 %v1910_v46, %v1904_v30  ;;  %v2050_v15 = vadd.f32 %v2048_v39, %v2042_v11 }
 0x47e   : > { %v1983_v19 = vpop.permute.xlu1 %1982  ;;  %v2056_v62 = vpop.permute.xlu0 %2055 }
 0x47f   : > { %v1985_v1 = vadd.f32 %v1983_v19, %v1977_v34  ;;  %v2058_v53 = vadd.f32 %v2056_v62, %v2050_v15 }
 0x482   : > { %v1918_v32 = vpop.permute.xlu1 %1917  ;;  %v1991_v61 = vpop.permute.xlu0 %1990 }
 0x483   : > { %v1920_v37 = vadd.f32 %v1918_v32, %v1912_v20  ;;  %v1993_v10 = vadd.f32 %v1991_v61, %v1985_v1 }
 0x485   : > { %1922 = vrot.lane.b32.xlu0 %v1920_v37, %s4569_s22  ;;  %1995 = vrot.lane.b32.xlu1 %v1993_v10, %s4572_s21 }
 0x486   : > { %v2064_v54 = vpop.permute.xlu1 %2063 }
 0x487   : > { %v2066_v9 = vadd.f32 %v2064_v54, %v2058_v53 }
 0x489   : > { %2068 = vrot.lane.b32.xlu0 %v2066_v9, %s4622_s20  ;;  %s2074_s20 = scalar_lea.sflag [#allocation6], %s4730_s5 }
 0x4f7   : > { %v1923_v25 = vpop.permute.xlu0 %1922  ;;  %v1996_v58 = vpop.permute.xlu1 %1995 }
 0x4f8   : > { %2491 = vst.msk [vmem:[%s4278_s25 + $0x8] sm:$0xff] %vm807_vm0, %v1923_v25  ;;  %2501 = vst.msk [vmem:[%s4278_s25 + $0x10] sm:$0xff] %vm807_vm0, %v1996_v58 }
 0x4fb   : > { %v2069_v50 = vpop.permute.xlu0 %2068 }
 0x4fc   : > { %2511 = vst.msk [vmem:[%s4278_s25 + $0x18] sm:$0xff] %vm807_vm0, %v2069_v50 }
 0x4fd   : > { %2789 = shalt.err (!%p2786_p4)
}
 0x4fe   : > { %s2790_s16 = scalar_lea.hbm %s4301_s29, 512  ;;  %s2794_s17 = scalar_lea.hbm %s4732_s18, 1024 }
 0x4ff   : > { %p2791_p13 = scmp.ne.s32.totalorder %s4301_s29, %s2790_s16  ;;  %p2795_p7 = scmp.lt.u32.totalorder %s4301_s29, %s4732_s18 }
 0x500   : > { %p2796_p2 = scmp.lt.u32.totalorder %s2794_s17, %s2790_s16  ;;  %p2798_p8 = scmp.lt.u32.totalorder %s2790_s16, %s4301_s29 }
 0x501   : > { %p2792_p10 = pnand %p2791_p13, %p4733_p11 }
 0x502   : > { %p2797_p6 = por %p2796_p2, %p2795_p7 }
 0x503   : > { %p2793_p12 = pneg %p2792_p10 }
 0x504   : > { %p2799_p3 = por %p2798_p8, %p2797_p6 }
 0x506   : > { %p2800_p1 = pnand %p2799_p3, %p2793_p12 }
 0x508   : > { %2803 = shalt.err (!%p2800_p1)
}
 0x509   : > { %s2878_s15 = smov 128   ;;  %s2879_s1 = smov 256  }
 0x50a   : > { %s2880_s7 = smov 8  }
 0x50b   : > { %2538 = dma.vmem_to_hbm [thread:$0]  (%p4733_p11), %s4292_s24, 512, %s4301_s29, %s2074_s20, %s2878_s15, %s2879_s1, %s2880_s7  }
 0x50c PF: > { %s4734_s3 = sld [smem:[#allocation24_spill]]  ;;  %s4735_s9 = sld [smem:[#allocation29_spill]] }
 0x50d   : > { %s4736_s8 = sld [smem:[#allocation27_spill]] }
 0x512   : > { %s2101_s12 = sand.u32 1, %s4734_s3   ;;  %p4737_p5 = scmp.ne.s32.totalorder %s4735_s9, 0 }
 0x513   : > { %p4738_p9 = scmp.ge.s32.totalorder %s4736_s8, 2  ;;  %s2102_s25 = scalar_lea.sflag [#allocation6], %s2101_s12 }
 0x515   : > { %p2564_p0 = pnand %p4738_p9, %p4737_p5 }
 0x517   : > { %2841 = dma.done.wait (!%p2564_p0), %s2102_s25, 512  }
 0x518   : > { %2843 = vsyncadd (!%p2564_p0), %s2102_s25, 4294966784  ;;  %s4739_s30 = sld [smem:[#allocation30_spill]]  ;;  %s4740_s27 = sld [smem:[#allocation25_spill]] }
 0x519   : > { %s4741_s28 = sld [smem:[#allocation26_spill]]  ;;  %s4742_s29 = sld [smem:[#allocation31_spill]] }
 0x51e   : > { %p27_p4 = scmp.ge.s32.totalorder %s4739_s30, 4  }
 0x520   :  { %29 = sbr.rel (!%p27_p4) target bundleno = 20 (0x14), region = 150 }
 0x527   :  { %2107 = vsyncpa [#allocation5], 1 }
 0x528   :  { %2109 = vsyncpa [#allocation5 + $0x1], 1 }
 0x529   :  { %2110 = vsyncpa [#allocation9], 1 }
 0x52a   :  { %2112 = vsyncpa [#allocation9 + $0x1], 1 }
 0x52b   :  { %2113 = vsyncpa [#allocation6], 1 }
 0x52c   :  { %2115 = vsyncpa [#allocation6 + $0x1], 1 }
 0x52d   :  { %2116 = vsyncpa [#allocation7], 1 }
 0x52e   :  { %2118 = vsyncpa [#allocation7 + $0x1], 1 }
 0x52f   :  { %2119 = vsyncpa [#allocation13], 1 }
 0x530   :  { %2120 = vsyncpa [#allocation16], 1 }

</bundles_post_ra>
